<compile_context>
chip_gen: v6e
topology: v6e:2x2x1
jax: 0.10.0
libtpu: 0.0.40
codegen_flags: <defaults>
</compile_context>

<pallas_src>
import functools
import math

import jax
import jax.numpy as jnp
from jax.experimental import pallas as pl
from jax.experimental.pallas import tpu as pltpu

# ----------------------------- configuration --------------------------------
B = 2            # batch
N = 64           # sequence length (must be > MAX_TEXT_LEN)
C = 32           # dim
NUM_HEADS = 4
HEAD_DIM = C // NUM_HEADS
SCALE = HEAD_DIM ** (-0.5)
MLP_RATIO = 4.0
HID = int(C * MLP_RATIO)
MAX_TEXT_LEN = 40
LN_EPS = 1e-5
GAMMA_INIT = 0.1

PARAM_DTYPE = jnp.bfloat16   # storage dtype for weight matrices (MXU-native)

# Packing layout: one row per small vector in a (13, 128) f32 slab.
VEC_KEYS = ("n1w", "n1b", "bproj", "g1",
            "n2tw", "n2tb", "b2t",
            "n2iw", "n2ib", "b2i",
            "g2", "b1t", "b1i")
VEC_IDX = {k: i for i, k in enumerate(VEC_KEYS)}
# Weight slab row order (each matrix pre-transposed, padded to 128 lanes).
W_KEYS = ("wqkv", "wproj", "w1t", "w1i", "w2t", "w2i")


# ------------------------------ kernel helpers --------------------------------
def _layer_norm(x, w, b):
    # x: (M, C) f32 ; w, b: (1, C) f32
    mu = jnp.mean(x, axis=-1, keepdims=True)
    var = jnp.mean((x - mu) ** 2, axis=-1, keepdims=True)
    return (x - mu) * jax.lax.rsqrt(var + LN_EPS) * w + b


def _mlp(x, nw, nb, w1_t, b1, w2_t, b2):
    # LayerNorm -> Linear -> exact GELU -> Linear.
    # Weight operands are bf16; activations cast to bf16 at the MXU boundary;
    # accumulation and element-wise math stay f32.
    h = _layer_norm(x, nw, nb)
    y = jnp.dot(h.astype(jnp.bfloat16), w1_t,
                preferred_element_type=jnp.float32) + b1
    y = 0.5 * y * (1.0 + jax.lax.erf(y * (1.0 / math.sqrt(2.0))))
    return jnp.dot(y.astype(jnp.bfloat16), w2_t,
                   preferred_element_type=jnp.float32) + b2


# ------------------------------ fused Pallas kernel ---------------------------
def block_kernel(x_ref, vecs_ref, w_ref, o_ref, *, text_len):
    """Whole VLMo Block for a block of batch elements: x block = (b, N, C)."""
    f32, bf16 = jnp.float32, jnp.bfloat16
    batch, n_tok, dim = x_ref.shape
    head_dim = dim // NUM_HEADS
    hid = HID

    # ---- unpack the small-vector slab (f32) ----
    vecs = vecs_ref[...]                                        # (13, 128) f32

    def vrow(name, width):
        i = VEC_IDX[name]
        return vecs[i:i + 1, :width]

    n1w, n1b = vrow("n1w", dim), vrow("n1b", dim)
    bproj, g1 = vrow("bproj", dim), vrow("g1", dim)
    n2tw, n2tb, b2t = vrow("n2tw", dim), vrow("n2tb", dim), vrow("b2t", dim)
    n2iw, n2ib, b2i = vrow("n2iw", dim), vrow("n2ib", dim), vrow("b2i", dim)
    g2 = vrow("g2", dim)
    b1t, b1i = vrow("b1t", hid), vrow("b1i", hid)

    # ---- bf16 weight-slab slices (kept bf16 for native MXU rate) ----
    wqkv_t  = w_ref[0:dim,                           0:3 * dim]   # (C, 3C)
    wproj_t = w_ref[dim:2 * dim,                     0:dim]       # (C, C)
    w1t_t   = w_ref[2 * dim:3 * dim,                 0:hid]       # (C, HID)
    w1i_t   = w_ref[3 * dim:4 * dim,                 0:hid]       # (C, HID)
    w2t_t   = w_ref[4 * dim:4 * dim + hid,           0:dim]       # (HID, C)
    w2i_t   = w_ref[4 * dim + hid:4 * dim + 2 * hid, 0:dim]       # (HID, C)

    for b in range(batch):                    # Python-unrolled (batch is tiny)
        xb = x_ref[b].astype(f32)                                 # (N, C)

        # ---- norm1 -> attention -> layer-scale residual ----
        hb = _layer_norm(xb, n1w, n1b)
        qkv = jnp.dot(hb.astype(bf16), wqkv_t,
                      preferred_element_type=f32)                 # (N, 3C) f32

        ctx_heads = []
        for hd in range(NUM_HEADS):                               # unrolled
            lo = hd * head_dim
            q = qkv[:, lo:lo + head_dim] * SCALE
            k = qkv[:, dim + lo:dim + lo + head_dim]
            v = qkv[:, 2 * dim + lo:2 * dim + lo + head_dim]
            # q . k^T without materialising a transpose (contract last dims).
            s = jax.lax.dot_general(q, k, (((1,), (1,)), ((), ())),
                                    preferred_element_type=f32)   # (N, N)
            s = s - jnp.max(s, axis=-1, keepdims=True)
            p = jnp.exp(s)
            p = p * pl.reciprocal(jnp.sum(p, axis=-1, keepdims=True),
                                  approx=True)
            ctx_heads.append(jnp.dot(p, v, preferred_element_type=f32))
        # One lane-axis concat + a single 32-deep projection matmul
        # (instead of four 8-deep per-head matmuls).
        ctx = jnp.concatenate(ctx_heads, axis=-1)                 # (N, C)
        attn = jnp.dot(ctx.astype(bf16), wproj_t,
                       preferred_element_type=f32) + bproj
        xr = xb + g1 * attn

        # ---- modality-split MLPs; text_len is a Python (trace-time) constant ----
        if text_len <= 0:                                         # pure image
            y = _mlp(xr, n2iw, n2ib, w1i_t, b1i, w2i_t, b2i)
        elif text_len >= n_tok:                                   # pure text
            y = _mlp(xr, n2tw, n2tb, w1t_t, b1t, w2t_t, b2t)
        else:                                                     # mixed split
            y_txt = _mlp(xr, n2tw, n2tb, w1t_t, b1t, w2t_t, b2t)
            y_img = _mlp(xr, n2iw, n2ib, w1i_t, b1i, w2i_t, b2i)
            rows = jax.lax.broadcasted_iota(jnp.int32, (n_tok, 1), 0)
            y = jnp.where(rows < text_len, y_txt, y_img)

        o_ref[b] = (xr + g2 * y).astype(o_ref.dtype)


# ------------------------------ host wrapper ---------------------------------
def block_forward(x, dev_params, modality_type=None, batch_parallel=False):
    """VLMo Block.forward (drop_path = Identity, dropout = 0), one pallas_call.

    batch_parallel=False (default): single grid step over the whole (B,N,C)
      block (best for single-TensorCore v5e/v6e — no per-step loop overhead).
    batch_parallel=True: grid=(B,) with "parallel" semantics so each batch
      element can map to one of v7x's two TensorCores.
    """
    Bx, Nx, Cx = x.shape
    if modality_type == "image":
        text_len = 0
    elif modality_type == "text":
        text_len = Nx
    else:                         # mlp_vl is None: split at MAX_TEXT_LEN
        text_len = MAX_TEXT_LEN

    vecs, wslab = dev_params["vecs"], dev_params["wslab"]
    kern = functools.partial(block_kernel, text_len=text_len)

    if batch_parallel:
        grid = (Bx,)
        x_spec = pl.BlockSpec((1, Nx, Cx), lambda b: (b, 0, 0))
        semantics = ("parallel",)
    else:
        grid = (1,)
        x_spec = pl.BlockSpec((Bx, Nx, Cx), lambda b: (0, 0, 0))
        semantics = ("arbitrary",)

    return pl.pallas_call(
        kern,
        out_shape=jax.ShapeDtypeStruct((Bx, Nx, Cx), x.dtype),
        grid_spec=pltpu.PrefetchScalarGridSpec(
            num_scalar_prefetch=0,
            grid=grid,
            in_specs=[x_spec,
                      pl.BlockSpec(vecs.shape, lambda b: (0, 0)),
                      pl.BlockSpec(wslab.shape, lambda b: (0, 0))],
            out_specs=x_spec,
        ),
        compiler_params=pltpu.CompilerParams(dimension_semantics=semantics),
    )(x, vecs, wslab)


# ------------------------------ parameters -----------------------------------
def make_params(key):
    ks = jax.random.split(key, 16)
    s = 0.05

    def mat(k, shape):   # weight matrices stored bf16 (MXU-native, DMA savings)
        return (s * jax.random.normal(k, shape, jnp.float32)).astype(PARAM_DTYPE)

    def vec(k, shape):   # LN params / biases / gammas stay f32 (tiny)
        return s * jax.random.normal(k, shape, jnp.float32)

    return {
        "n1w": 1.0 + vec(ks[0], (1, C)), "n1b": vec(ks[1], (1, C)),
        "wqkv": mat(ks[2], (3 * C, C)),
        "wproj": mat(ks[3], (C, C)), "bproj": vec(ks[4], (1, C)),
        "n2tw": 1.0 + vec(ks[5], (1, C)), "n2tb": vec(ks[6], (1, C)),
        "w1t": mat(ks[7], (HID, C)), "b1t": vec(ks[8], (1, HID)),
        "w2t": mat(ks[9], (C, HID)), "b2t": vec(ks[10], (1, C)),
        "n2iw": 1.0 + vec(ks[11], (1, C)), "n2ib": vec(ks[12], (1, C)),
        "w1i": mat(ks[13], (HID, C)), "b1i": vec(ks[14], (1, HID)),
        "w2i": mat(ks[15], (C, HID)),
        "b2i": vec(jax.random.fold_in(key, 99), (1, C)),
        "g1": jnp.full((1, C), GAMMA_INIT, jnp.float32),
        "g2": jnp.full((1, C), GAMMA_INIT, jnp.float32),
    }


def prepare_device_params(p):
    """One-time packing: 13 tiny vectors -> one (13,128) f32 slab, six
    pre-transposed bf16 weight matrices -> one (384,128) bf16 slab."""
    vec_w = max(C, HID)

    def vrow(v):
        v = jnp.asarray(v, jnp.float32)
        return jnp.pad(v, ((0, 0), (0, vec_w - v.shape[1])))

    vecs = jnp.concatenate([vrow(p[k]) for k in VEC_KEYS], axis=0)

    slab_w = max(3 * C, HID)

    def wrow(m):
        m = jnp.asarray(m, PARAM_DTYPE).T        # pre-transpose once at setup
        return jnp.pad(m, ((0, 0), (0, slab_w - m.shape[1])))

    wslab = jnp.concatenate([wrow(p[k]) for k in W_KEYS], axis=0)
    return {"vecs": vecs, "wslab": wslab}


# ---------------------------- pure-JAX reference -----------------------------
def _ln_ref(x, w, b):
    mu = x.mean(-1, keepdims=True)
    var = ((x - mu) ** 2).mean(-1, keepdims=True)
    return (x - mu) / jnp.sqrt(var + LN_EPS) * w[0] + b[0]


def _mlp_ref(x, nw, nb, w1, b1, w2, b2):
    # Mirrors kernel numerics: bf16 operands into the matmuls, f32 accumulate.
    h = _ln_ref(x, nw, nb)
    y = jnp.dot(h.astype(jnp.bfloat16), w1.T,
                preferred_element_type=jnp.float32) + b1[0]
    y = 0.5 * y * (1.0 + jax.scipy.special.erf(y / math.sqrt(2.0)))
    return jnp.dot(y.astype(jnp.bfloat16), w2.T,
                   preferred_element_type=jnp.float32) + b2[0]


def block_ref(x, p, text_len):
    Bx, Nx, Cx = x.shape
    h = _ln_ref(x, p["n1w"], p["n1b"])
    qkv = jnp.dot(h.astype(jnp.bfloat16), p["wqkv"].T,
                  preferred_element_type=jnp.float32)             # (B,N,3C)
    qkv = qkv.reshape(Bx, Nx, 3, NUM_HEADS, HEAD_DIM).transpose(2, 0, 3, 1, 4)
    q, k, v = qkv[0] * SCALE, qkv[1], qkv[2]
    a = jnp.einsum("bhnd,bhmd->bhnm", q, k)
    a = jax.nn.softmax(a, axis=-1)
    ctx = jnp.einsum("bhnm,bhmd->bhnd", a, v).transpose(0, 2, 1, 3)
    ctx = ctx.reshape(Bx, Nx, Cx)
    attn = jnp.dot(ctx.astype(jnp.bfloat16), p["wproj"].T,
                   preferred_element_type=jnp.float32) + p["bproj"][0]
    x = x + p["g1"][0] * attn

    def mlp_t(z):
        return _mlp_ref(z, p["n2tw"], p["n2tb"], p["w1t"], p["b1t"],
                        p["w2t"], p["b2t"])

    def mlp_i(z):
        return _mlp_ref(z, p["n2iw"], p["n2ib"], p["w1i"], p["b1i"],
                        p["w2i"], p["b2i"])

    if text_len <= 0:
        y = mlp_i(x)
    elif text_len >= Nx:
        y = mlp_t(x)
    else:
        y = jnp.concatenate([mlp_t(x[:, :text_len]), mlp_i(x[:, text_len:])],
                            axis=1)
    return x + p["g2"][0] * y


# ------------------------------------ main -----------------------------------
if __name__ == "__main__":
    key = jax.random.PRNGKey(0)
    kx, kp = jax.random.split(key)
    x = jax.random.normal(kx, (B, N, C), jnp.float32)
    params = make_params(kp)
    dev_params = prepare_device_params(params)   # one-time, outside forward

    cases = [
        (None, False),     # mixed modality, folded batch (v5e/v6e default)
        (None, True),      # mixed modality, batch-parallel grid (v7x)
        ("text", False),   # pure text: image MLP skipped at trace time
        ("image", False),  # pure image: text MLP skipped at trace time
    ]
    for modality, par in cases:
        out = jax.block_until_ready(
            block_forward(x, dev_params, modality_type=modality,
                          batch_parallel=par))
        tl = 0 if modality == "image" else (N if modality == "text"
                                            else MAX_TEXT_LEN)
        ref = block_ref(x, params, tl)
        assert out.shape == (B, N, C)
        err = float(jnp.max(jnp.abs(out - ref)))
        assert jnp.allclose(out, ref, atol=1e-3, rtol=1e-3), (modality, par, err)

    print("KERNEL_OK")
</pallas_src>

<mosaic_0001>
module attributes {stable_mosaic.version = 11 : i64} {
  func.func @block_kernel(%arg0: i32, %arg1: memref<2x64x32xf32, #tpu.memory_space<vmem>>, %arg2: memref<13x128xf32, #tpu.memory_space<vmem>>, %arg3: memref<384x128xbf16, #tpu.memory_space<vmem>>, %arg4: memref<2x64x32xf32, #tpu.memory_space<vmem>>) attributes {dimension_semantics = [#tpu.dimension_semantics<arbitrary>], iteration_bounds = array<i64: 1>, scalar_prefetch = 0 : i64, scratch_operands = 0 : i64, tpu.core_type = #tpu.core_type<tc>, window_params = [{pipeline_mode = #tpu.pipeline_mode<synchronous>, transform_indices = @transform_0, window_bounds = array<i64: 2, 64, 32>}, {pipeline_mode = #tpu.pipeline_mode<synchronous>, transform_indices = @transform_1, window_bounds = array<i64: 13, 128>}, {pipeline_mode = #tpu.pipeline_mode<synchronous>, transform_indices = @transform_2, window_bounds = array<i64: 384, 128>}, {pipeline_mode = #tpu.pipeline_mode<synchronous>, transform_indices = @transform_3, window_bounds = array<i64: 2, 64, 32>}]} {
    %c0 = arith.constant 0 : index
    %c0_0 = arith.constant 0 : index
    %0 = vector.load %arg2[%c0, %c0_0] : memref<13x128xf32, #tpu.memory_space<vmem>>, vector<13x128xf32>
    %1 = vector.extract_strided_slice %0 {offsets = [0, 0], sizes = [1, 32], strides = [1, 1]} : vector<13x128xf32> to vector<1x32xf32>
    %2 = vector.extract_strided_slice %0 {offsets = [1, 0], sizes = [1, 32], strides = [1, 1]} : vector<13x128xf32> to vector<1x32xf32>
    %3 = vector.extract_strided_slice %0 {offsets = [2, 0], sizes = [1, 32], strides = [1, 1]} : vector<13x128xf32> to vector<1x32xf32>
    %4 = vector.extract_strided_slice %0 {offsets = [3, 0], sizes = [1, 32], strides = [1, 1]} : vector<13x128xf32> to vector<1x32xf32>
    %5 = vector.extract_strided_slice %0 {offsets = [4, 0], sizes = [1, 32], strides = [1, 1]} : vector<13x128xf32> to vector<1x32xf32>
    %6 = vector.extract_strided_slice %0 {offsets = [5, 0], sizes = [1, 32], strides = [1, 1]} : vector<13x128xf32> to vector<1x32xf32>
    %7 = vector.extract_strided_slice %0 {offsets = [6, 0], sizes = [1, 32], strides = [1, 1]} : vector<13x128xf32> to vector<1x32xf32>
    %8 = vector.extract_strided_slice %0 {offsets = [7, 0], sizes = [1, 32], strides = [1, 1]} : vector<13x128xf32> to vector<1x32xf32>
    %9 = vector.extract_strided_slice %0 {offsets = [8, 0], sizes = [1, 32], strides = [1, 1]} : vector<13x128xf32> to vector<1x32xf32>
    %10 = vector.extract_strided_slice %0 {offsets = [9, 0], sizes = [1, 32], strides = [1, 1]} : vector<13x128xf32> to vector<1x32xf32>
    %11 = vector.extract_strided_slice %0 {offsets = [10, 0], sizes = [1, 32], strides = [1, 1]} : vector<13x128xf32> to vector<1x32xf32>
    %12 = vector.extract_strided_slice %0 {offsets = [11, 0], sizes = [1, 128], strides = [1, 1]} : vector<13x128xf32> to vector<1x128xf32>
    %13 = vector.extract_strided_slice %0 {offsets = [12, 0], sizes = [1, 128], strides = [1, 1]} : vector<13x128xf32> to vector<1x128xf32>
    %c0_1 = arith.constant 0 : index
    %c0_2 = arith.constant 0 : index
    %14 = vector.load %arg3[%c0_1, %c0_2] : memref<384x128xbf16, #tpu.memory_space<vmem>>, vector<32x96xbf16>
    %c32 = arith.constant 32 : index
    %c0_3 = arith.constant 0 : index
    %15 = vector.load %arg3[%c32, %c0_3] : memref<384x128xbf16, #tpu.memory_space<vmem>>, vector<32x32xbf16>
    %c64 = arith.constant 64 : index
    %c0_4 = arith.constant 0 : index
    %16 = vector.load %arg3[%c64, %c0_4] : memref<384x128xbf16, #tpu.memory_space<vmem>>, vector<32x128xbf16>
    %c96 = arith.constant 96 : index
    %c0_5 = arith.constant 0 : index
    %17 = vector.load %arg3[%c96, %c0_5] : memref<384x128xbf16, #tpu.memory_space<vmem>>, vector<32x128xbf16>
    %c128 = arith.constant 128 : index
    %c0_6 = arith.constant 0 : index
    %18 = vector.load %arg3[%c128, %c0_6] : memref<384x128xbf16, #tpu.memory_space<vmem>>, vector<128x32xbf16>
    %c256 = arith.constant 256 : index
    %c0_7 = arith.constant 0 : index
    %19 = vector.load %arg3[%c256, %c0_7] : memref<384x128xbf16, #tpu.memory_space<vmem>>, vector<128x32xbf16>
    %c0_8 = arith.constant 0 : index
    %c0_9 = arith.constant 0 : index
    %c0_10 = arith.constant 0 : index
    %20 = vector.load %arg1[%c0_8, %c0_9, %c0_10] : memref<2x64x32xf32, #tpu.memory_space<vmem>>, vector<1x64x32xf32>
    %21 = vector.shape_cast %20 : vector<1x64x32xf32> to vector<64x32xf32>
    %cst = arith.constant dense<0.000000e+00> : vector<64xf32>
    %22 = vector.multi_reduction <add>, %21, %cst [1] : vector<64x32xf32> to vector<64xf32>
    %23 = vector.shape_cast %22 : vector<64xf32> to vector<64x1xf32>
    %cst_11 = arith.constant 3.200000e+01 : f32
    %24 = vector.broadcast %cst_11 : f32 to vector<64x1xf32>
    %25 = arith.divf %23, %24 : vector<64x1xf32>
    %26 = vector.broadcast %25 : vector<64x1xf32> to vector<64x32xf32>
    %27 = arith.subf %21, %26 : vector<64x32xf32>
    %28 = arith.mulf %27, %27 : vector<64x32xf32>
    %cst_12 = arith.constant dense<0.000000e+00> : vector<64xf32>
    %29 = vector.multi_reduction <add>, %28, %cst_12 [1] : vector<64x32xf32> to vector<64xf32>
    %30 = vector.shape_cast %29 : vector<64xf32> to vector<64x1xf32>
    %cst_13 = arith.constant 3.200000e+01 : f32
    %31 = vector.broadcast %cst_13 : f32 to vector<64x1xf32>
    %32 = arith.divf %30, %31 : vector<64x1xf32>
    %33 = vector.broadcast %25 : vector<64x1xf32> to vector<64x32xf32>
    %34 = arith.subf %21, %33 : vector<64x32xf32>
    %cst_14 = arith.constant 9.99999974E-6 : f32
    %35 = vector.broadcast %cst_14 : f32 to vector<64x1xf32>
    %36 = arith.addf %32, %35 : vector<64x1xf32>
    %37 = math.rsqrt %36 : vector<64x1xf32>
    %38 = vector.broadcast %37 : vector<64x1xf32> to vector<64x32xf32>
    %39 = arith.mulf %34, %38 : vector<64x32xf32>
    %40 = vector.broadcast %1 : vector<1x32xf32> to vector<64x32xf32>
    %41 = arith.mulf %39, %40 : vector<64x32xf32>
    %42 = vector.broadcast %2 : vector<1x32xf32> to vector<64x32xf32>
    %43 = arith.addf %41, %42 : vector<64x32xf32>
    %44 = arith.truncf %43 : vector<64x32xf32> to vector<64x32xbf16>
    %cst_15 = arith.constant dense<0.000000e+00> : vector<64x96xf32>
    %45 = tpu.matmul %44, %14, %cst_15 {dimension_numbers = #tpu.dot_dimension_numbers<[1], [0], [0], [1], [0, 0, 1, 1], [], []>} : vector<64x32xbf16>, vector<32x96xbf16>, vector<64x96xf32> -> vector<64x96xf32>
    %46 = vector.extract_strided_slice %45 {offsets = [0, 0], sizes = [64, 8], strides = [1, 1]} : vector<64x96xf32> to vector<64x8xf32>
    %cst_16 = arith.constant 0.353553385 : f32
    %47 = vector.broadcast %cst_16 : f32 to vector<64x8xf32>
    %48 = arith.mulf %46, %47 : vector<64x8xf32>
    %49 = vector.extract_strided_slice %45 {offsets = [0, 32], sizes = [64, 8], strides = [1, 1]} : vector<64x96xf32> to vector<64x8xf32>
    %50 = vector.extract_strided_slice %45 {offsets = [0, 64], sizes = [64, 8], strides = [1, 1]} : vector<64x96xf32> to vector<64x8xf32>
    %cst_17 = arith.constant dense<0.000000e+00> : vector<64x64xf32>
    %51 = tpu.matmul %48, %49, %cst_17 {dimension_numbers = #tpu.dot_dimension_numbers<[1], [1], [0], [0], [0, 0, 1, 0], [], []>} : vector<64x8xf32>, vector<64x8xf32>, vector<64x64xf32> -> vector<64x64xf32>
    %cst_18 = arith.constant dense<0xFF800000> : vector<64xf32>
    %52 = vector.multi_reduction <maximumf>, %51, %cst_18 [1] : vector<64x64xf32> to vector<64xf32>
    %53 = vector.shape_cast %52 : vector<64xf32> to vector<64x1xf32>
    %54 = vector.broadcast %53 : vector<64x1xf32> to vector<64x64xf32>
    %55 = arith.subf %51, %54 : vector<64x64xf32>
    %56 = math.exp %55 : vector<64x64xf32>
    %cst_19 = arith.constant dense<0.000000e+00> : vector<64xf32>
    %57 = vector.multi_reduction <add>, %56, %cst_19 [1] : vector<64x64xf32> to vector<64xf32>
    %58 = vector.shape_cast %57 : vector<64xf32> to vector<64x1xf32>
    %59 = tpu.reciprocal %58 {approx = true} : vector<64x1xf32> -> vector<64x1xf32>
    %60 = vector.broadcast %59 : vector<64x1xf32> to vector<64x64xf32>
    %61 = arith.mulf %56, %60 : vector<64x64xf32>
    %cst_20 = arith.constant dense<0.000000e+00> : vector<64x8xf32>
    %62 = tpu.matmul %61, %50, %cst_20 {dimension_numbers = #tpu.dot_dimension_numbers<[1], [0], [0], [1], [0, 0, 1, 1], [], []>} : vector<64x64xf32>, vector<64x8xf32>, vector<64x8xf32> -> vector<64x8xf32>
    %63 = vector.extract_strided_slice %45 {offsets = [0, 8], sizes = [64, 8], strides = [1, 1]} : vector<64x96xf32> to vector<64x8xf32>
    %cst_21 = arith.constant 0.353553385 : f32
    %64 = vector.broadcast %cst_21 : f32 to vector<64x8xf32>
    %65 = arith.mulf %63, %64 : vector<64x8xf32>
    %66 = vector.extract_strided_slice %45 {offsets = [0, 40], sizes = [64, 8], strides = [1, 1]} : vector<64x96xf32> to vector<64x8xf32>
    %67 = vector.extract_strided_slice %45 {offsets = [0, 72], sizes = [64, 8], strides = [1, 1]} : vector<64x96xf32> to vector<64x8xf32>
    %cst_22 = arith.constant dense<0.000000e+00> : vector<64x64xf32>
    %68 = tpu.matmul %65, %66, %cst_22 {dimension_numbers = #tpu.dot_dimension_numbers<[1], [1], [0], [0], [0, 0, 1, 0], [], []>} : vector<64x8xf32>, vector<64x8xf32>, vector<64x64xf32> -> vector<64x64xf32>
    %cst_23 = arith.constant dense<0xFF800000> : vector<64xf32>
    %69 = vector.multi_reduction <maximumf>, %68, %cst_23 [1] : vector<64x64xf32> to vector<64xf32>
    %70 = vector.shape_cast %69 : vector<64xf32> to vector<64x1xf32>
    %71 = vector.broadcast %70 : vector<64x1xf32> to vector<64x64xf32>
    %72 = arith.subf %68, %71 : vector<64x64xf32>
    %73 = math.exp %72 : vector<64x64xf32>
    %cst_24 = arith.constant dense<0.000000e+00> : vector<64xf32>
    %74 = vector.multi_reduction <add>, %73, %cst_24 [1] : vector<64x64xf32> to vector<64xf32>
    %75 = vector.shape_cast %74 : vector<64xf32> to vector<64x1xf32>
    %76 = tpu.reciprocal %75 {approx = true} : vector<64x1xf32> -> vector<64x1xf32>
    %77 = vector.broadcast %76 : vector<64x1xf32> to vector<64x64xf32>
    %78 = arith.mulf %73, %77 : vector<64x64xf32>
    %cst_25 = arith.constant dense<0.000000e+00> : vector<64x8xf32>
    %79 = tpu.matmul %78, %67, %cst_25 {dimension_numbers = #tpu.dot_dimension_numbers<[1], [0], [0], [1], [0, 0, 1, 1], [], []>} : vector<64x64xf32>, vector<64x8xf32>, vector<64x8xf32> -> vector<64x8xf32>
    %80 = vector.extract_strided_slice %45 {offsets = [0, 16], sizes = [64, 8], strides = [1, 1]} : vector<64x96xf32> to vector<64x8xf32>
    %cst_26 = arith.constant 0.353553385 : f32
    %81 = vector.broadcast %cst_26 : f32 to vector<64x8xf32>
    %82 = arith.mulf %80, %81 : vector<64x8xf32>
    %83 = vector.extract_strided_slice %45 {offsets = [0, 48], sizes = [64, 8], strides = [1, 1]} : vector<64x96xf32> to vector<64x8xf32>
    %84 = vector.extract_strided_slice %45 {offsets = [0, 80], sizes = [64, 8], strides = [1, 1]} : vector<64x96xf32> to vector<64x8xf32>
    %cst_27 = arith.constant dense<0.000000e+00> : vector<64x64xf32>
    %85 = tpu.matmul %82, %83, %cst_27 {dimension_numbers = #tpu.dot_dimension_numbers<[1], [1], [0], [0], [0, 0, 1, 0], [], []>} : vector<64x8xf32>, vector<64x8xf32>, vector<64x64xf32> -> vector<64x64xf32>
    %cst_28 = arith.constant dense<0xFF800000> : vector<64xf32>
    %86 = vector.multi_reduction <maximumf>, %85, %cst_28 [1] : vector<64x64xf32> to vector<64xf32>
    %87 = vector.shape_cast %86 : vector<64xf32> to vector<64x1xf32>
    %88 = vector.broadcast %87 : vector<64x1xf32> to vector<64x64xf32>
    %89 = arith.subf %85, %88 : vector<64x64xf32>
    %90 = math.exp %89 : vector<64x64xf32>
    %cst_29 = arith.constant dense<0.000000e+00> : vector<64xf32>
    %91 = vector.multi_reduction <add>, %90, %cst_29 [1] : vector<64x64xf32> to vector<64xf32>
    %92 = vector.shape_cast %91 : vector<64xf32> to vector<64x1xf32>
    %93 = tpu.reciprocal %92 {approx = true} : vector<64x1xf32> -> vector<64x1xf32>
    %94 = vector.broadcast %93 : vector<64x1xf32> to vector<64x64xf32>
    %95 = arith.mulf %90, %94 : vector<64x64xf32>
    %cst_30 = arith.constant dense<0.000000e+00> : vector<64x8xf32>
    %96 = tpu.matmul %95, %84, %cst_30 {dimension_numbers = #tpu.dot_dimension_numbers<[1], [0], [0], [1], [0, 0, 1, 1], [], []>} : vector<64x64xf32>, vector<64x8xf32>, vector<64x8xf32> -> vector<64x8xf32>
    %97 = vector.extract_strided_slice %45 {offsets = [0, 24], sizes = [64, 8], strides = [1, 1]} : vector<64x96xf32> to vector<64x8xf32>
    %cst_31 = arith.constant 0.353553385 : f32
    %98 = vector.broadcast %cst_31 : f32 to vector<64x8xf32>
    %99 = arith.mulf %97, %98 : vector<64x8xf32>
    %100 = vector.extract_strided_slice %45 {offsets = [0, 56], sizes = [64, 8], strides = [1, 1]} : vector<64x96xf32> to vector<64x8xf32>
    %101 = vector.extract_strided_slice %45 {offsets = [0, 88], sizes = [64, 8], strides = [1, 1]} : vector<64x96xf32> to vector<64x8xf32>
    %cst_32 = arith.constant dense<0.000000e+00> : vector<64x64xf32>
    %102 = tpu.matmul %99, %100, %cst_32 {dimension_numbers = #tpu.dot_dimension_numbers<[1], [1], [0], [0], [0, 0, 1, 0], [], []>} : vector<64x8xf32>, vector<64x8xf32>, vector<64x64xf32> -> vector<64x64xf32>
    %cst_33 = arith.constant dense<0xFF800000> : vector<64xf32>
    %103 = vector.multi_reduction <maximumf>, %102, %cst_33 [1] : vector<64x64xf32> to vector<64xf32>
    %104 = vector.shape_cast %103 : vector<64xf32> to vector<64x1xf32>
    %105 = vector.broadcast %104 : vector<64x1xf32> to vector<64x64xf32>
    %106 = arith.subf %102, %105 : vector<64x64xf32>
    %107 = math.exp %106 : vector<64x64xf32>
    %cst_34 = arith.constant dense<0.000000e+00> : vector<64xf32>
    %108 = vector.multi_reduction <add>, %107, %cst_34 [1] : vector<64x64xf32> to vector<64xf32>
    %109 = vector.shape_cast %108 : vector<64xf32> to vector<64x1xf32>
    %110 = tpu.reciprocal %109 {approx = true} : vector<64x1xf32> -> vector<64x1xf32>
    %111 = vector.broadcast %110 : vector<64x1xf32> to vector<64x64xf32>
    %112 = arith.mulf %107, %111 : vector<64x64xf32>
    %cst_35 = arith.constant dense<0.000000e+00> : vector<64x8xf32>
    %113 = tpu.matmul %112, %101, %cst_35 {dimension_numbers = #tpu.dot_dimension_numbers<[1], [0], [0], [1], [0, 0, 1, 1], [], []>} : vector<64x64xf32>, vector<64x8xf32>, vector<64x8xf32> -> vector<64x8xf32>
    %114 = tpu.concatenate %62, %79, %96, %113 in 1 : vector<64x8xf32>, vector<64x8xf32>, vector<64x8xf32>, vector<64x8xf32> -> vector<64x32xf32>
    %115 = arith.truncf %114 : vector<64x32xf32> to vector<64x32xbf16>
    %cst_36 = arith.constant dense<0.000000e+00> : vector<64x32xf32>
    %116 = tpu.matmul %115, %15, %cst_36 {dimension_numbers = #tpu.dot_dimension_numbers<[1], [0], [0], [1], [0, 0, 1, 1], [], []>} : vector<64x32xbf16>, vector<32x32xbf16>, vector<64x32xf32> -> vector<64x32xf32>
    %117 = vector.broadcast %3 : vector<1x32xf32> to vector<64x32xf32>
    %118 = arith.addf %116, %117 : vector<64x32xf32>
    %119 = vector.broadcast %4 : vector<1x32xf32> to vector<64x32xf32>
    %120 = arith.mulf %119, %118 : vector<64x32xf32>
    %121 = arith.addf %21, %120 : vector<64x32xf32>
    %cst_37 = arith.constant dense<0.000000e+00> : vector<64xf32>
    %122 = vector.multi_reduction <add>, %121, %cst_37 [1] : vector<64x32xf32> to vector<64xf32>
    %123 = vector.shape_cast %122 : vector<64xf32> to vector<64x1xf32>
    %cst_38 = arith.constant 3.200000e+01 : f32
    %124 = vector.broadcast %cst_38 : f32 to vector<64x1xf32>
    %125 = arith.divf %123, %124 : vector<64x1xf32>
    %126 = vector.broadcast %125 : vector<64x1xf32> to vector<64x32xf32>
    %127 = arith.subf %121, %126 : vector<64x32xf32>
    %128 = arith.mulf %127, %127 : vector<64x32xf32>
    %cst_39 = arith.constant dense<0.000000e+00> : vector<64xf32>
    %129 = vector.multi_reduction <add>, %128, %cst_39 [1] : vector<64x32xf32> to vector<64xf32>
    %130 = vector.shape_cast %129 : vector<64xf32> to vector<64x1xf32>
    %cst_40 = arith.constant 3.200000e+01 : f32
    %131 = vector.broadcast %cst_40 : f32 to vector<64x1xf32>
    %132 = arith.divf %130, %131 : vector<64x1xf32>
    %133 = vector.broadcast %125 : vector<64x1xf32> to vector<64x32xf32>
    %134 = arith.subf %121, %133 : vector<64x32xf32>
    %cst_41 = arith.constant 9.99999974E-6 : f32
    %135 = vector.broadcast %cst_41 : f32 to vector<64x1xf32>
    %136 = arith.addf %132, %135 : vector<64x1xf32>
    %137 = math.rsqrt %136 : vector<64x1xf32>
    %138 = vector.broadcast %137 : vector<64x1xf32> to vector<64x32xf32>
    %139 = arith.mulf %134, %138 : vector<64x32xf32>
    %140 = vector.broadcast %5 : vector<1x32xf32> to vector<64x32xf32>
    %141 = arith.mulf %139, %140 : vector<64x32xf32>
    %142 = vector.broadcast %6 : vector<1x32xf32> to vector<64x32xf32>
    %143 = arith.addf %141, %142 : vector<64x32xf32>
    %144 = arith.truncf %143 : vector<64x32xf32> to vector<64x32xbf16>
    %cst_42 = arith.constant dense<0.000000e+00> : vector<64x128xf32>
    %145 = tpu.matmul %144, %16, %cst_42 {dimension_numbers = #tpu.dot_dimension_numbers<[1], [0], [0], [1], [0, 0, 1, 1], [], []>} : vector<64x32xbf16>, vector<32x128xbf16>, vector<64x128xf32> -> vector<64x128xf32>
    %146 = vector.broadcast %12 : vector<1x128xf32> to vector<64x128xf32>
    %147 = arith.addf %145, %146 : vector<64x128xf32>
    %cst_43 = arith.constant 5.000000e-01 : f32
    %148 = vector.broadcast %cst_43 : f32 to vector<64x128xf32>
    %149 = arith.mulf %148, %147 : vector<64x128xf32>
    %cst_44 = arith.constant 0.707106769 : f32
    %150 = vector.broadcast %cst_44 : f32 to vector<64x128xf32>
    %151 = arith.mulf %147, %150 : vector<64x128xf32>
    %152 = math.erf %151 : vector<64x128xf32>
    %cst_45 = arith.constant 1.000000e+00 : f32
    %153 = vector.broadcast %cst_45 : f32 to vector<64x128xf32>
    %154 = arith.addf %153, %152 : vector<64x128xf32>
    %155 = arith.mulf %149, %154 : vector<64x128xf32>
    %156 = arith.truncf %155 : vector<64x128xf32> to vector<64x128xbf16>
    %cst_46 = arith.constant dense<0.000000e+00> : vector<64x32xf32>
    %157 = tpu.matmul %156, %18, %cst_46 {dimension_numbers = #tpu.dot_dimension_numbers<[1], [0], [0], [1], [0, 0, 1, 1], [], []>} : vector<64x128xbf16>, vector<128x32xbf16>, vector<64x32xf32> -> vector<64x32xf32>
    %158 = vector.broadcast %7 : vector<1x32xf32> to vector<64x32xf32>
    %159 = arith.addf %157, %158 : vector<64x32xf32>
    %cst_47 = arith.constant dense<0.000000e+00> : vector<64xf32>
    %160 = vector.multi_reduction <add>, %121, %cst_47 [1] : vector<64x32xf32> to vector<64xf32>
    %161 = vector.shape_cast %160 : vector<64xf32> to vector<64x1xf32>
    %cst_48 = arith.constant 3.200000e+01 : f32
    %162 = vector.broadcast %cst_48 : f32 to vector<64x1xf32>
    %163 = arith.divf %161, %162 : vector<64x1xf32>
    %164 = vector.broadcast %163 : vector<64x1xf32> to vector<64x32xf32>
    %165 = arith.subf %121, %164 : vector<64x32xf32>
    %166 = arith.mulf %165, %165 : vector<64x32xf32>
    %cst_49 = arith.constant dense<0.000000e+00> : vector<64xf32>
    %167 = vector.multi_reduction <add>, %166, %cst_49 [1] : vector<64x32xf32> to vector<64xf32>
    %168 = vector.shape_cast %167 : vector<64xf32> to vector<64x1xf32>
    %cst_50 = arith.constant 3.200000e+01 : f32
    %169 = vector.broadcast %cst_50 : f32 to vector<64x1xf32>
    %170 = arith.divf %168, %169 : vector<64x1xf32>
    %171 = vector.broadcast %163 : vector<64x1xf32> to vector<64x32xf32>
    %172 = arith.subf %121, %171 : vector<64x32xf32>
    %cst_51 = arith.constant 9.99999974E-6 : f32
    %173 = vector.broadcast %cst_51 : f32 to vector<64x1xf32>
    %174 = arith.addf %170, %173 : vector<64x1xf32>
    %175 = math.rsqrt %174 : vector<64x1xf32>
    %176 = vector.broadcast %175 : vector<64x1xf32> to vector<64x32xf32>
    %177 = arith.mulf %172, %176 : vector<64x32xf32>
    %178 = vector.broadcast %8 : vector<1x32xf32> to vector<64x32xf32>
    %179 = arith.mulf %177, %178 : vector<64x32xf32>
    %180 = vector.broadcast %9 : vector<1x32xf32> to vector<64x32xf32>
    %181 = arith.addf %179, %180 : vector<64x32xf32>
    %182 = arith.truncf %181 : vector<64x32xf32> to vector<64x32xbf16>
    %cst_52 = arith.constant dense<0.000000e+00> : vector<64x128xf32>
    %183 = tpu.matmul %182, %17, %cst_52 {dimension_numbers = #tpu.dot_dimension_numbers<[1], [0], [0], [1], [0, 0, 1, 1], [], []>} : vector<64x32xbf16>, vector<32x128xbf16>, vector<64x128xf32> -> vector<64x128xf32>
    %184 = vector.broadcast %13 : vector<1x128xf32> to vector<64x128xf32>
    %185 = arith.addf %183, %184 : vector<64x128xf32>
    %cst_53 = arith.constant 5.000000e-01 : f32
    %186 = vector.broadcast %cst_53 : f32 to vector<64x128xf32>
    %187 = arith.mulf %186, %185 : vector<64x128xf32>
    %cst_54 = arith.constant 0.707106769 : f32
    %188 = vector.broadcast %cst_54 : f32 to vector<64x128xf32>
    %189 = arith.mulf %185, %188 : vector<64x128xf32>
    %190 = math.erf %189 : vector<64x128xf32>
    %cst_55 = arith.constant 1.000000e+00 : f32
    %191 = vector.broadcast %cst_55 : f32 to vector<64x128xf32>
    %192 = arith.addf %191, %190 : vector<64x128xf32>
    %193 = arith.mulf %187, %192 : vector<64x128xf32>
    %194 = arith.truncf %193 : vector<64x128xf32> to vector<64x128xbf16>
    %cst_56 = arith.constant dense<0.000000e+00> : vector<64x32xf32>
    %195 = tpu.matmul %194, %19, %cst_56 {dimension_numbers = #tpu.dot_dimension_numbers<[1], [0], [0], [1], [0, 0, 1, 1], [], []>} : vector<64x128xbf16>, vector<128x32xbf16>, vector<64x32xf32> -> vector<64x32xf32>
    %196 = vector.broadcast %10 : vector<1x32xf32> to vector<64x32xf32>
    %197 = arith.addf %195, %196 : vector<64x32xf32>
    %198 = tpu.iota {dimensions = array<i32: 0>} : vector<64x1xi32>
    %c40_i32 = arith.constant 40 : i32
    %199 = vector.broadcast %c40_i32 : i32 to vector<64x1xi32>
    %200 = arith.cmpi slt, %198, %199 : vector<64x1xi32>
    %201 = vector.shape_cast %200 : vector<64x1xi1> to vector<64x1xi1>
    %202 = vector.broadcast %201 : vector<64x1xi1> to vector<64x32xi1>
    %203 = arith.select %202, %159, %197 : vector<64x32xi1>, vector<64x32xf32>
    %204 = vector.broadcast %11 : vector<1x32xf32> to vector<64x32xf32>
    %205 = arith.mulf %204, %203 : vector<64x32xf32>
    %206 = arith.addf %121, %205 : vector<64x32xf32>
    %c0_57 = arith.constant 0 : index
    %c0_58 = arith.constant 0 : index
    %c0_59 = arith.constant 0 : index
    %207 = vector.load %arg4[%c0_57, %c0_58, %c0_59] : memref<2x64x32xf32, #tpu.memory_space<vmem>>, vector<1x64x32xf32>
    %208 = vector.shape_cast %207 : vector<1x64x32xf32> to vector<64x32xf32>
    %209 = vector.shape_cast %206 : vector<64x32xf32> to vector<1x64x32xf32>
    tpu.vector_store %arg4[%c0_57, %c0_58, %c0_59], %209 {strides = array<i32>} : memref<2x64x32xf32, #tpu.memory_space<vmem>>, vector<1x64x32xf32>,
    %c1 = arith.constant 1 : index
    %c0_60 = arith.constant 0 : index
    %c0_61 = arith.constant 0 : index
    %210 = vector.load %arg1[%c1, %c0_60, %c0_61] : memref<2x64x32xf32, #tpu.memory_space<vmem>>, vector<1x64x32xf32>
    %211 = vector.shape_cast %210 : vector<1x64x32xf32> to vector<64x32xf32>
    %cst_62 = arith.constant dense<0.000000e+00> : vector<64xf32>
    %212 = vector.multi_reduction <add>, %211, %cst_62 [1] : vector<64x32xf32> to vector<64xf32>
    %213 = vector.shape_cast %212 : vector<64xf32> to vector<64x1xf32>
    %cst_63 = arith.constant 3.200000e+01 : f32
    %214 = vector.broadcast %cst_63 : f32 to vector<64x1xf32>
    %215 = arith.divf %213, %214 : vector<64x1xf32>
    %216 = vector.broadcast %215 : vector<64x1xf32> to vector<64x32xf32>
    %217 = arith.subf %211, %216 : vector<64x32xf32>
    %218 = arith.mulf %217, %217 : vector<64x32xf32>
    %cst_64 = arith.constant dense<0.000000e+00> : vector<64xf32>
    %219 = vector.multi_reduction <add>, %218, %cst_64 [1] : vector<64x32xf32> to vector<64xf32>
    %220 = vector.shape_cast %219 : vector<64xf32> to vector<64x1xf32>
    %cst_65 = arith.constant 3.200000e+01 : f32
    %221 = vector.broadcast %cst_65 : f32 to vector<64x1xf32>
    %222 = arith.divf %220, %221 : vector<64x1xf32>
    %223 = vector.broadcast %215 : vector<64x1xf32> to vector<64x32xf32>
    %224 = arith.subf %211, %223 : vector<64x32xf32>
    %cst_66 = arith.constant 9.99999974E-6 : f32
    %225 = vector.broadcast %cst_66 : f32 to vector<64x1xf32>
    %226 = arith.addf %222, %225 : vector<64x1xf32>
    %227 = math.rsqrt %226 : vector<64x1xf32>
    %228 = vector.broadcast %227 : vector<64x1xf32> to vector<64x32xf32>
    %229 = arith.mulf %224, %228 : vector<64x32xf32>
    %230 = vector.broadcast %1 : vector<1x32xf32> to vector<64x32xf32>
    %231 = arith.mulf %229, %230 : vector<64x32xf32>
    %232 = vector.broadcast %2 : vector<1x32xf32> to vector<64x32xf32>
    %233 = arith.addf %231, %232 : vector<64x32xf32>
    %234 = arith.truncf %233 : vector<64x32xf32> to vector<64x32xbf16>
    %cst_67 = arith.constant dense<0.000000e+00> : vector<64x96xf32>
    %235 = tpu.matmul %234, %14, %cst_67 {dimension_numbers = #tpu.dot_dimension_numbers<[1], [0], [0], [1], [0, 0, 1, 1], [], []>} : vector<64x32xbf16>, vector<32x96xbf16>, vector<64x96xf32> -> vector<64x96xf32>
    %236 = vector.extract_strided_slice %235 {offsets = [0, 0], sizes = [64, 8], strides = [1, 1]} : vector<64x96xf32> to vector<64x8xf32>
    %cst_68 = arith.constant 0.353553385 : f32
    %237 = vector.broadcast %cst_68 : f32 to vector<64x8xf32>
    %238 = arith.mulf %236, %237 : vector<64x8xf32>
    %239 = vector.extract_strided_slice %235 {offsets = [0, 32], sizes = [64, 8], strides = [1, 1]} : vector<64x96xf32> to vector<64x8xf32>
    %240 = vector.extract_strided_slice %235 {offsets = [0, 64], sizes = [64, 8], strides = [1, 1]} : vector<64x96xf32> to vector<64x8xf32>
    %cst_69 = arith.constant dense<0.000000e+00> : vector<64x64xf32>
    %241 = tpu.matmul %238, %239, %cst_69 {dimension_numbers = #tpu.dot_dimension_numbers<[1], [1], [0], [0], [0, 0, 1, 0], [], []>} : vector<64x8xf32>, vector<64x8xf32>, vector<64x64xf32> -> vector<64x64xf32>
    %cst_70 = arith.constant dense<0xFF800000> : vector<64xf32>
    %242 = vector.multi_reduction <maximumf>, %241, %cst_70 [1] : vector<64x64xf32> to vector<64xf32>
    %243 = vector.shape_cast %242 : vector<64xf32> to vector<64x1xf32>
    %244 = vector.broadcast %243 : vector<64x1xf32> to vector<64x64xf32>
    %245 = arith.subf %241, %244 : vector<64x64xf32>
    %246 = math.exp %245 : vector<64x64xf32>
    %cst_71 = arith.constant dense<0.000000e+00> : vector<64xf32>
    %247 = vector.multi_reduction <add>, %246, %cst_71 [1] : vector<64x64xf32> to vector<64xf32>
    %248 = vector.shape_cast %247 : vector<64xf32> to vector<64x1xf32>
    %249 = tpu.reciprocal %248 {approx = true} : vector<64x1xf32> -> vector<64x1xf32>
    %250 = vector.broadcast %249 : vector<64x1xf32> to vector<64x64xf32>
    %251 = arith.mulf %246, %250 : vector<64x64xf32>
    %cst_72 = arith.constant dense<0.000000e+00> : vector<64x8xf32>
    %252 = tpu.matmul %251, %240, %cst_72 {dimension_numbers = #tpu.dot_dimension_numbers<[1], [0], [0], [1], [0, 0, 1, 1], [], []>} : vector<64x64xf32>, vector<64x8xf32>, vector<64x8xf32> -> vector<64x8xf32>
    %253 = vector.extract_strided_slice %235 {offsets = [0, 8], sizes = [64, 8], strides = [1, 1]} : vector<64x96xf32> to vector<64x8xf32>
    %cst_73 = arith.constant 0.353553385 : f32
    %254 = vector.broadcast %cst_73 : f32 to vector<64x8xf32>
    %255 = arith.mulf %253, %254 : vector<64x8xf32>
    %256 = vector.extract_strided_slice %235 {offsets = [0, 40], sizes = [64, 8], strides = [1, 1]} : vector<64x96xf32> to vector<64x8xf32>
    %257 = vector.extract_strided_slice %235 {offsets = [0, 72], sizes = [64, 8], strides = [1, 1]} : vector<64x96xf32> to vector<64x8xf32>
    %cst_74 = arith.constant dense<0.000000e+00> : vector<64x64xf32>
    %258 = tpu.matmul %255, %256, %cst_74 {dimension_numbers = #tpu.dot_dimension_numbers<[1], [1], [0], [0], [0, 0, 1, 0], [], []>} : vector<64x8xf32>, vector<64x8xf32>, vector<64x64xf32> -> vector<64x64xf32>
    %cst_75 = arith.constant dense<0xFF800000> : vector<64xf32>
    %259 = vector.multi_reduction <maximumf>, %258, %cst_75 [1] : vector<64x64xf32> to vector<64xf32>
    %260 = vector.shape_cast %259 : vector<64xf32> to vector<64x1xf32>
    %261 = vector.broadcast %260 : vector<64x1xf32> to vector<64x64xf32>
    %262 = arith.subf %258, %261 : vector<64x64xf32>
    %263 = math.exp %262 : vector<64x64xf32>
    %cst_76 = arith.constant dense<0.000000e+00> : vector<64xf32>
    %264 = vector.multi_reduction <add>, %263, %cst_76 [1] : vector<64x64xf32> to vector<64xf32>
    %265 = vector.shape_cast %264 : vector<64xf32> to vector<64x1xf32>
    %266 = tpu.reciprocal %265 {approx = true} : vector<64x1xf32> -> vector<64x1xf32>
    %267 = vector.broadcast %266 : vector<64x1xf32> to vector<64x64xf32>
    %268 = arith.mulf %263, %267 : vector<64x64xf32>
    %cst_77 = arith.constant dense<0.000000e+00> : vector<64x8xf32>
    %269 = tpu.matmul %268, %257, %cst_77 {dimension_numbers = #tpu.dot_dimension_numbers<[1], [0], [0], [1], [0, 0, 1, 1], [], []>} : vector<64x64xf32>, vector<64x8xf32>, vector<64x8xf32> -> vector<64x8xf32>
    %270 = vector.extract_strided_slice %235 {offsets = [0, 16], sizes = [64, 8], strides = [1, 1]} : vector<64x96xf32> to vector<64x8xf32>
    %cst_78 = arith.constant 0.353553385 : f32
    %271 = vector.broadcast %cst_78 : f32 to vector<64x8xf32>
    %272 = arith.mulf %270, %271 : vector<64x8xf32>
    %273 = vector.extract_strided_slice %235 {offsets = [0, 48], sizes = [64, 8], strides = [1, 1]} : vector<64x96xf32> to vector<64x8xf32>
    %274 = vector.extract_strided_slice %235 {offsets = [0, 80], sizes = [64, 8], strides = [1, 1]} : vector<64x96xf32> to vector<64x8xf32>
    %cst_79 = arith.constant dense<0.000000e+00> : vector<64x64xf32>
    %275 = tpu.matmul %272, %273, %cst_79 {dimension_numbers = #tpu.dot_dimension_numbers<[1], [1], [0], [0], [0, 0, 1, 0], [], []>} : vector<64x8xf32>, vector<64x8xf32>, vector<64x64xf32> -> vector<64x64xf32>
    %cst_80 = arith.constant dense<0xFF800000> : vector<64xf32>
    %276 = vector.multi_reduction <maximumf>, %275, %cst_80 [1] : vector<64x64xf32> to vector<64xf32>
    %277 = vector.shape_cast %276 : vector<64xf32> to vector<64x1xf32>
    %278 = vector.broadcast %277 : vector<64x1xf32> to vector<64x64xf32>
    %279 = arith.subf %275, %278 : vector<64x64xf32>
    %280 = math.exp %279 : vector<64x64xf32>
    %cst_81 = arith.constant dense<0.000000e+00> : vector<64xf32>
    %281 = vector.multi_reduction <add>, %280, %cst_81 [1] : vector<64x64xf32> to vector<64xf32>
    %282 = vector.shape_cast %281 : vector<64xf32> to vector<64x1xf32>
    %283 = tpu.reciprocal %282 {approx = true} : vector<64x1xf32> -> vector<64x1xf32>
    %284 = vector.broadcast %283 : vector<64x1xf32> to vector<64x64xf32>
    %285 = arith.mulf %280, %284 : vector<64x64xf32>
    %cst_82 = arith.constant dense<0.000000e+00> : vector<64x8xf32>
    %286 = tpu.matmul %285, %274, %cst_82 {dimension_numbers = #tpu.dot_dimension_numbers<[1], [0], [0], [1], [0, 0, 1, 1], [], []>} : vector<64x64xf32>, vector<64x8xf32>, vector<64x8xf32> -> vector<64x8xf32>
    %287 = vector.extract_strided_slice %235 {offsets = [0, 24], sizes = [64, 8], strides = [1, 1]} : vector<64x96xf32> to vector<64x8xf32>
    %cst_83 = arith.constant 0.353553385 : f32
    %288 = vector.broadcast %cst_83 : f32 to vector<64x8xf32>
    %289 = arith.mulf %287, %288 : vector<64x8xf32>
    %290 = vector.extract_strided_slice %235 {offsets = [0, 56], sizes = [64, 8], strides = [1, 1]} : vector<64x96xf32> to vector<64x8xf32>
    %291 = vector.extract_strided_slice %235 {offsets = [0, 88], sizes = [64, 8], strides = [1, 1]} : vector<64x96xf32> to vector<64x8xf32>
    %cst_84 = arith.constant dense<0.000000e+00> : vector<64x64xf32>
    %292 = tpu.matmul %289, %290, %cst_84 {dimension_numbers = #tpu.dot_dimension_numbers<[1], [1], [0], [0], [0, 0, 1, 0], [], []>} : vector<64x8xf32>, vector<64x8xf32>, vector<64x64xf32> -> vector<64x64xf32>
    %cst_85 = arith.constant dense<0xFF800000> : vector<64xf32>
    %293 = vector.multi_reduction <maximumf>, %292, %cst_85 [1] : vector<64x64xf32> to vector<64xf32>
    %294 = vector.shape_cast %293 : vector<64xf32> to vector<64x1xf32>
    %295 = vector.broadcast %294 : vector<64x1xf32> to vector<64x64xf32>
    %296 = arith.subf %292, %295 : vector<64x64xf32>
    %297 = math.exp %296 : vector<64x64xf32>
    %cst_86 = arith.constant dense<0.000000e+00> : vector<64xf32>
    %298 = vector.multi_reduction <add>, %297, %cst_86 [1] : vector<64x64xf32> to vector<64xf32>
    %299 = vector.shape_cast %298 : vector<64xf32> to vector<64x1xf32>
    %300 = tpu.reciprocal %299 {approx = true} : vector<64x1xf32> -> vector<64x1xf32>
    %301 = vector.broadcast %300 : vector<64x1xf32> to vector<64x64xf32>
    %302 = arith.mulf %297, %301 : vector<64x64xf32>
    %cst_87 = arith.constant dense<0.000000e+00> : vector<64x8xf32>
    %303 = tpu.matmul %302, %291, %cst_87 {dimension_numbers = #tpu.dot_dimension_numbers<[1], [0], [0], [1], [0, 0, 1, 1], [], []>} : vector<64x64xf32>, vector<64x8xf32>, vector<64x8xf32> -> vector<64x8xf32>
    %304 = tpu.concatenate %252, %269, %286, %303 in 1 : vector<64x8xf32>, vector<64x8xf32>, vector<64x8xf32>, vector<64x8xf32> -> vector<64x32xf32>
    %305 = arith.truncf %304 : vector<64x32xf32> to vector<64x32xbf16>
    %cst_88 = arith.constant dense<0.000000e+00> : vector<64x32xf32>
    %306 = tpu.matmul %305, %15, %cst_88 {dimension_numbers = #tpu.dot_dimension_numbers<[1], [0], [0], [1], [0, 0, 1, 1], [], []>} : vector<64x32xbf16>, vector<32x32xbf16>, vector<64x32xf32> -> vector<64x32xf32>
    %307 = vector.broadcast %3 : vector<1x32xf32> to vector<64x32xf32>
    %308 = arith.addf %306, %307 : vector<64x32xf32>
    %309 = vector.broadcast %4 : vector<1x32xf32> to vector<64x32xf32>
    %310 = arith.mulf %309, %308 : vector<64x32xf32>
    %311 = arith.addf %211, %310 : vector<64x32xf32>
    %cst_89 = arith.constant dense<0.000000e+00> : vector<64xf32>
    %312 = vector.multi_reduction <add>, %311, %cst_89 [1] : vector<64x32xf32> to vector<64xf32>
    %313 = vector.shape_cast %312 : vector<64xf32> to vector<64x1xf32>
    %cst_90 = arith.constant 3.200000e+01 : f32
    %314 = vector.broadcast %cst_90 : f32 to vector<64x1xf32>
    %315 = arith.divf %313, %314 : vector<64x1xf32>
    %316 = vector.broadcast %315 : vector<64x1xf32> to vector<64x32xf32>
    %317 = arith.subf %311, %316 : vector<64x32xf32>
    %318 = arith.mulf %317, %317 : vector<64x32xf32>
    %cst_91 = arith.constant dense<0.000000e+00> : vector<64xf32>
    %319 = vector.multi_reduction <add>, %318, %cst_91 [1] : vector<64x32xf32> to vector<64xf32>
    %320 = vector.shape_cast %319 : vector<64xf32> to vector<64x1xf32>
    %cst_92 = arith.constant 3.200000e+01 : f32
    %321 = vector.broadcast %cst_92 : f32 to vector<64x1xf32>
    %322 = arith.divf %320, %321 : vector<64x1xf32>
    %323 = vector.broadcast %315 : vector<64x1xf32> to vector<64x32xf32>
    %324 = arith.subf %311, %323 : vector<64x32xf32>
    %cst_93 = arith.constant 9.99999974E-6 : f32
    %325 = vector.broadcast %cst_93 : f32 to vector<64x1xf32>
    %326 = arith.addf %322, %325 : vector<64x1xf32>
    %327 = math.rsqrt %326 : vector<64x1xf32>
    %328 = vector.broadcast %327 : vector<64x1xf32> to vector<64x32xf32>
    %329 = arith.mulf %324, %328 : vector<64x32xf32>
    %330 = vector.broadcast %5 : vector<1x32xf32> to vector<64x32xf32>
    %331 = arith.mulf %329, %330 : vector<64x32xf32>
    %332 = vector.broadcast %6 : vector<1x32xf32> to vector<64x32xf32>
    %333 = arith.addf %331, %332 : vector<64x32xf32>
    %334 = arith.truncf %333 : vector<64x32xf32> to vector<64x32xbf16>
    %cst_94 = arith.constant dense<0.000000e+00> : vector<64x128xf32>
    %335 = tpu.matmul %334, %16, %cst_94 {dimension_numbers = #tpu.dot_dimension_numbers<[1], [0], [0], [1], [0, 0, 1, 1], [], []>} : vector<64x32xbf16>, vector<32x128xbf16>, vector<64x128xf32> -> vector<64x128xf32>
    %336 = vector.broadcast %12 : vector<1x128xf32> to vector<64x128xf32>
    %337 = arith.addf %335, %336 : vector<64x128xf32>
    %cst_95 = arith.constant 5.000000e-01 : f32
    %338 = vector.broadcast %cst_95 : f32 to vector<64x128xf32>
    %339 = arith.mulf %338, %337 : vector<64x128xf32>
    %cst_96 = arith.constant 0.707106769 : f32
    %340 = vector.broadcast %cst_96 : f32 to vector<64x128xf32>
    %341 = arith.mulf %337, %340 : vector<64x128xf32>
    %342 = math.erf %341 : vector<64x128xf32>
    %cst_97 = arith.constant 1.000000e+00 : f32
    %343 = vector.broadcast %cst_97 : f32 to vector<64x128xf32>
    %344 = arith.addf %343, %342 : vector<64x128xf32>
    %345 = arith.mulf %339, %344 : vector<64x128xf32>
    %346 = arith.truncf %345 : vector<64x128xf32> to vector<64x128xbf16>
    %cst_98 = arith.constant dense<0.000000e+00> : vector<64x32xf32>
    %347 = tpu.matmul %346, %18, %cst_98 {dimension_numbers = #tpu.dot_dimension_numbers<[1], [0], [0], [1], [0, 0, 1, 1], [], []>} : vector<64x128xbf16>, vector<128x32xbf16>, vector<64x32xf32> -> vector<64x32xf32>
    %348 = vector.broadcast %7 : vector<1x32xf32> to vector<64x32xf32>
    %349 = arith.addf %347, %348 : vector<64x32xf32>
    %cst_99 = arith.constant dense<0.000000e+00> : vector<64xf32>
    %350 = vector.multi_reduction <add>, %311, %cst_99 [1] : vector<64x32xf32> to vector<64xf32>
    %351 = vector.shape_cast %350 : vector<64xf32> to vector<64x1xf32>
    %cst_100 = arith.constant 3.200000e+01 : f32
    %352 = vector.broadcast %cst_100 : f32 to vector<64x1xf32>
    %353 = arith.divf %351, %352 : vector<64x1xf32>
    %354 = vector.broadcast %353 : vector<64x1xf32> to vector<64x32xf32>
    %355 = arith.subf %311, %354 : vector<64x32xf32>
    %356 = arith.mulf %355, %355 : vector<64x32xf32>
    %cst_101 = arith.constant dense<0.000000e+00> : vector<64xf32>
    %357 = vector.multi_reduction <add>, %356, %cst_101 [1] : vector<64x32xf32> to vector<64xf32>
    %358 = vector.shape_cast %357 : vector<64xf32> to vector<64x1xf32>
    %cst_102 = arith.constant 3.200000e+01 : f32
    %359 = vector.broadcast %cst_102 : f32 to vector<64x1xf32>
    %360 = arith.divf %358, %359 : vector<64x1xf32>
    %361 = vector.broadcast %353 : vector<64x1xf32> to vector<64x32xf32>
    %362 = arith.subf %311, %361 : vector<64x32xf32>
    %cst_103 = arith.constant 9.99999974E-6 : f32
    %363 = vector.broadcast %cst_103 : f32 to vector<64x1xf32>
    %364 = arith.addf %360, %363 : vector<64x1xf32>
    %365 = math.rsqrt %364 : vector<64x1xf32>
    %366 = vector.broadcast %365 : vector<64x1xf32> to vector<64x32xf32>
    %367 = arith.mulf %362, %366 : vector<64x32xf32>
    %368 = vector.broadcast %8 : vector<1x32xf32> to vector<64x32xf32>
    %369 = arith.mulf %367, %368 : vector<64x32xf32>
    %370 = vector.broadcast %9 : vector<1x32xf32> to vector<64x32xf32>
    %371 = arith.addf %369, %370 : vector<64x32xf32>
    %372 = arith.truncf %371 : vector<64x32xf32> to vector<64x32xbf16>
    %cst_104 = arith.constant dense<0.000000e+00> : vector<64x128xf32>
    %373 = tpu.matmul %372, %17, %cst_104 {dimension_numbers = #tpu.dot_dimension_numbers<[1], [0], [0], [1], [0, 0, 1, 1], [], []>} : vector<64x32xbf16>, vector<32x128xbf16>, vector<64x128xf32> -> vector<64x128xf32>
    %374 = vector.broadcast %13 : vector<1x128xf32> to vector<64x128xf32>
    %375 = arith.addf %373, %374 : vector<64x128xf32>
    %cst_105 = arith.constant 5.000000e-01 : f32
    %376 = vector.broadcast %cst_105 : f32 to vector<64x128xf32>
    %377 = arith.mulf %376, %375 : vector<64x128xf32>
    %cst_106 = arith.constant 0.707106769 : f32
    %378 = vector.broadcast %cst_106 : f32 to vector<64x128xf32>
    %379 = arith.mulf %375, %378 : vector<64x128xf32>
    %380 = math.erf %379 : vector<64x128xf32>
    %cst_107 = arith.constant 1.000000e+00 : f32
    %381 = vector.broadcast %cst_107 : f32 to vector<64x128xf32>
    %382 = arith.addf %381, %380 : vector<64x128xf32>
    %383 = arith.mulf %377, %382 : vector<64x128xf32>
    %384 = arith.truncf %383 : vector<64x128xf32> to vector<64x128xbf16>
    %cst_108 = arith.constant dense<0.000000e+00> : vector<64x32xf32>
    %385 = tpu.matmul %384, %19, %cst_108 {dimension_numbers = #tpu.dot_dimension_numbers<[1], [0], [0], [1], [0, 0, 1, 1], [], []>} : vector<64x128xbf16>, vector<128x32xbf16>, vector<64x32xf32> -> vector<64x32xf32>
    %386 = vector.broadcast %10 : vector<1x32xf32> to vector<64x32xf32>
    %387 = arith.addf %385, %386 : vector<64x32xf32>
    %388 = tpu.iota {dimensions = array<i32: 0>} : vector<64x1xi32>
    %c40_i32_109 = arith.constant 40 : i32
    %389 = vector.broadcast %c40_i32_109 : i32 to vector<64x1xi32>
    %390 = arith.cmpi slt, %388, %389 : vector<64x1xi32>
    %391 = vector.shape_cast %390 : vector<64x1xi1> to vector<64x1xi1>
    %392 = vector.broadcast %391 : vector<64x1xi1> to vector<64x32xi1>
    %393 = arith.select %392, %349, %387 : vector<64x32xi1>, vector<64x32xf32>
    %394 = vector.broadcast %11 : vector<1x32xf32> to vector<64x32xf32>
    %395 = arith.mulf %394, %393 : vector<64x32xf32>
    %396 = arith.addf %311, %395 : vector<64x32xf32>
    %c1_110 = arith.constant 1 : index
    %c0_111 = arith.constant 0 : index
    %c0_112 = arith.constant 0 : index
    %397 = vector.load %arg4[%c1_110, %c0_111, %c0_112] : memref<2x64x32xf32, #tpu.memory_space<vmem>>, vector<1x64x32xf32>
    %398 = vector.shape_cast %397 : vector<1x64x32xf32> to vector<64x32xf32>
    %399 = vector.shape_cast %396 : vector<64x32xf32> to vector<1x64x32xf32>
    tpu.vector_store %arg4[%c1_110, %c0_111, %c0_112], %399 {strides = array<i32>} : memref<2x64x32xf32, #tpu.memory_space<vmem>>, vector<1x64x32xf32>,
    return
  }
  func.func @transform_0(%arg0: i32) -> (i32, i32, i32) {
    %c0_i32 = arith.constant 0 : i32
    %c0_i32_0 = arith.constant 0 : i32
    %c0_i32_1 = arith.constant 0 : i32
    %c0_i32_2 = arith.constant 0 : i32
    return %c0_i32, %c0_i32_0, %c0_i32_1 : i32, i32, i32
  }
  func.func @transform_1(%arg0: i32) -> (i32, i32) {
    %c0_i32 = arith.constant 0 : i32
    %c0_i32_0 = arith.constant 0 : i32
    %c0_i32_1 = arith.constant 0 : i32
    return %c0_i32, %c0_i32_0 : i32, i32
  }
  func.func @transform_2(%arg0: i32) -> (i32, i32) {
    %c0_i32 = arith.constant 0 : i32
    %c0_i32_0 = arith.constant 0 : i32
    %c0_i32_1 = arith.constant 0 : i32
    return %c0_i32, %c0_i32_0 : i32, i32
  }
  func.func @transform_3(%arg0: i32) -> (i32, i32, i32) {
    %c0_i32 = arith.constant 0 : i32
    %c0_i32_0 = arith.constant 0 : i32
    %c0_i32_1 = arith.constant 0 : i32
    %c0_i32_2 = arith.constant 0 : i32
    return %c0_i32, %c0_i32_0, %c0_i32_1 : i32, i32, i32
  }
}

</mosaic_0001>

<bundles_post_ra>
// kernel: tpu_custom_call.1
= control target key start
LH: loop header
LB: loop body
LE: loop exit
PB: predicated region body
PF: predicated region fallthrough
CT: control target
= control target key end

     0   :  { %8 = vsyncpa [#allocation3], 0  ;;  %s7429_s12 = smov [#allocation2]   ;;  %s9879_s0 = inlined_call_operand.vmem [shape: f32[2,64,32], index: 0, kind: input, shape index: {}]   ;;  %s9880_s1 = inlined_call_operand.hbm [shape: f32[13,128], index: 1, kind: input, shape index: {}]   ;;  %s9881_s2 = inlined_call_operand.vmem [shape: bf16[384,128], index: 2, kind: input, shape index: {}]   ;;  %s9882_s3 = inlined_call_operand.vmem [shape: f32[2,64,32], index: 3, kind: output, shape index: {}]  }
   0x1   :  { %s16_s13 = sshll.u32 %s7429_s12, 4  ;;  %s17_s13 = int_to_ptr.vmem [resolvable:$true] %s16_s13 }
   0x2   :  { %s7415_s14 = scalar_lea.vmem %s17_s13, 256  ;;  %p7420_p1 = scmp.lt.s32.totalorder %s17_s13, %s17_s13 }
   0x3   :  { %p7416_p0 = scmp.ne.s32.totalorder %s17_s13, %s7415_s14  ;;  %p7421_p2 = scmp.lt.s32.totalorder %s7415_s14, %s7415_s14 }
   0x5   :  { %p7422_p3 = por %p7421_p2, %p7420_p1 }
   0x7   :  { %p7423_p4 = pnand %p7422_p3, %p7416_p0 }
   0x9   :  { %7426 = shalt.err (!%p7423_p4)
}
   0xa   :  { %s7430_s15 = smov 128   ;;  %s7431_s16 = smov 8  }
   0xb   :  { %22 = dma.hbm_to_vmem [thread:$0]  %s9880_s1, 256, %s17_s13, [#allocation3], %s7430_s15, %s7430_s15, %s7431_s16  }
   0xc   :  { %7427 = dma.done.wait [#allocation3], 256  }
   0xd   :  { %7428 = vsyncadd [#allocation3], 4294967040  ;;  %vm87_vm0 = vcmask 261120   ;;  %v79_v0 = vld [vmem:[%s9879_s0] sm:$0xff]  ;;  %v81_v1 = vld [vmem:[%s9879_s0 + $0x10] sm:$0xff]  ;;  %vm342_vm1 = vcmask 64512  }
   0xe   :  { %v80_v2 = vld [vmem:[%s9879_s0 + $0x8] sm:$0xff]  ;;  %v88_v3 = vsel %vm87_vm0, %v79_v0, 0.0  ;;  %v94_v4 = vsel %vm87_vm0, %v81_v1, 0.0  ;;  %v82_v5 = vld [vmem:[%s9879_s0 + $0x18] sm:$0xff]  ;;  %v83_v6 = vld [vmem:[%s9879_s0 + $0x20] sm:$0xff]  ;;  %s7432_s11 = smov 96  }
   0xf   :  { %v84_v7 = vld [vmem:[%s9879_s0 + $0x28] sm:$0xff]  ;;  %89 = vadd.xlane.f32.xlu0 %v88_v3  ;;  %95 = vadd.xlane.f32.xlu1 %v94_v4  ;;  %v91_v8 = vsel %vm87_vm0, %v80_v2, 0.0  ;;  %v97_v9 = vsel %vm87_vm0, %v82_v5, 0.0  ;;  %v100_v10 = vsel %vm87_vm0, %v83_v6, 0.0  ;;  %v85_v12 = vld [vmem:[%s9879_s0 + $0x30] sm:$0xff]  ;;  %v86_v13 = vld [vmem:[%s9879_s0 + $0x38] sm:$0xff]  ;;  %v193_v3 = vlaneseq }
  0x10   :  { %v103_v11 = vsel %vm87_vm0, %v84_v7, 0.0  ;;  %v106_v14 = vsel %vm87_vm0, %v85_v12, 0.0  ;;  %v109_v15 = vsel %vm87_vm0, %v86_v13, 0.0  ;;  %v6957_v56 = vld [vmem:[%s9881_s2 + $0x8] sm:$0xff]   ;;  %v6958_v57 = vld [vmem:[%s9881_s2] sm:$0xff]   ;;  %s7433_s12 = smov 64  }
  0x11   :  { %6181 = vmatprep.subr.bf16.mxu1 %v6957_v56  ;;  %s7434_s13 = smov 88   ;;  %vm488_vm2 = vcmask 523264   ;;  %s7435_s14 = smov 120   ;;  %vm2064_vm3 = vcmask 130048   ;;  %vm2073_vm4 = vcmask 195584  }
  0x12   :  { %6182 = vmatpush3.bf16.msra.mxu1 %v6957_v56  ;;  %s7436_s15 = smov 56   ;;  %s7437_s17 = smov 80  }
  0x13   :  { %92 = vadd.xlane.f32.xlu0 %v91_v8  ;;  %98 = vadd.xlane.f32.xlu1 %v97_v9  ;;  %s7438_s18 = smov 112   ;;  %s7439_s19 = smov 48  }
  0x14   :  { %6183 = vmatprep.subr.bf16.mxu1 %v6958_v57  ;;  %s7440_s20 = smov 72   ;;  %s7441_s21 = smov 104  }
  0x15   :  { %s7442_s22 = smov 40   ;;  %s7443_s23 = smov 16  }
  0x16   :  { %6184 = vmatpush3.bf16.msra.mxu1 %v6958_v57  ;;  %s7444_s27 = smov 24  }
  0x17   :  { %101 = vadd.xlane.f32.xlu0 %v100_v10  ;;  %104 = vadd.xlane.f32.xlu1 %v103_v11  ;;  %v7547_v10 = vshrl.u32 %v193_v3, 7 }
  0x1b   :  { %107 = vadd.xlane.f32.xlu0 %v106_v14  ;;  %110 = vadd.xlane.f32.xlu1 %v109_v15 }
  0x98   :  { %v90_v16 = vpop.xlane.xlu0 %89  ;;  %v96_v17 = vpop.xlane.xlu1 %95 }
  0x99   :  { %v113_v18 = vmul.f32 0.03125, %v90_v16  ;;  %v115_v19 = vmul.f32 0.03125, %v96_v17  ;;  %v9884_v17 = vsub.s32 0, %v7547_v10 }
  0x9b   :  { %v7501_v20 = vsub.f32 %v79_v0, %v113_v18  ;;  %v7503_v21 = vsub.f32 %v81_v1, %v115_v19  ;;  %v29_v19 = vld [vmem:[#allocation2] sm:$0xff] }
  0x9c   :  { %v93_v22 = vpop.xlane.xlu0 %92  ;;  %v99_v23 = vpop.xlane.xlu1 %98 }
  0x9d   :  { %v114_v24 = vmul.f32 0.03125, %v93_v22  ;;  %v116_v25 = vmul.f32 0.03125, %v99_v23  ;;  %v129_v26 = vmul.f32 %v7501_v20, %v7501_v20  ;;  %v131_v27 = vmul.f32 %v7503_v21, %v7503_v21 }
  0x9f   :  { %v7509_v28 = vsub.f32 %v80_v2, %v114_v24  ;;  %v7511_v29 = vsub.f32 %v82_v5, %v116_v25  ;;  %v137_v30 = vsel %vm87_vm0, %v129_v26, 0.0  ;;  %v143_v33 = vsel %vm87_vm0, %v131_v27, 0.0 }
  0xa0   :  { %138 = vadd.xlane.f32.xlu0 %v137_v30  ;;  %v102_v31 = vpop.xlane.xlu0 %101  ;;  %v105_v32 = vpop.xlane.xlu1 %104  ;;  %v7553_v26 = vrot.slane %v29_v19, %v9884_v17  ;;  %v9883_v27 = vsub.s32 1, %v7547_v10 }
  0xa1   :  { %v117_v34 = vmul.f32 0.03125, %v102_v31  ;;  %v118_v35 = vmul.f32 0.03125, %v105_v32  ;;  %v130_v36 = vmul.f32 %v7509_v28, %v7509_v28  ;;  %v132_v37 = vmul.f32 %v7511_v29, %v7511_v29 }
  0xa3   :  { %v7519_v38 = vsub.f32 %v83_v6, %v117_v34  ;;  %v7521_v39 = vsub.f32 %v84_v7, %v118_v35  ;;  %v140_v40 = vsel %vm87_vm0, %v130_v36, 0.0  ;;  %v146_v43 = vsel %vm87_vm0, %v132_v37, 0.0 }
  0xa4   :  { %144 = vadd.xlane.f32.xlu0 %v143_v33  ;;  %141 = vadd.xlane.f32.xlu1 %v140_v40  ;;  %v108_v41 = vpop.xlane.xlu0 %107  ;;  %v111_v42 = vpop.xlane.xlu1 %110  ;;  %v7560_v34 = vrot.slane %v29_v19, %v9883_v27 }
  0xa5   :  { %v119_v44 = vmul.f32 0.03125, %v108_v41  ;;  %v120_v45 = vmul.f32 0.03125, %v111_v42  ;;  %v133_v46 = vmul.f32 %v7519_v38, %v7519_v38  ;;  %v134_v47 = vmul.f32 %v7521_v39, %v7521_v39 }
  0xa7   :  { %v7529_v48 = vsub.f32 %v85_v12, %v119_v44  ;;  %v7531_v49 = vsub.f32 %v86_v13, %v120_v45  ;;  %v149_v50 = vsel %vm87_vm0, %v133_v46, 0.0  ;;  %v152_v51 = vsel %vm87_vm0, %v134_v47, 0.0 }
  0xa8   :  { %147 = vadd.xlane.f32.xlu1 %v146_v43  ;;  %150 = vadd.xlane.f32.xlu0 %v149_v50 }
  0xa9   :  { %v135_v52 = vmul.f32 %v7529_v48, %v7529_v48  ;;  %v136_v53 = vmul.f32 %v7531_v49, %v7531_v49 }
  0xab   :  { %v155_v54 = vsel %vm87_vm0, %v135_v52, 0.0  ;;  %v158_v55 = vsel %vm87_vm0, %v136_v53, 0.0 }
  0xac   :  { %153 = vadd.xlane.f32.xlu1 %v152_v51  ;;  %156 = vadd.xlane.f32.xlu0 %v155_v54 }
  0xb0   :  { %159 = vadd.xlane.f32.xlu1 %v158_v55 }
 0x129   :  { %v139_v58 = vpop.xlane.xlu0 %138 }
 0x12a   :  { %v161_v59 = vmul.f32 0.03125, %v139_v58 }
 0x12c   :  { %v169_v60 = vadd.f32 1e-05, %v161_v59 }
 0x12d   :  { %v142_v61 = vpop.xlane.xlu1 %141  ;;  %v145_v62 = vpop.xlane.xlu0 %144 }
 0x12e   :  { %6981 = vrsqrt.f32 %v169_v60  ;;  %v162_v63 = vmul.f32 0.03125, %v142_v61  ;;  %v163_v0 = vmul.f32 0.03125, %v145_v62 }
 0x130   :  { %v170_v1 = vadd.f32 1e-05, %v162_v63  ;;  %v171_v2 = vadd.f32 1e-05, %v163_v0 }
 0x131   :  { %v148_v4 = vpop.xlane.xlu1 %147  ;;  %v151_v5 = vpop.xlane.xlu0 %150 }
 0x132   :  { %6983 = vrsqrt.f32 %v170_v1  ;;  %v164_v6 = vmul.f32 0.03125, %v148_v4  ;;  %v165_v7 = vmul.f32 0.03125, %v151_v5 }
 0x133   :  { %6985 = vrsqrt.f32 %v171_v2 }
 0x134   :  { %v172_v8 = vadd.f32 1e-05, %v164_v6  ;;  %v173_v9 = vadd.f32 1e-05, %v165_v7 }
 0x135   :  { %v154_v11 = vpop.xlane.xlu1 %153  ;;  %v157_v12 = vpop.xlane.xlu0 %156 }
 0x136   :  { %6987 = vrsqrt.f32 %v172_v8  ;;  %v166_v13 = vmul.f32 0.03125, %v154_v11  ;;  %v167_v14 = vmul.f32 0.03125, %v157_v12 }
 0x137   :  { %6989 = vrsqrt.f32 %v173_v9 }
 0x138   :  { %v174_v15 = vadd.f32 1e-05, %v166_v13  ;;  %v175_v16 = vadd.f32 1e-05, %v167_v14 }
 0x139   :  { %v160_v18 = vpop.xlane.xlu1 %159 }
 0x13a   :  { %6991 = vrsqrt.f32 %v174_v15  ;;  %v168_v22 = vmul.f32 0.03125, %v160_v18 }
 0x13b   :  { %v6982_v23 = vpop.eup %6981  ;;  %6993 = vrsqrt.f32 %v175_v16 }
 0x13c   :  { %v176_v24 = vadd.f32 1e-05, %v168_v22  ;;  %v185_v25 = vmul.f32 %v6982_v23, %v7501_v20 }
 0x13e   :  { %6995 = vrsqrt.f32 %v176_v24  ;;  %v197_v33 = vmul.f32 %v7553_v26, %v185_v25 }
 0x13f   :  { %v6984_v30 = vpop.eup %6983 }
 0x140   :  { %v6986_v31 = vpop.eup %6985  ;;  %v186_v32 = vmul.f32 %v6984_v30, %v7509_v28  ;;  %v209_v40 = vadd.f32 %v7560_v34, %v197_v33 }
 0x141   :  { %v187_v35 = vmul.f32 %v6986_v31, %v7503_v21 }
 0x142   :  { %v198_v20 = vmul.f32 %v7553_v26, %v186_v32 }
 0x143   :  { %v6988_v36 = vpop.eup %6987  ;;  %v199_v28 = vmul.f32 %v7553_v26, %v187_v35 }
 0x144   :  { %v6990_v37 = vpop.eup %6989  ;;  %v210_v41 = vadd.f32 %v7560_v34, %v198_v20  ;;  %v188_v42 = vmul.f32 %v6988_v36, %v7511_v29 }
 0x145   :  { %v189_v43 = vmul.f32 %v6990_v37, %v7519_v38  ;;  %v211_v21 = vadd.f32 %v7560_v34, %v199_v28 }
 0x146   :  { %v217_v44 = vpack.c.bf16 %v210_v41, %v209_v40  ;;  %v200_v45 = vmul.f32 %v7553_v26, %v188_v42 }
 0x147   :  { %v6992_v46 = vpop.eup %6991  ;;  %v201_v52 = vmul.f32 %v7553_v26, %v189_v43 }
 0x148   :  { %v6994_v47 = vpop.eup %6993  ;;  %6185 = vmatprep.mubr.msk.bf16.mxu1 %vm87_vm0, %v217_v44  ;;  %v212_v50 = vadd.f32 %v7560_v34, %v200_v45  ;;  %v190_v51 = vmul.f32 %v6992_v46, %v7521_v39 }
 0x149   :  { %v191_v29 = vmul.f32 %v6994_v47, %v7529_v48  ;;  %v213_v55 = vadd.f32 %v7560_v34, %v201_v52 }
 0x14a   :  { %v218_v53 = vpack.c.bf16 %v212_v50, %v211_v21  ;;  %v202_v38 = vmul.f32 %v7553_v26, %v190_v51 }
 0x14b   :  { %v6996_v54 = vpop.eup %6995  ;;  %v203_v58 = vmul.f32 %v7553_v26, %v191_v29 }
 0x14c   :  { %6186 = vmatmul.mubr.msk.bf16.vlgmr.msra.gmra.mxu1 %vm87_vm0, %v218_v53  ;;  %v214_v56 = vadd.f32 %v7560_v34, %v202_v38  ;;  %v192_v57 = vmul.f32 %v6996_v54, %v7531_v49 }
 0x14d   :  { %v215_v48 = vadd.f32 %v7560_v34, %v203_v58 }
 0x14e   :  { %v219_v59 = vpack.c.bf16 %v214_v56, %v213_v55  ;;  %v204_v39 = vmul.f32 %v7553_v26, %v192_v57 }
 0x150   :  { %6189 = vmatprep.mubr.msk.bf16.mxu1 %vm87_vm0, %v219_v59  ;;  %v216_v60 = vadd.f32 %v7560_v34, %v204_v39 }
 0x152   :  { %v220_v61 = vpack.c.bf16 %v216_v60, %v215_v48 }
 0x154   :  { %6190 = vmatmul.mubr.msk.bf16.gmra.mxu1 %vm87_vm0, %v220_v61 }
 0x20c   :  { %v7587_v62 = vpop.f32.mrf.mxu1 }
 0x20d   :  { %v7664_v24 = vmul.f32 0.35355338, %v7587_v62 }
 0x20e   :  { %v7589_v63 = vpop.f32.mrf.mxu1 }
 0x20f   :  { %v7592_v49 = vmul.f32 0.35355338, %v7589_v63 }
 0x210   :  { %v7594_v0 = vpop.f32.mrf.mxu1 }
 0x211   :  { %6209 = vmatprep.mubr.msk.f32.mxu1 %vm342_vm1, %v7592_v49  ;;  %v7673_v30 = vmul.f32 0.35355338, %v7594_v0 }
 0x212   :  { %v7598_v1 = vpop.f32.mrf.mxu1 }
 0x213   :  { %v7661_v23 = vmul.f32 0.35355338, %v7598_v1 }
 0x214   :  { %v7600_v2 = vpop.f32.mrf.mxu1 }
 0x215   :  { %338 = vrot.lane.b32.xlu1 %v7600_v2, %s7432_s11  ;;  %v7686_v20 = vmul.f32 0.35355338, %v7600_v2 }
 0x216   :  { %v7604_v3 = vpop.f32.mrf.mxu1 }
 0x217   :  { %v7676_v31 = vmul.f32 0.35355338, %v7604_v3 }
 0x218   :  { %v7606_v4 = vpop.f32.mrf.mxu1 }
 0x219   :  { %340 = vrot.lane.b32.xlu0 %v7606_v4, %s7432_s11  ;;  %v7693_v36 = vmul.f32 0.35355338, %v7606_v4 }
 0x21a   :  { %v7610_v5 = vpop.f32.mrf.mxu1 }
 0x21b   :  { %336 = vrot.lane.b32.xlu1 %v7610_v5, %s7432_s11  ;;  %v7683_v35 = vmul.f32 0.35355338, %v7610_v5 }
 0x21d   :  { %332 = vrot.lane.b32.xlu0 %v7594_v0, %s7432_s11 }
 0x21f   :  { %334 = vrot.lane.b32.xlu1 %v7604_v3, %s7432_s11 }
 0x221   :  { %328 = vrot.lane.b32.xlu0 %v7598_v1, %s7432_s11 }
 0x223   :  { %330 = vrot.lane.b32.xlu1 %v7587_v62, %s7432_s11 }
 0x225   :  { %591 = vrot.lane.b32.xlu0 %v7606_v4, %s7433_s12 }
 0x227   :  { %326 = vrot.lane.b32.xlu1 %v7589_v63, %s7432_s11 }
 0x229   :  { %583 = vrot.lane.b32.xlu0 %v7594_v0, %s7433_s12 }
 0x22b   :  { %589 = vrot.lane.b32.xlu1 %v7600_v2, %s7433_s12 }
 0x22d   :  { %579 = vrot.lane.b32.xlu0 %v7598_v1, %s7433_s12 }
 0x22f   :  { %585 = vrot.lane.b32.xlu1 %v7604_v3, %s7433_s12 }
 0x231   :  { %760 = vrot.lane.b32.xlu0 %v7606_v4, %s7434_s13 }
 0x233   :  { %581 = vrot.lane.b32.xlu1 %v7587_v62, %s7433_s12 }
 0x237   :  { %577 = vrot.lane.b32.xlu1 %v7589_v63, %s7433_s12 }
 0x23b   :  { %758 = vrot.lane.b32.xlu1 %v7600_v2, %s7434_s13 }
 0x23f   :  { %587 = vrot.lane.b32.xlu1 %v7610_v5, %s7433_s12 }
 0x287   :  { %v339_v6 = vpop.permute.xlu1 %338 }
 0x28b   :  { %v341_v7 = vpop.permute.xlu0 %340 }
 0x28c   :  { %6193 = vmatprep.subr.msk.mxu1 %vm342_vm1, %v341_v7 }
 0x28d   :  { %6194 = vmatpush3.xpose.msk.msra.mxu1 %vm342_vm1, %v341_v7  ;;  %v337_v8 = vpop.permute.xlu1 %336 }
 0x28e   :  { %6195 = vmatprep.subr.msk.mxu1 %vm342_vm1, %v339_v6 }
 0x28f   :  { %v333_v9 = vpop.permute.xlu0 %332 }
 0x291   :  { %6196 = vmatpush3.xpose.msk.msra.mxu1 %vm342_vm1, %v339_v6  ;;  %v335_v11 = vpop.permute.xlu1 %334 }
 0x292   :  { %6197 = vmatprep.subr.msk.mxu1 %vm342_vm1, %v337_v8 }
 0x293   :  { %v329_v12 = vpop.permute.xlu0 %328 }
 0x295   :  { %6198 = vmatpush3.xpose.msk.msra.mxu1 %vm342_vm1, %v337_v8  ;;  %v331_v13 = vpop.permute.xlu1 %330 }
 0x296   :  { %6199 = vmatprep.subr.msk.mxu1 %vm342_vm1, %v335_v11 }
 0x297   :  { %v592_v14 = vpop.permute.xlu0 %591 }
 0x298   :  { %6221 = vmatprep.subr.mxu0 %v592_v14 }
 0x299   :  { %6200 = vmatpush3.xpose.msk.msra.mxu1 %vm342_vm1, %v335_v11  ;;  %6222 = vmatpush3.msra.mxu0 %v592_v14  ;;  %v327_v15 = vpop.permute.xlu1 %326 }
 0x29a   :  { %6201 = vmatprep.subr.msk.mxu1 %vm342_vm1, %v333_v9 }
 0x29b   :  { %v584_v32 = vpop.permute.xlu0 %583 }
 0x29d   :  { %6202 = vmatpush3.xpose.msk.msra.mxu1 %vm342_vm1, %v333_v9  ;;  %v590_v16 = vpop.permute.xlu1 %589 }
 0x29e   :  { %6203 = vmatprep.subr.msk.mxu1 %vm342_vm1, %v331_v13  ;;  %6223 = vmatprep.subr.mxu0 %v590_v16 }
 0x29f   :  { %6224 = vmatpush3.msra.mxu0 %v590_v16  ;;  %v580_v37 = vpop.permute.xlu0 %579 }
 0x2a1   :  { %6204 = vmatpush3.xpose.msk.msra.mxu1 %vm342_vm1, %v331_v13  ;;  %v586_v18 = vpop.permute.xlu1 %585 }
 0x2a2   :  { %6205 = vmatprep.subr.msk.mxu1 %vm342_vm1, %v329_v12 }
 0x2a3   :  { %v7697_v40 = vpop.permute.xlu0 %760 }
 0x2a5   :  { %6206 = vmatpush3.xpose.msk.msra.mxu1 %vm342_vm1, %v329_v12  ;;  %v582_v19 = vpop.permute.xlu1 %581 }
 0x2a6   :  { %6207 = vmatprep.subr.msk.mxu1 %vm342_vm1, %v327_v15 }
 0x2a9   :  { %6208 = vmatpush3.xpose.msk.msra.mxu1 %vm342_vm1, %v327_v15  ;;  %v578_v22 = vpop.permute.xlu1 %577 }
 0x2ac   :  { %6210 = vmatmul.mubr.msk.f32.vlgmr.msra.gmra.mxu1 %vm342_vm1, %v7661_v23 }
 0x2ad   :  { %6212 = vmatprep.mubr.msk.f32.mxu1 %vm342_vm1, %v7664_v24  ;;  %v7670_v25 = vpop.permute.xlu1 %758 }
 0x2b0   :  { %6213 = vmatmul.mubr.msk.f32.gmra.mxu1 %vm342_vm1, %v7673_v30 }
 0x2b1   :  { %6215 = vmatprep.mubr.msk.f32.mxu1 %vm342_vm1, %v7676_v31  ;;  %v588_v33 = vpop.permute.xlu1 %587 }
 0x2b2   :  { %6225 = vmatprep.subr.mxu0 %v588_v33 }
 0x2b3   :  { %6226 = vmatpush3.msra.mxu0 %v588_v33 }
 0x2b4   :  { %6216 = vmatmul.mubr.msk.f32.gmra.mxu1 %vm342_vm1, %v7683_v35  ;;  %6227 = vmatprep.subr.mxu0 %v586_v18 }
 0x2b5   :  { %6218 = vmatprep.mubr.msk.f32.mxu1 %vm342_vm1, %v7686_v20  ;;  %6228 = vmatpush3.msra.mxu0 %v586_v18 }
 0x2b6   :  { %6229 = vmatprep.subr.mxu0 %v584_v32 }
 0x2b7   :  { %6230 = vmatpush3.msra.mxu0 %v584_v32 }
 0x2b8   :  { %6219 = vmatmul.mubr.msk.f32.gmra.mxu1 %vm342_vm1, %v7693_v36  ;;  %6231 = vmatprep.subr.mxu0 %v582_v19 }
 0x2b9   :  { %6232 = vmatpush3.msra.mxu0 %v582_v19 }
 0x2ba   :  { %6233 = vmatprep.subr.mxu0 %v580_v37 }
 0x2bb   :  { %6234 = vmatpush3.msra.mxu0 %v580_v37 }
 0x2bc   :  { %6235 = vmatprep.subr.mxu0 %v578_v22 }
 0x2bd   :  { %6236 = vmatpush3.msra.mxu0 %v578_v22 }
 0x2be   :  { %6249 = vmatprep.subr.msk.mxu0 %vm342_vm1, %v7697_v40 }
 0x36c   :  { %v6211_v41 = vpop.f32.mrf.mxu1 }
 0x36d   :  { %v492_v42 = vsel %vm488_vm2, %v6211_v41, -inf }
 0x36e   :  { %493 = vmax.xlane.f32.xlu1 %v492_v42  ;;  %v449_v28 = vpop.f32.mrf.mxu1 }
 0x36f   :  { %v489_v43 = vsel %vm488_vm2, %v449_v28, -inf }
 0x370   :  { %490 = vmax.xlane.f32.xlu0 %v489_v43  ;;  %v6214_v44 = vpop.f32.mrf.mxu1 }
 0x371   :  { %v498_v46 = vsel %vm488_vm2, %v6214_v44, -inf }
 0x372   :  { %v459_v45 = vpop.f32.mrf.mxu1 }
 0x373   :  { %v495_v51 = vsel %vm488_vm2, %v459_v45, -inf }
 0x374   :  { %499 = vmax.xlane.f32.xlu0 %v498_v46  ;;  %v6217_v47 = vpop.f32.mrf.mxu1 }
 0x375   :  { %v504_v21 = vsel %vm488_vm2, %v6217_v47, -inf }
 0x376   :  { %505 = vmax.xlane.f32.xlu1 %v504_v21  ;;  %v469_v50 = vpop.f32.mrf.mxu1 }
 0x377   :  { %v501_v53 = vsel %vm488_vm2, %v469_v50, -inf }
 0x378   :  { %496 = vmax.xlane.f32.xlu0 %v495_v51  ;;  %v6220_v52 = vpop.f32.mrf.mxu1 }
 0x379   :  { %v510_v29 = vsel %vm488_vm2, %v6220_v52, -inf }
 0x37a   :  { %511 = vmax.xlane.f32.xlu1 %v510_v29  ;;  %v479_v38 = vpop.f32.mrf.mxu1 }
 0x37b   :  { %v507_v54 = vsel %vm488_vm2, %v479_v38, -inf }
 0x37c   :  { %502 = vmax.xlane.f32.xlu0 %v501_v53 }
 0x380   :  { %508 = vmax.xlane.f32.xlu0 %v507_v54 }
 0x38b   :  { %754 = vrot.lane.b32.xlu1 %v7604_v3, %s7434_s13 }
 0x396   :  { %756 = vrot.lane.b32.xlu0 %v7610_v5, %s7434_s13 }
 0x3f7   :  { %v494_v55 = vpop.xlane.xlu1 %493 }
 0x3f8   :  { %v514_v56 = vsub.f32 %v6211_v41, %v494_v55 }
 0x3f9   :  { %v491_v57 = vpop.xlane.xlu0 %490 }
 0x3fa   :  { %v523_v58 = vmul.f32 1.442695, %v514_v56  ;;  %v513_v59 = vsub.f32 %v449_v28, %v491_v57 }
 0x3fc   :  { %6997 = vpow2.f32 %v523_v58  ;;  %v521_v39 = vmul.f32 1.442695, %v513_v59 }
 0x3fd   :  { %v500_v7 = vpop.xlane.xlu0 %499 }
 0x3fe   :  { %6999 = vpow2.f32 %v521_v39  ;;  %v516_v11 = vsub.f32 %v6214_v44, %v500_v7 }
 0x3ff   :  { %v506_v9 = vpop.xlane.xlu1 %505 }
 0x400   :  { %v527_v14 = vmul.f32 1.442695, %v516_v11  ;;  %v518_v15 = vsub.f32 %v6217_v47, %v506_v9 }
 0x401   :  { %v497_v8 = vpop.xlane.xlu0 %496 }
 0x402   :  { %v515_v13 = vsub.f32 %v459_v45, %v497_v8  ;;  %7001 = vpow2.f32 %v527_v14  ;;  %v531_v32 = vmul.f32 1.442695, %v518_v15 }
 0x403   :  { %v512_v16 = vpop.xlane.xlu1 %511 }
 0x404   :  { %v525_v18 = vmul.f32 1.442695, %v515_v13  ;;  %v520_v33 = vsub.f32 %v6220_v52, %v512_v16 }
 0x405   :  { %v503_v12 = vpop.xlane.xlu0 %502 }
 0x406   :  { %v517_v19 = vsub.f32 %v469_v50, %v503_v12  ;;  %7003 = vpow2.f32 %v525_v18  ;;  %v535_v42 = vmul.f32 1.442695, %v520_v33 }
 0x407   :  { %7005 = vpow2.f32 %v531_v32  ;;  %v755_v54 = vpop.permute.xlu1 %754 }
 0x408   :  { %v529_v37 = vmul.f32 1.442695, %v517_v19 }
 0x409   :  { %v7713_v48 = vpop.eup %6997  ;;  %v509_v22 = vpop.xlane.xlu0 %508 }
 0x40a   :  { %v540_v60 = vsel %vm488_vm2, %v7713_v48, 0.0  ;;  %v519_v41 = vsub.f32 %v479_v38, %v509_v22  ;;  %7007 = vpow2.f32 %v529_v37 }
 0x40b   :  { %v7717_v61 = vpop.eup %6999  ;;  %541 = vadd.xlane.f32.xlu1 %v540_v60  ;;  %7009 = vpow2.f32 %v535_v42 }
 0x40c   :  { %v537_v6 = vsel %vm488_vm2, %v7717_v61, 0.0  ;;  %v533_v28 = vmul.f32 1.442695, %v519_v41 }
 0x40d   :  { %538 = vadd.xlane.f32.xlu0 %v537_v6  ;;  %v757_v55 = vpop.permute.xlu0 %756 }
 0x40e   :  { %7011 = vpow2.f32 %v533_v28 }
 0x40f   :  { %v7725_v43 = vpop.eup %7001 }
 0x410   :  { %v546_v45 = vsel %vm488_vm2, %v7725_v43, 0.0 }
 0x413   :  { %v7727_v44 = vpop.eup %7003 }
 0x414   :  { %v7731_v46 = vpop.eup %7005  ;;  %v543_v47 = vsel %vm488_vm2, %v7727_v44, 0.0 }
 0x415   :  { %v552_v50 = vsel %vm488_vm2, %v7731_v46, 0.0 }
 0x417   :  { %v7735_v21 = vpop.eup %7007 }
 0x418   :  { %v7739_v51 = vpop.eup %7009  ;;  %v549_v52 = vsel %vm488_vm2, %v7735_v21, 0.0 }
 0x419   :  { %v558_v53 = vsel %vm488_vm2, %v7739_v51, 0.0 }
 0x41b   :  { %v7743_v29 = vpop.eup %7011 }
 0x41c   :  { %750 = vrot.lane.b32.xlu1 %v7587_v62, %s7434_s13  ;;  %v555_v38 = vsel %vm488_vm2, %v7743_v29, 0.0 }
 0x423   :  { %752 = vrot.lane.b32.xlu0 %v7594_v0, %s7434_s13 }
 0x440   :  { %547 = vadd.xlane.f32.xlu1 %v546_v45 }
 0x442   :  { %544 = vadd.xlane.f32.xlu0 %v543_v47 }
 0x444   :  { %553 = vadd.xlane.f32.xlu1 %v552_v50 }
 0x446   :  { %550 = vadd.xlane.f32.xlu0 %v549_v52 }
 0x448   :  { %559 = vadd.xlane.f32.xlu1 %v558_v53 }
 0x44a   :  { %556 = vadd.xlane.f32.xlu0 %v555_v38 }
 0x459   :  { %746 = vrot.lane.b32.xlu1 %v7589_v63, %s7434_s13 }
 0x45d   :  { %732 = vrot.lane.b32.xlu1 %v7661_v23, %s7435_s14 }
 0x460   :  { %748 = vrot.lane.b32.xlu0 %v7598_v1, %s7434_s13 }
 0x461   :  { %736 = vrot.lane.b32.xlu1 %v7673_v30, %s7435_s14 }
 0x464   :  { %730 = vrot.lane.b32.xlu0 %v7592_v49, %s7435_s14 }
 0x465   :  { %740 = vrot.lane.b32.xlu1 %v7683_v35, %s7435_s14 }
 0x468   :  { %734 = vrot.lane.b32.xlu0 %v7664_v24, %s7435_s14 }
 0x469   :  { %744 = vrot.lane.b32.xlu1 %v7693_v36, %s7435_s14 }
 0x46c   :  { %738 = vrot.lane.b32.xlu0 %v7676_v31, %s7435_s14 }
 0x46d   :  { %999 = vrot.lane.b32.xlu1 %v7600_v2, %s7436_s15 }
 0x470   :  { %742 = vrot.lane.b32.xlu0 %v7686_v20, %s7435_s14 }
 0x471   :  { %997 = vrot.lane.b32.xlu1 %v7610_v5, %s7436_s15 }
 0x474   :  { %1001 = vrot.lane.b32.xlu0 %v7606_v4, %s7436_s15 }
 0x475   :  { %995 = vrot.lane.b32.xlu1 %v7604_v3, %s7436_s15 }
 0x478   :  { %993 = vrot.lane.b32.xlu0 %v7594_v0, %s7436_s15 }
 0x479   :  { %991 = vrot.lane.b32.xlu1 %v7587_v62, %s7436_s15 }
 0x47c   :  { %989 = vrot.lane.b32.xlu0 %v7598_v1, %s7436_s15 }
 0x47d   :  { %987 = vrot.lane.b32.xlu1 %v7589_v63, %s7436_s15 }
 0x480   :  { %1170 = vrot.lane.b32.xlu0 %v7606_v4, %s7437_s17 }
 0x481   :  { %1168 = vrot.lane.b32.xlu1 %v7600_v2, %s7437_s17 }
 0x494   :  { %v542_v56 = vpop.xlane.xlu1 %541 }
 0x495   :  { %7013 = vrcp.f32 %v542_v56 }
 0x496   :  { %v539_v57 = vpop.xlane.xlu0 %538 }
 0x497   :  { %7015 = vrcp.f32 %v539_v57 }
 0x4a2   :  { %v7014_v58 = vpop.eup %7013 }
 0x4a3   :  { %v570_v60 = vmul.f32 %v7014_v58, %v7713_v48  ;;  %v753_v48 = vpop.permute.xlu0 %752 }
 0x4a4   :  { %v7016_v59 = vpop.eup %7015 }
 0x4a5   :  { %v569_v39 = vmul.f32 %v7016_v59, %v7717_v61  ;;  %v751_v61 = vpop.permute.xlu1 %750 }
 0x4a7   :  { %6237 = vmatprep.mubr.msk.f32.mxu0 %vm488_vm2, %v569_v39 }
 0x4a8   :  { %6238 = vmatmul.mubr.msk.f32.vlgmr.msra.gmra.mxu0 %vm488_vm2, %v570_v60 }
 0x4a9   :  { %6250 = vmatpush3.xpose.msk.msra.mxu0 %vm342_vm1, %v7697_v40 }
 0x4aa   :  { %6251 = vmatprep.subr.msk.mxu0 %vm342_vm1, %v7670_v25 }
 0x4ad   :  { %6252 = vmatpush3.xpose.msk.msra.mxu0 %vm342_vm1, %v7670_v25 }
 0x4ae   :  { %6253 = vmatprep.subr.msk.mxu0 %vm342_vm1, %v757_v55 }
 0x4b1   :  { %6254 = vmatpush3.xpose.msk.msra.mxu0 %vm342_vm1, %v757_v55 }
 0x4b2   :  { %6255 = vmatprep.subr.msk.mxu0 %vm342_vm1, %v755_v54 }
 0x4b5   :  { %6256 = vmatpush3.xpose.msk.msra.mxu0 %vm342_vm1, %v755_v54 }
 0x4b6   :  { %6257 = vmatprep.subr.msk.mxu0 %vm342_vm1, %v753_v48 }
 0x4b9   :  { %6258 = vmatpush3.xpose.msk.msra.mxu0 %vm342_vm1, %v753_v48 }
 0x4ba   :  { %6259 = vmatprep.subr.msk.mxu0 %vm342_vm1, %v751_v61 }
 0x4bd   :  { %6260 = vmatpush3.xpose.msk.msra.mxu0 %vm342_vm1, %v751_v61 }
 0x4c9   :  { %v548_v40 = vpop.xlane.xlu1 %547 }
 0x4ca   :  { %7017 = vrcp.f32 %v548_v40 }
 0x4cb   :  { %v545_v25 = vpop.xlane.xlu0 %544 }
 0x4cc   :  { %7019 = vrcp.f32 %v545_v25 }
 0x4cd   :  { %v554_v6 = vpop.xlane.xlu1 %553 }
 0x4ce   :  { %7021 = vrcp.f32 %v554_v6 }
 0x4cf   :  { %v551_v7 = vpop.xlane.xlu0 %550 }
 0x4d0   :  { %7023 = vrcp.f32 %v551_v7 }
 0x4d1   :  { %v560_v8 = vpop.xlane.xlu1 %559 }
 0x4d2   :  { %7025 = vrcp.f32 %v560_v8 }
 0x4d3   :  { %v557_v9 = vpop.xlane.xlu0 %556 }
 0x4d4   :  { %7027 = vrcp.f32 %v557_v9 }
 0x4d5   :  { %v747_v11 = vpop.permute.xlu1 %746 }
 0x4d7   :  { %v749_v12 = vpop.permute.xlu0 %748  ;;  %v7018_v13 = vpop.eup %7017 }
 0x4d8   :  { %6261 = vmatprep.subr.msk.mxu0 %vm342_vm1, %v749_v12  ;;  %v572_v19 = vmul.f32 %v7018_v13, %v7725_v43 }
 0x4d9   :  { %v7020_v14 = vpop.eup %7019  ;;  %v733_v15 = vpop.permute.xlu1 %732  ;;  %6262 = vmatpush3.xpose.msk.msra.mxu0 %vm342_vm1, %v749_v12 }
 0x4da   :  { %6263 = vmatprep.subr.msk.mxu0 %vm342_vm1, %v747_v11  ;;  %v571_v16 = vmul.f32 %v7020_v14, %v7727_v44 }
 0x4db   :  { %v731_v18 = vpop.permute.xlu0 %730  ;;  %v7022_v22 = vpop.eup %7021 }
 0x4dc   :  { %6240 = vmatprep.mubr.msk.f32.mxu0 %vm488_vm2, %v571_v16  ;;  %v574_v42 = vmul.f32 %v7022_v22, %v7731_v46 }
 0x4dd   :  { %v7024_v32 = vpop.eup %7023  ;;  %v737_v33 = vpop.permute.xlu1 %736  ;;  %6241 = vmatmul.mubr.msk.f32.gmra.mxu0 %vm488_vm2, %v572_v19 }
 0x4de   :  { %6264 = vmatpush3.xpose.msk.msra.mxu0 %vm342_vm1, %v747_v11  ;;  %v573_v37 = vmul.f32 %v7024_v32, %v7735_v21 }
 0x4df   :  { %v735_v41 = vpop.permute.xlu0 %734  ;;  %v7026_v28 = vpop.eup %7025 }
 0x4e0   :  { %6243 = vmatprep.mubr.msk.f32.mxu0 %vm488_vm2, %v573_v37  ;;  %v576_v50 = vmul.f32 %v7026_v28, %v7739_v51 }
 0x4e1   :  { %v7028_v44 = vpop.eup %7027  ;;  %v741_v45 = vpop.permute.xlu1 %740  ;;  %6244 = vmatmul.mubr.msk.f32.gmra.mxu0 %vm488_vm2, %v574_v42 }
 0x4e2   :  { %v575_v43 = vmul.f32 %v7028_v44, %v7743_v29 }
 0x4e3   :  { %v739_v47 = vpop.permute.xlu0 %738 }
 0x4e4   :  { %6246 = vmatprep.mubr.msk.f32.mxu0 %vm488_vm2, %v575_v43 }
 0x4e5   :  { %v745_v52 = vpop.permute.xlu1 %744  ;;  %6247 = vmatmul.mubr.msk.f32.gmra.mxu0 %vm488_vm2, %v576_v50 }
 0x4e6   :  { %6265 = vmatprep.mubr.msk.f32.mxu0 %vm342_vm1, %v731_v18 }
 0x4e7   :  { %v743_v46 = vpop.permute.xlu0 %742 }
 0x4e9   :  { %v1000_v21 = vpop.permute.xlu1 %999  ;;  %6266 = vmatmul.mubr.msk.f32.vlgmr.msra.gmra.mxu0 %vm342_vm1, %v733_v15 }
 0x4ea   :  { %6268 = vmatprep.mubr.msk.f32.mxu0 %vm342_vm1, %v735_v41 }
 0x4eb   :  { %v1002_v53 = vpop.permute.xlu0 %1001 }
 0x4ec   :  { %6277 = vmatprep.subr.mxu1 %v1002_v53 }
 0x4ed   :  { %v998_v38 = vpop.permute.xlu1 %997  ;;  %6269 = vmatmul.mubr.msk.f32.gmra.mxu0 %vm342_vm1, %v737_v33  ;;  %6278 = vmatpush3.msra.mxu1 %v1002_v53 }
 0x4ee   :  { %6271 = vmatprep.mubr.msk.f32.mxu0 %vm342_vm1, %v739_v47  ;;  %6279 = vmatprep.subr.mxu1 %v1000_v21 }
 0x4ef   :  { %6280 = vmatpush3.msra.mxu1 %v1000_v21  ;;  %v994_v51 = vpop.permute.xlu0 %993 }
 0x4f0   :  { %6281 = vmatprep.subr.mxu1 %v998_v38 }
 0x4f1   :  { %v996_v29 = vpop.permute.xlu1 %995  ;;  %6272 = vmatmul.mubr.msk.f32.gmra.mxu0 %vm342_vm1, %v741_v45  ;;  %6282 = vmatpush3.msra.mxu1 %v998_v38 }
 0x4f2   :  { %6274 = vmatprep.mubr.msk.f32.mxu0 %vm342_vm1, %v743_v46  ;;  %6283 = vmatprep.subr.mxu1 %v996_v29 }
 0x4f3   :  { %6284 = vmatpush3.msra.mxu1 %v996_v29  ;;  %v990_v54 = vpop.permute.xlu0 %989 }
 0x4f4   :  { %6285 = vmatprep.subr.mxu1 %v994_v51 }
 0x4f5   :  { %v992_v55 = vpop.permute.xlu1 %991  ;;  %6275 = vmatmul.mubr.msk.f32.gmra.mxu0 %vm342_vm1, %v745_v52  ;;  %6286 = vmatpush3.msra.mxu1 %v994_v51 }
 0x4f6   :  { %6287 = vmatprep.subr.mxu1 %v992_v55 }
 0x4f7   :  { %6288 = vmatpush3.msra.mxu1 %v992_v55  ;;  %v7831_v57 = vpop.permute.xlu0 %1170 }
 0x4f8   :  { %6289 = vmatprep.subr.mxu1 %v990_v54 }
 0x4f9   :  { %v988_v56 = vpop.permute.xlu1 %987  ;;  %6290 = vmatpush3.msra.mxu1 %v990_v54 }
 0x4fa   :  { %6291 = vmatprep.subr.mxu1 %v988_v56 }
 0x4fb   :  { %6292 = vmatpush3.msra.mxu1 %v988_v56 }
 0x4fc   :  { %6305 = vmatprep.subr.msk.mxu1 %vm342_vm1, %v7831_v57 }
 0x4fd   :  { %v7863_v41 = vpop.permute.xlu1 %1168 }
 0x568   :  { %v7835_v58 = vpop.f32.mrf.mxu0 }
 0x56a   :  { %v7837_v59 = vpop.f32.mrf.mxu0 }
 0x59d   :  { %v7839_v39 = vpop.f32.mrf.mxu0 }
 0x59f   :  { %v7841_v60 = vpop.f32.mrf.mxu0 }
 0x5a1   :  { %v7843_v48 = vpop.f32.mrf.mxu0 }
 0x5a3   :  { %v7845_v61 = vpop.f32.mrf.mxu0 }
 0x5a5   :  { %v7847_v40 = vpop.f32.mrf.mxu0 }
 0x5a7   :  { %v7849_v25 = vpop.f32.mrf.mxu0 }
 0x5a9   :  { %v6267_v6 = vpop.f32.mrf.mxu0 }
 0x5aa   :  { %v902_v7 = vsel %vm488_vm2, %v6267_v6, -inf }
 0x5ab   :  { %903 = vmax.xlane.f32.xlu1 %v902_v7  ;;  %v860_v8 = vpop.f32.mrf.mxu0 }
 0x5ac   :  { %v899_v9 = vsel %vm488_vm2, %v860_v8, -inf }
 0x5ad   :  { %900 = vmax.xlane.f32.xlu0 %v899_v9  ;;  %v6270_v11 = vpop.f32.mrf.mxu0 }
 0x5ae   :  { %v908_v13 = vsel %vm488_vm2, %v6270_v11, -inf }
 0x5af   :  { %v870_v12 = vpop.f32.mrf.mxu0 }
 0x5b0   :  { %v905_v18 = vsel %vm488_vm2, %v870_v12, -inf }
 0x5b1   :  { %909 = vmax.xlane.f32.xlu0 %v908_v13  ;;  %v6273_v14 = vpop.f32.mrf.mxu0 }
 0x5b2   :  { %v914_v15 = vsel %vm488_vm2, %v6273_v14, -inf }
 0x5b3   :  { %915 = vmax.xlane.f32.xlu1 %v914_v15  ;;  %v880_v16 = vpop.f32.mrf.mxu0 }
 0x5b4   :  { %v911_v32 = vsel %vm488_vm2, %v880_v16, -inf }
 0x5b5   :  { %906 = vmax.xlane.f32.xlu0 %v905_v18  ;;  %v6276_v19 = vpop.f32.mrf.mxu0 }
 0x5b6   :  { %v920_v22 = vsel %vm488_vm2, %v6276_v19, -inf }
 0x5b7   :  { %921 = vmax.xlane.f32.xlu1 %v920_v22  ;;  %v890_v33 = vpop.f32.mrf.mxu0 }
 0x5b8   :  { %v917_v37 = vsel %vm488_vm2, %v890_v33, -inf }
 0x5b9   :  { %912 = vmax.xlane.f32.xlu0 %v911_v32 }
 0x5bd   :  { %918 = vmax.xlane.f32.xlu0 %v917_v37 }
 0x5c8   :  { %1164 = vrot.lane.b32.xlu1 %v7604_v3, %s7437_s17 }
 0x5d3   :  { %1166 = vrot.lane.b32.xlu0 %v7610_v5, %s7437_s17 }
 0x634   :  { %v904_v42 = vpop.xlane.xlu1 %903 }
 0x635   :  { %v924_v28 = vsub.f32 %v6267_v6, %v904_v42 }
 0x636   :  { %v901_v44 = vpop.xlane.xlu0 %900 }
 0x637   :  { %v933_v45 = vmul.f32 1.442695, %v924_v28  ;;  %v923_v43 = vsub.f32 %v860_v8, %v901_v44 }
 0x639   :  { %7029 = vpow2.f32 %v933_v45  ;;  %v931_v47 = vmul.f32 1.442695, %v923_v43 }
 0x63a   :  { %v910_v53 = vpop.xlane.xlu0 %909 }
 0x63b   :  { %7031 = vpow2.f32 %v931_v47  ;;  %v926_v29 = vsub.f32 %v6270_v11, %v910_v53 }
 0x63c   :  { %v916_v51 = vpop.xlane.xlu1 %915 }
 0x63d   :  { %v937_v56 = vmul.f32 1.442695, %v926_v29  ;;  %v928_v6 = vsub.f32 %v6273_v14, %v916_v51 }
 0x63e   :  { %v907_v38 = vpop.xlane.xlu0 %906 }
 0x63f   :  { %v925_v55 = vsub.f32 %v870_v12, %v907_v38  ;;  %7033 = vpow2.f32 %v937_v56  ;;  %v941_v15 = vmul.f32 1.442695, %v928_v6 }
 0x640   :  { %v922_v7 = vpop.xlane.xlu1 %921 }
 0x641   :  { %v935_v8 = vmul.f32 1.442695, %v925_v55  ;;  %v930_v18 = vsub.f32 %v6276_v19, %v922_v7 }
 0x642   :  { %v913_v54 = vpop.xlane.xlu0 %912 }
 0x643   :  { %v927_v9 = vsub.f32 %v880_v16, %v913_v54  ;;  %7035 = vpow2.f32 %v935_v8  ;;  %v945_v37 = vmul.f32 1.442695, %v930_v18 }
 0x644   :  { %7037 = vpow2.f32 %v941_v15 }
 0x645   :  { %v939_v22 = vmul.f32 1.442695, %v927_v9 }
 0x646   :  { %v7865_v50 = vpop.eup %7029  ;;  %v919_v13 = vpop.xlane.xlu0 %918 }
 0x647   :  { %v950_v52 = vsel %vm488_vm2, %v7865_v50, 0.0  ;;  %v929_v32 = vsub.f32 %v890_v33, %v919_v13  ;;  %7039 = vpow2.f32 %v939_v22 }
 0x648   :  { %v7869_v46 = vpop.eup %7031  ;;  %951 = vadd.xlane.f32.xlu1 %v950_v52  ;;  %7041 = vpow2.f32 %v945_v37 }
 0x649   :  { %v947_v21 = vsel %vm488_vm2, %v7869_v46, 0.0  ;;  %v943_v42 = vmul.f32 1.442695, %v929_v32 }
 0x64a   :  { %948 = vadd.xlane.f32.xlu0 %v947_v21  ;;  %v1165_v21 = vpop.permute.xlu1 %1164  ;;  %v1167_v53 = vpop.permute.xlu0 %1166 }
 0x64b   :  { %7043 = vpow2.f32 %v943_v42 }
 0x64c   :  { %v7877_v11 = vpop.eup %7033 }
 0x64d   :  { %v956_v14 = vsel %vm488_vm2, %v7877_v11, 0.0 }
 0x650   :  { %v7879_v12 = vpop.eup %7035 }
 0x651   :  { %v7883_v16 = vpop.eup %7037  ;;  %v953_v19 = vsel %vm488_vm2, %v7879_v12, 0.0 }
 0x652   :  { %v962_v28 = vsel %vm488_vm2, %v7883_v16, 0.0 }
 0x654   :  { %v7887_v33 = vpop.eup %7039 }
 0x655   :  { %v7891_v44 = vpop.eup %7041  ;;  %v959_v45 = vsel %vm488_vm2, %v7887_v33, 0.0 }
 0x656   :  { %v968_v47 = vsel %vm488_vm2, %v7891_v44, 0.0 }
 0x658   :  { %v7895_v43 = vpop.eup %7043 }
 0x659   :  { %1160 = vrot.lane.b32.xlu1 %v7587_v62, %s7437_s17  ;;  %v965_v52 = vsel %vm488_vm2, %v7895_v43, 0.0 }
 0x660   :  { %1162 = vrot.lane.b32.xlu0 %v7594_v0, %s7437_s17 }
 0x67d   :  { %957 = vadd.xlane.f32.xlu1 %v956_v14 }
 0x67f   :  { %954 = vadd.xlane.f32.xlu0 %v953_v19 }
 0x681   :  { %963 = vadd.xlane.f32.xlu1 %v962_v28 }
 0x683   :  { %960 = vadd.xlane.f32.xlu0 %v959_v45 }
 0x685   :  { %969 = vadd.xlane.f32.xlu1 %v968_v47 }
 0x687   :  { %966 = vadd.xlane.f32.xlu0 %v965_v52 }
 0x696   :  { %1156 = vrot.lane.b32.xlu1 %v7589_v63, %s7437_s17 }
 0x69a   :  { %1142 = vrot.lane.b32.xlu1 %v7661_v23, %s7438_s18 }
 0x69d   :  { %1158 = vrot.lane.b32.xlu0 %v7598_v1, %s7437_s17 }
 0x69e   :  { %1146 = vrot.lane.b32.xlu1 %v7673_v30, %s7438_s18 }
 0x6a1   :  { %1140 = vrot.lane.b32.xlu0 %v7592_v49, %s7438_s18 }
 0x6a2   :  { %1150 = vrot.lane.b32.xlu1 %v7683_v35, %s7438_s18 }
 0x6a5   :  { %1144 = vrot.lane.b32.xlu0 %v7664_v24, %s7438_s18 }
 0x6a6   :  { %1154 = vrot.lane.b32.xlu1 %v7693_v36, %s7438_s18 }
 0x6a9   :  { %1148 = vrot.lane.b32.xlu0 %v7676_v31, %s7438_s18 }
 0x6aa   :  { %1409 = vrot.lane.b32.xlu1 %v7600_v2, %s7439_s19 }
 0x6ad   :  { %1152 = vrot.lane.b32.xlu0 %v7686_v20, %s7438_s18 }
 0x6ae   :  { %1407 = vrot.lane.b32.xlu1 %v7610_v5, %s7439_s19 }
 0x6b1   :  { %1411 = vrot.lane.b32.xlu0 %v7606_v4, %s7439_s19 }
 0x6b2   :  { %1405 = vrot.lane.b32.xlu1 %v7604_v3, %s7439_s19 }
 0x6b5   :  { %1403 = vrot.lane.b32.xlu0 %v7594_v0, %s7439_s19 }
 0x6b6   :  { %1401 = vrot.lane.b32.xlu1 %v7587_v62, %s7439_s19 }
 0x6b9   :  { %1399 = vrot.lane.b32.xlu0 %v7598_v1, %s7439_s19 }
 0x6ba   :  { %1397 = vrot.lane.b32.xlu1 %v7589_v63, %s7439_s19 }
 0x6bd   :  { %1580 = vrot.lane.b32.xlu0 %v7606_v4, %s7440_s20 }
 0x6be   :  { %1578 = vrot.lane.b32.xlu1 %v7600_v2, %s7440_s20 }
 0x6d1   :  { %v952_v38 = vpop.xlane.xlu1 %951 }
 0x6d2   :  { %7045 = vrcp.f32 %v952_v38 }
 0x6d3   :  { %v949_v51 = vpop.xlane.xlu0 %948 }
 0x6d4   :  { %7047 = vrcp.f32 %v949_v51 }
 0x6df   :  { %v7046_v29 = vpop.eup %7045 }
 0x6e0   :  { %v980_v56 = vmul.f32 %v7046_v29, %v7865_v50  ;;  %v1163_v50 = vpop.permute.xlu0 %1162 }
 0x6e1   :  { %v7048_v54 = vpop.eup %7047 }
 0x6e2   :  { %v979_v55 = vmul.f32 %v7048_v54, %v7869_v46  ;;  %v1161_v46 = vpop.permute.xlu1 %1160 }
 0x6e4   :  { %6293 = vmatprep.mubr.msk.f32.mxu1 %vm488_vm2, %v979_v55 }
 0x6e5   :  { %6294 = vmatmul.mubr.msk.f32.vlgmr.msra.gmra.mxu1 %vm488_vm2, %v980_v56 }
 0x6e6   :  { %6306 = vmatpush3.xpose.msk.msra.mxu1 %vm342_vm1, %v7831_v57 }
 0x6e7   :  { %6307 = vmatprep.subr.msk.mxu1 %vm342_vm1, %v7863_v41 }
 0x6ea   :  { %6308 = vmatpush3.xpose.msk.msra.mxu1 %vm342_vm1, %v7863_v41 }
 0x6eb   :  { %6309 = vmatprep.subr.msk.mxu1 %vm342_vm1, %v1167_v53 }
 0x6ee   :  { %6310 = vmatpush3.xpose.msk.msra.mxu1 %vm342_vm1, %v1167_v53 }
 0x6ef   :  { %6311 = vmatprep.subr.msk.mxu1 %vm342_vm1, %v1165_v21 }
 0x6f2   :  { %6312 = vmatpush3.xpose.msk.msra.mxu1 %vm342_vm1, %v1165_v21 }
 0x6f3   :  { %6313 = vmatprep.subr.msk.mxu1 %vm342_vm1, %v1163_v50 }
 0x6f6   :  { %6314 = vmatpush3.xpose.msk.msra.mxu1 %vm342_vm1, %v1163_v50 }
 0x6f7   :  { %6315 = vmatprep.subr.msk.mxu1 %vm342_vm1, %v1161_v46 }
 0x6fa   :  { %6316 = vmatpush3.xpose.msk.msra.mxu1 %vm342_vm1, %v1161_v46 }
 0x706   :  { %v958_v57 = vpop.xlane.xlu1 %957 }
 0x707   :  { %7049 = vrcp.f32 %v958_v57 }
 0x708   :  { %v955_v41 = vpop.xlane.xlu0 %954 }
 0x709   :  { %7051 = vrcp.f32 %v955_v41 }
 0x70a   :  { %v964_v6 = vpop.xlane.xlu1 %963 }
 0x70b   :  { %7053 = vrcp.f32 %v964_v6 }
 0x70c   :  { %v961_v7 = vpop.xlane.xlu0 %960 }
 0x70d   :  { %7055 = vrcp.f32 %v961_v7 }
 0x70e   :  { %v970_v8 = vpop.xlane.xlu1 %969 }
 0x70f   :  { %7057 = vrcp.f32 %v970_v8 }
 0x710   :  { %v967_v9 = vpop.xlane.xlu0 %966 }
 0x711   :  { %7059 = vrcp.f32 %v967_v9 }
 0x712   :  { %v1157_v13 = vpop.permute.xlu1 %1156 }
 0x714   :  { %v1159_v15 = vpop.permute.xlu0 %1158  ;;  %v7050_v18 = vpop.eup %7049 }
 0x715   :  { %6317 = vmatprep.subr.msk.mxu1 %vm342_vm1, %v1159_v15  ;;  %v982_v14 = vmul.f32 %v7050_v18, %v7877_v11 }
 0x716   :  { %v7052_v22 = vpop.eup %7051  ;;  %v1143_v32 = vpop.permute.xlu1 %1142  ;;  %6318 = vmatpush3.xpose.msk.msra.mxu1 %vm342_vm1, %v1159_v15 }
 0x717   :  { %6319 = vmatprep.subr.msk.mxu1 %vm342_vm1, %v1157_v13  ;;  %v981_v37 = vmul.f32 %v7052_v22, %v7879_v12 }
 0x718   :  { %v1141_v42 = vpop.permute.xlu0 %1140  ;;  %v7054_v19 = vpop.eup %7053 }
 0x719   :  { %6296 = vmatprep.mubr.msk.f32.mxu1 %vm488_vm2, %v981_v37  ;;  %v984_v21 = vmul.f32 %v7054_v19, %v7883_v16 }
 0x71a   :  { %v7056_v28 = vpop.eup %7055  ;;  %v1147_v45 = vpop.permute.xlu1 %1146  ;;  %6297 = vmatmul.mubr.msk.f32.gmra.mxu1 %vm488_vm2, %v982_v14 }
 0x71b   :  { %6320 = vmatpush3.xpose.msk.msra.mxu1 %vm342_vm1, %v1157_v13  ;;  %v983_v47 = vmul.f32 %v7056_v28, %v7887_v33 }
 0x71c   :  { %v1145_v52 = vpop.permute.xlu0 %1144  ;;  %v7058_v53 = vpop.eup %7057 }
 0x71d   :  { %6299 = vmatprep.mubr.msk.f32.mxu1 %vm488_vm2, %v983_v47  ;;  %v986_v29 = vmul.f32 %v7058_v53, %v7891_v44 }
 0x71e   :  { %v7060_v12 = vpop.eup %7059  ;;  %v1151_v38 = vpop.permute.xlu1 %1150  ;;  %6300 = vmatmul.mubr.msk.f32.gmra.mxu1 %vm488_vm2, %v984_v21 }
 0x71f   :  { %v985_v11 = vmul.f32 %v7060_v12, %v7895_v43 }
 0x720   :  { %v1149_v51 = vpop.permute.xlu0 %1148 }
 0x721   :  { %6302 = vmatprep.mubr.msk.f32.mxu1 %vm488_vm2, %v985_v11 }
 0x722   :  { %v1155_v54 = vpop.permute.xlu1 %1154  ;;  %6303 = vmatmul.mubr.msk.f32.gmra.mxu1 %vm488_vm2, %v986_v29 }
 0x723   :  { %6321 = vmatprep.mubr.msk.f32.mxu1 %vm342_vm1, %v1141_v42 }
 0x724   :  { %v1153_v16 = vpop.permute.xlu0 %1152 }
 0x726   :  { %v1410_v33 = vpop.permute.xlu1 %1409  ;;  %6322 = vmatmul.mubr.msk.f32.vlgmr.msra.gmra.mxu1 %vm342_vm1, %v1143_v32 }
 0x727   :  { %6324 = vmatprep.mubr.msk.f32.mxu1 %vm342_vm1, %v1145_v52 }
 0x728   :  { %v1412_v55 = vpop.permute.xlu0 %1411 }
 0x729   :  { %6333 = vmatprep.subr.mxu0 %v1412_v55 }
 0x72a   :  { %v1408_v56 = vpop.permute.xlu1 %1407  ;;  %6325 = vmatmul.mubr.msk.f32.gmra.mxu1 %vm342_vm1, %v1147_v45  ;;  %6334 = vmatpush3.msra.mxu0 %v1412_v55 }
 0x72b   :  { %6327 = vmatprep.mubr.msk.f32.mxu1 %vm342_vm1, %v1149_v51  ;;  %6335 = vmatprep.subr.mxu0 %v1410_v33 }
 0x72c   :  { %6336 = vmatpush3.msra.mxu0 %v1410_v33  ;;  %v1404_v44 = vpop.permute.xlu0 %1403 }
 0x72d   :  { %6337 = vmatprep.subr.mxu0 %v1408_v56 }
 0x72e   :  { %v1406_v43 = vpop.permute.xlu1 %1405  ;;  %6328 = vmatmul.mubr.msk.f32.gmra.mxu1 %vm342_vm1, %v1151_v38  ;;  %6338 = vmatpush3.msra.mxu0 %v1408_v56 }
 0x72f   :  { %6330 = vmatprep.mubr.msk.f32.mxu1 %vm342_vm1, %v1153_v16  ;;  %6339 = vmatprep.subr.mxu0 %v1406_v43 }
 0x730   :  { %6340 = vmatpush3.msra.mxu0 %v1406_v43  ;;  %v1400_v50 = vpop.permute.xlu0 %1399 }
 0x731   :  { %6341 = vmatprep.subr.mxu0 %v1404_v44 }
 0x732   :  { %v1402_v46 = vpop.permute.xlu1 %1401  ;;  %6331 = vmatmul.mubr.msk.f32.gmra.mxu1 %vm342_vm1, %v1155_v54  ;;  %6342 = vmatpush3.msra.mxu0 %v1404_v44 }
 0x733   :  { %6343 = vmatprep.subr.mxu0 %v1402_v46 }
 0x734   :  { %6344 = vmatpush3.msra.mxu0 %v1402_v46  ;;  %v7983_v41 = vpop.permute.xlu0 %1580 }
 0x735   :  { %6345 = vmatprep.subr.mxu0 %v1400_v50 }
 0x736   :  { %v1398_v57 = vpop.permute.xlu1 %1397  ;;  %6346 = vmatpush3.msra.mxu0 %v1400_v50 }
 0x737   :  { %6347 = vmatprep.subr.mxu0 %v1398_v57 }
 0x738   :  { %6348 = vmatpush3.msra.mxu0 %v1398_v57 }
 0x739   :  { %6361 = vmatprep.subr.msk.mxu0 %vm342_vm1, %v7983_v41 }
 0x73a   :  { %v8023_v56 = vpop.permute.xlu1 %1578 }
 0x7a5   :  { %v7987_v6 = vpop.f32.mrf.mxu1 }
 0x7a7   :  { %v7989_v7 = vpop.f32.mrf.mxu1 }
 0x7da   :  { %v7993_v9 = vpop.f32.mrf.mxu1 }
 0x7dc   :  { %v7995_v13 = vpop.f32.mrf.mxu1 }
 0x7dd   :  { %v6842_v15 = vpack.i.bf16 %v7993_v9, %v7995_v13 }
 0x7de   :  { %v7999_v18 = vpop.f32.mrf.mxu1 }
 0x7e0   :  { %v8001_v22 = vpop.f32.mrf.mxu1 }
 0x7e1   :  { %v9901_v9 = vpack.i.bf16 %v7999_v18, %v8001_v22 }
 0x7e2   :  { %v8005_v37 = vpop.f32.mrf.mxu1 }
 0x7e4   :  { %v8007_v42 = vpop.f32.mrf.mxu1 }
 0x7e6   :  { %v6323_v19 = vpop.f32.mrf.mxu1 }
 0x7e7   :  { %v1312_v28 = vsel %vm488_vm2, %v6323_v19, -inf }
 0x7e8   :  { %1313 = vmax.xlane.f32.xlu1 %v1312_v28  ;;  %v1270_v45 = vpop.f32.mrf.mxu1 }
 0x7e9   :  { %v1309_v47 = vsel %vm488_vm2, %v1270_v45, -inf }
 0x7ea   :  { %1310 = vmax.xlane.f32.xlu0 %v1309_v47  ;;  %v6326_v52 = vpop.f32.mrf.mxu1 }
 0x7eb   :  { %v1318_v53 = vsel %vm488_vm2, %v6326_v52, -inf }
 0x7ec   :  { %v1280_v21 = vpop.f32.mrf.mxu1 }
 0x7ed   :  { %v1315_v51 = vsel %vm488_vm2, %v1280_v21, -inf }
 0x7ee   :  { %1319 = vmax.xlane.f32.xlu0 %v1318_v53  ;;  %v6329_v12 = vpop.f32.mrf.mxu1 }
 0x7ef   :  { %v1324_v38 = vsel %vm488_vm2, %v6329_v12, -inf }
 0x7f0   :  { %1325 = vmax.xlane.f32.xlu1 %v1324_v38  ;;  %v1290_v11 = vpop.f32.mrf.mxu1 }
 0x7f1   :  { %v1321_v16 = vsel %vm488_vm2, %v1290_v11, -inf }
 0x7f2   :  { %1316 = vmax.xlane.f32.xlu0 %v1315_v51  ;;  %v6332_v29 = vpop.f32.mrf.mxu1 }
 0x7f3   :  { %v1330_v54 = vsel %vm488_vm2, %v6332_v29, -inf }
 0x7f4   :  { %1331 = vmax.xlane.f32.xlu1 %v1330_v54  ;;  %v1300_v33 = vpop.f32.mrf.mxu1 }
 0x7f5   :  { %v1327_v55 = vsel %vm488_vm2, %v1300_v33, -inf }
 0x7f6   :  { %1322 = vmax.xlane.f32.xlu0 %v1321_v16 }
 0x7fa   :  { %1328 = vmax.xlane.f32.xlu0 %v1327_v55 }
 0x805   :  { %1574 = vrot.lane.b32.xlu1 %v7604_v3, %s7440_s20 }
 0x810   :  { %1576 = vrot.lane.b32.xlu0 %v7610_v5, %s7440_s20 }
 0x871   :  { %v1314_v44 = vpop.xlane.xlu1 %1313 }
 0x872   :  { %v1334_v43 = vsub.f32 %v6323_v19, %v1314_v44 }
 0x873   :  { %v1311_v50 = vpop.xlane.xlu0 %1310 }
 0x874   :  { %v1343_v46 = vmul.f32 1.442695, %v1334_v43  ;;  %v1333_v57 = vsub.f32 %v1270_v45, %v1311_v50 }
 0x876   :  { %7061 = vpow2.f32 %v1343_v46  ;;  %v1341_v28 = vmul.f32 1.442695, %v1333_v57 }
 0x877   :  { %v1320_v54 = vpop.xlane.xlu0 %1319 }
 0x878   :  { %7063 = vpow2.f32 %v1341_v28  ;;  %v1336_v16 = vsub.f32 %v6326_v52, %v1320_v54 }
 0x879   :  { %v1326_v45 = vpop.xlane.xlu1 %1325 }
 0x87a   :  { %v1347_v43 = vmul.f32 1.442695, %v1336_v16  ;;  %v1338_v50 = vsub.f32 %v6329_v12, %v1326_v45 }
 0x87b   :  { %v1317_v19 = vpop.xlane.xlu0 %1316 }
 0x87c   :  { %v1335_v44 = vsub.f32 %v1280_v21, %v1317_v19  ;;  %7065 = vpow2.f32 %v1347_v43 }
 0x87d   :  { %v1332_v46 = vpop.xlane.xlu1 %1331 }
 0x87e   :  { %v1345_v57 = vmul.f32 1.442695, %v1335_v44  ;;  %v1340_v27 = vsub.f32 %v6332_v29, %v1332_v46 }
 0x87f   :  { %v1323_v55 = vpop.xlane.xlu0 %1322 }
 0x880   :  { %v1337_v28 = vsub.f32 %v1290_v11, %v1323_v55  ;;  %7067 = vpow2.f32 %v1345_v57  ;;  %v1355_v8 = vmul.f32 1.442695, %v1340_v27 }
 0x882   :  { %v1349_v17 = vmul.f32 1.442695, %v1337_v28 }
 0x883   :  { %v8025_v47 = vpop.eup %7061 }
 0x884   :  { %v1360_v53 = vsel %vm488_vm2, %v8025_v47, 0.0 }
 0x885   :  { %v8029_v38 = vpop.eup %7063  ;;  %1361 = vadd.xlane.f32.xlu1 %v1360_v53  ;;  %v1329_v53 = vpop.xlane.xlu0 %1328 }
 0x886   :  { %v1357_v51 = vsel %vm488_vm2, %v8029_v38, 0.0  ;;  %v1339_v32 = vsub.f32 %v1300_v33, %v1329_v53 }
 0x887   :  { %1358 = vadd.xlane.f32.xlu0 %v1357_v51  ;;  %v1351_v51 = vmul.f32 1.442695, %v1338_v50 }
 0x888   :  { %v1353_v14 = vmul.f32 1.442695, %v1339_v32 }
 0x889   :  { %7069 = vpow2.f32 %v1351_v51  ;;  %v8037_v52 = vpop.eup %7065 }
 0x88a   :  { %7071 = vpow2.f32 %v1349_v17  ;;  %v1366_v12 = vsel %vm488_vm2, %v8037_v52, 0.0 }
 0x88b   :  { %7073 = vpow2.f32 %v1355_v8 }
 0x88c   :  { %7075 = vpow2.f32 %v1353_v14 }
 0x88d   :  { %v8039_v21 = vpop.eup %7067 }
 0x88e   :  { %v1363_v29 = vsel %vm488_vm2, %v8039_v21, 0.0 }
 0x896   :  { %1570 = vrot.lane.b32.xlu1 %v7587_v62, %s7440_s20  ;;  %v8043_v11 = vpop.eup %7069 }
 0x897   :  { %v8047_v33 = vpop.eup %7071  ;;  %v1372_v17 = vsel %vm488_vm2, %v8043_v11, 0.0 }
 0x898   :  { %v8051_v27 = vpop.eup %7073  ;;  %v1369_v8 = vsel %vm488_vm2, %v8047_v33, 0.0 }
 0x899   :  { %v8055_v32 = vpop.eup %7075  ;;  %v1378_v14 = vsel %vm488_vm2, %v8051_v27, 0.0 }
 0x89a   :  { %v1375_v54 = vsel %vm488_vm2, %v8055_v32, 0.0 }
 0x89d   :  { %1572 = vrot.lane.b32.xlu0 %v7594_v0, %s7440_s20 }
 0x8ba   :  { %1367 = vadd.xlane.f32.xlu1 %v1366_v12 }
 0x8bc   :  { %1364 = vadd.xlane.f32.xlu0 %v1363_v29 }
 0x8be   :  { %1373 = vadd.xlane.f32.xlu1 %v1372_v17 }
 0x8c0   :  { %1370 = vadd.xlane.f32.xlu0 %v1369_v8 }
 0x8c2   :  { %1379 = vadd.xlane.f32.xlu1 %v1378_v14 }
 0x8c4   :  { %1376 = vadd.xlane.f32.xlu0 %v1375_v54 }
 0x8d3   :  { %1566 = vrot.lane.b32.xlu1 %v7589_v63, %s7440_s20 }
 0x8d7   :  { %1552 = vrot.lane.b32.xlu1 %v7661_v23, %s7441_s21  ;;  %v1575_v23 = vpop.permute.xlu1 %1574 }
 0x8da   :  { %1568 = vrot.lane.b32.xlu0 %v7598_v1, %s7440_s20 }
 0x8db   :  { %1556 = vrot.lane.b32.xlu1 %v7673_v30, %s7441_s21  ;;  %v1577_v30 = vpop.permute.xlu0 %1576 }
 0x8de   :  { %1550 = vrot.lane.b32.xlu0 %v7592_v49, %s7441_s21 }
 0x8df   :  { %1560 = vrot.lane.b32.xlu1 %v7683_v35, %s7441_s21 }
 0x8e2   :  { %1554 = vrot.lane.b32.xlu0 %v7664_v24, %s7441_s21 }
 0x8e3   :  { %1564 = vrot.lane.b32.xlu1 %v7693_v36, %s7441_s21 }
 0x8e6   :  { %1558 = vrot.lane.b32.xlu0 %v7676_v31, %s7441_s21 }
 0x8ea   :  { %1562 = vrot.lane.b32.xlu0 %v7686_v20, %s7441_s21 }
 0x90e   :  { %v1362_v19 = vpop.xlane.xlu1 %1361 }
 0x90f   :  { %7077 = vrcp.f32 %v1362_v19 }
 0x910   :  { %v1359_v49 = vpop.xlane.xlu0 %1358 }
 0x911   :  { %7079 = vrcp.f32 %v1359_v49 }
 0x912   :  { %v1571_v20 = vpop.permute.xlu1 %1570 }
 0x914   :  { %v1573_v31 = vpop.permute.xlu0 %1572 }
 0x91c   :  { %v7078_v45 = vpop.eup %7077 }
 0x91d   :  { %v1390_v24 = vmul.f32 %v7078_v45, %v8025_v47 }
 0x91e   :  { %v7080_v35 = vpop.eup %7079 }
 0x91f   :  { %v1389_v16 = vmul.f32 %v7080_v35, %v8029_v38 }
 0x921   :  { %6349 = vmatprep.mubr.msk.f32.mxu0 %vm488_vm2, %v1389_v16 }
 0x922   :  { %6350 = vmatmul.mubr.msk.f32.vlgmr.msra.gmra.mxu0 %vm488_vm2, %v1390_v24 }
 0x923   :  { %6362 = vmatpush3.xpose.msk.msra.mxu0 %vm342_vm1, %v7983_v41 }
 0x924   :  { %6363 = vmatprep.subr.msk.mxu0 %vm342_vm1, %v8023_v56 }
 0x927   :  { %6364 = vmatpush3.xpose.msk.msra.mxu0 %vm342_vm1, %v8023_v56 }
 0x928   :  { %6365 = vmatprep.subr.msk.mxu0 %vm342_vm1, %v1577_v30 }
 0x92b   :  { %6366 = vmatpush3.xpose.msk.msra.mxu0 %vm342_vm1, %v1577_v30 }
 0x92c   :  { %6367 = vmatprep.subr.msk.mxu0 %vm342_vm1, %v1575_v23 }
 0x92f   :  { %6368 = vmatpush3.xpose.msk.msra.mxu0 %vm342_vm1, %v1575_v23 }
 0x930   :  { %6369 = vmatprep.subr.msk.mxu0 %vm342_vm1, %v1573_v31 }
 0x933   :  { %6370 = vmatpush3.xpose.msk.msra.mxu0 %vm342_vm1, %v1573_v31 }
 0x934   :  { %6371 = vmatprep.subr.msk.mxu0 %vm342_vm1, %v1571_v20 }
 0x937   :  { %6372 = vmatpush3.xpose.msk.msra.mxu0 %vm342_vm1, %v1571_v20 }
 0x943   :  { %v1368_v36 = vpop.xlane.xlu1 %1367 }
 0x944   :  { %7081 = vrcp.f32 %v1368_v36 }
 0x945   :  { %v1365_v41 = vpop.xlane.xlu0 %1364 }
 0x946   :  { %7083 = vrcp.f32 %v1365_v41 }
 0x947   :  { %v1374_v56 = vpop.xlane.xlu1 %1373 }
 0x948   :  { %7085 = vrcp.f32 %v1374_v56 }
 0x949   :  { %v1371_v47 = vpop.xlane.xlu0 %1370 }
 0x94a   :  { %7087 = vrcp.f32 %v1371_v47 }
 0x94b   :  { %v1380_v38 = vpop.xlane.xlu1 %1379 }
 0x94c   :  { %7089 = vrcp.f32 %v1380_v38 }
 0x94d   :  { %v1377_v55 = vpop.xlane.xlu0 %1376 }
 0x94e   :  { %7091 = vrcp.f32 %v1377_v55 }
 0x94f   :  { %v1567_v46 = vpop.permute.xlu1 %1566 }
 0x951   :  { %v1569_v44 = vpop.permute.xlu0 %1568  ;;  %v7082_v43 = vpop.eup %7081 }
 0x952   :  { %6373 = vmatprep.subr.msk.mxu0 %vm342_vm1, %v1569_v44  ;;  %v1392_v28 = vmul.f32 %v7082_v43, %v8037_v52 }
 0x953   :  { %v7084_v50 = vpop.eup %7083  ;;  %6374 = vmatpush3.xpose.msk.msra.mxu0 %vm342_vm1, %v1569_v44  ;;  %v1553_v52 = vpop.permute.xlu1 %1552 }
 0x954   :  { %6375 = vmatprep.subr.msk.mxu0 %vm342_vm1, %v1567_v46  ;;  %v1391_v57 = vmul.f32 %v7084_v50, %v8039_v21 }
 0x955   :  { %v7086_v53 = vpop.eup %7085  ;;  %v1551_v29 = vpop.permute.xlu0 %1550 }
 0x956   :  { %6352 = vmatprep.mubr.msk.f32.mxu0 %vm488_vm2, %v1391_v57  ;;  %v1394_v17 = vmul.f32 %v7086_v53, %v8043_v11 }
 0x957   :  { %v7088_v51 = vpop.eup %7087  ;;  %6353 = vmatmul.mubr.msk.f32.gmra.mxu0 %vm488_vm2, %v1392_v28 }
 0x958   :  { %6376 = vmatpush3.xpose.msk.msra.mxu0 %vm342_vm1, %v1567_v46  ;;  %v1393_v12 = vmul.f32 %v7088_v51, %v8047_v33  ;;  %v1557_v33 = vpop.permute.xlu1 %1556 }
 0x959   :  { %v7090_v8 = vpop.eup %7089  ;;  %v1555_v23 = vpop.permute.xlu0 %1554 }
 0x95a   :  { %6355 = vmatprep.mubr.msk.f32.mxu0 %vm488_vm2, %v1393_v12  ;;  %v1396_v54 = vmul.f32 %v7090_v8, %v8051_v27 }
 0x95b   :  { %v7092_v14 = vpop.eup %7091  ;;  %6356 = vmatmul.mubr.msk.f32.gmra.mxu0 %vm488_vm2, %v1394_v17 }
 0x95c   :  { %v1395_v21 = vmul.f32 %v7092_v14, %v8055_v32  ;;  %v1561_v30 = vpop.permute.xlu1 %1560 }
 0x95d   :  { %v1559_v11 = vpop.permute.xlu0 %1558 }
 0x95e   :  { %6358 = vmatprep.mubr.msk.f32.mxu0 %vm488_vm2, %v1395_v21 }
 0x95f   :  { %6359 = vmatmul.mubr.msk.f32.gmra.mxu0 %vm488_vm2, %v1396_v54 }
 0x960   :  { %6377 = vmatprep.mubr.msk.f32.mxu0 %vm342_vm1, %v1551_v29  ;;  %v1565_v27 = vpop.permute.xlu1 %1564 }
 0x961   :  { %v1563_v32 = vpop.permute.xlu0 %1562 }
 0x963   :  { %6378 = vmatmul.mubr.msk.f32.vlgmr.msra.gmra.mxu0 %vm342_vm1, %v1553_v52 }
 0x964   :  { %6380 = vmatprep.mubr.msk.f32.mxu0 %vm342_vm1, %v1555_v23 }
 0x967   :  { %6381 = vmatmul.mubr.msk.f32.gmra.mxu0 %vm342_vm1, %v1557_v33 }
 0x968   :  { %6383 = vmatprep.mubr.msk.f32.mxu0 %vm342_vm1, %v1559_v11 }
 0x96b   :  { %6384 = vmatmul.mubr.msk.f32.gmra.mxu0 %vm342_vm1, %v1561_v30 }
 0x96c   :  { %6386 = vmatprep.mubr.msk.f32.mxu0 %vm342_vm1, %v1563_v32 }
 0x96f   :  { %6387 = vmatmul.mubr.msk.f32.gmra.mxu0 %vm342_vm1, %v1565_v27 }
 0x9e2   :  { %v8123_v19 = vpop.f32.mrf.mxu0 }
 0x9e4   :  { %v8125_v49 = vpop.f32.mrf.mxu0 }
 0x9e5   :  { %v6847_v45 = vpack.i.bf16 %v8123_v19, %v8125_v49 }
 0xa17   :  { %v8129_v35 = vpop.f32.mrf.mxu0 }
 0xa19   :  { %v8131_v16 = vpop.f32.mrf.mxu0 }
 0xa1a   :  { %v6852_v24 = vpack.i.bf16 %v8129_v35, %v8131_v16 }
 0xa1b   :  { %v8135_v31 = vpop.f32.mrf.mxu0 }
 0xa1d   :  { %v8137_v20 = vpop.f32.mrf.mxu0 }
 0xa1e   :  { %v6872_v36 = vpack.i.bf16 %v8135_v31, %v8137_v20 }
 0xa1f   :  { %v8141_v41 = vpop.f32.mrf.mxu0 }
 0xa21   :  { %v8143_v56 = vpop.f32.mrf.mxu0 }
 0xa22   :  { %v6882_v47 = vpack.i.bf16 %v8141_v41, %v8143_v56 }
 0xa23   :  { %v6379_v38 = vpop.f32.mrf.mxu0 }
 0xa24   :  { %v1722_v55 = vsel %vm488_vm2, %v6379_v38, -inf }
 0xa25   :  { %1723 = vmax.xlane.f32.xlu1 %v1722_v55  ;;  %v1680_v44 = vpop.f32.mrf.mxu0 }
 0xa26   :  { %v1719_v43 = vsel %vm488_vm2, %v1680_v44, -inf }
 0xa27   :  { %1720 = vmax.xlane.f32.xlu0 %v1719_v43  ;;  %v6382_v50 = vpop.f32.mrf.mxu0 }
 0xa28   :  { %v1728_v57 = vsel %vm488_vm2, %v6382_v50, -inf }
 0xa29   :  { %v1690_v46 = vpop.f32.mrf.mxu0 }
 0xa2a   :  { %v1725_v12 = vsel %vm488_vm2, %v1690_v46, -inf }
 0xa2b   :  { %1729 = vmax.xlane.f32.xlu0 %v1728_v57  ;;  %v6385_v28 = vpop.f32.mrf.mxu0 }
 0xa2c   :  { %v1734_v53 = vsel %vm488_vm2, %v6385_v28, -inf }
 0xa2d   :  { %1735 = vmax.xlane.f32.xlu1 %v1734_v53  ;;  %v1700_v51 = vpop.f32.mrf.mxu0 }
 0xa2e   :  { %v1731_v8 = vsel %vm488_vm2, %v1700_v51, -inf }
 0xa2f   :  { %1726 = vmax.xlane.f32.xlu0 %v1725_v12  ;;  %v6388_v29 = vpop.f32.mrf.mxu0 }
 0xa30   :  { %v1740_v17 = vsel %vm488_vm2, %v6388_v29, -inf }
 0xa31   :  { %1741 = vmax.xlane.f32.xlu1 %v1740_v17  ;;  %v1710_v14 = vpop.f32.mrf.mxu0 }
 0xa32   :  { %v1737_v52 = vsel %vm488_vm2, %v1710_v14, -inf }
 0xa33   :  { %1732 = vmax.xlane.f32.xlu0 %v1731_v8 }
 0xa37   :  { %1738 = vmax.xlane.f32.xlu0 %v1737_v52 }
 0xa42   :  { %1819 = vrot.lane.b32.xlu1 %v7600_v2, %s7442_s22 }
 0xa46   :  { %1817 = vrot.lane.b32.xlu1 %v7610_v5, %s7442_s22 }
 0xa4a   :  { %1815 = vrot.lane.b32.xlu1 %v7604_v3, %s7442_s22 }
 0xa4d   :  { %1821 = vrot.lane.b32.xlu0 %v7606_v4, %s7442_s22 }
 0xa4e   :  { %1811 = vrot.lane.b32.xlu1 %v7587_v62, %s7442_s22 }
 0xa51   :  { %1813 = vrot.lane.b32.xlu0 %v7594_v0, %s7442_s22 }
 0xaae   :  { %v1724_v21 = vpop.xlane.xlu1 %1723 }
 0xaaf   :  { %v1744_v54 = vsub.f32 %v6379_v38, %v1724_v21 }
 0xab0   :  { %v1721_v23 = vpop.xlane.xlu0 %1720 }
 0xab1   :  { %v1753_v33 = vmul.f32 1.442695, %v1744_v54  ;;  %v1743_v2 = vsub.f32 %v1680_v44, %v1721_v23 }
 0xab3   :  { %7093 = vpow2.f32 %v1753_v33  ;;  %v1751_v11 = vmul.f32 1.442695, %v1743_v2 }
 0xab4   :  { %v1730_v5 = vpop.xlane.xlu0 %1729 }
 0xab5   :  { %7095 = vpow2.f32 %v1751_v11  ;;  %v1746_v30 = vsub.f32 %v6382_v50, %v1730_v5 }
 0xab6   :  { %v1736_v3 = vpop.xlane.xlu1 %1735 }
 0xab7   :  { %v1757_v32 = vmul.f32 1.442695, %v1746_v30  ;;  %v1748_v27 = vsub.f32 %v6385_v28, %v1736_v3 }
 0xab8   :  { %v1727_v4 = vpop.xlane.xlu0 %1726 }
 0xab9   :  { %7097 = vpow2.f32 %v1757_v32  ;;  %v1761_v55 = vmul.f32 1.442695, %v1748_v27  ;;  %v1745_v62 = vsub.f32 %v1690_v46, %v1727_v4 }
 0xaba   :  { %v1742_v43 = vpop.xlane.xlu1 %1741 }
 0xabb   :  { %7099 = vpow2.f32 %v1761_v55  ;;  %v1755_v0 = vmul.f32 1.442695, %v1745_v62  ;;  %v1750_v57 = vsub.f32 %v6388_v29, %v1742_v43 }
 0xabc   :  { %v1733_v38 = vpop.xlane.xlu0 %1732 }
 0xabd   :  { %7101 = vpow2.f32 %v1755_v0  ;;  %v1765_v53 = vmul.f32 1.442695, %v1750_v57  ;;  %v1747_v44 = vsub.f32 %v1700_v51, %v1733_v38  ;;  %v9899_v57 = vpack.i.bf16 %v8005_v37, %v8007_v42 }
 0xabe   :  { %v1820_v12 = vpop.permute.xlu1 %1819 }
 0xabf   :  { %7103 = vpow2.f32 %v1765_v53  ;;  %v1759_v17 = vmul.f32 1.442695, %v1747_v44 }
 0xac0   :  { %v8167_v8 = vpop.eup %7093  ;;  %v1739_v50 = vpop.xlane.xlu0 %1738 }
 0xac1   :  { %7105 = vpow2.f32 %v1759_v17  ;;  %v1749_v28 = vsub.f32 %v1710_v14, %v1739_v50  ;;  %v1770_v52 = vsel %vm488_vm2, %v8167_v8, 0.0 }
 0xac2   :  { %v7096_v46 = vpop.eup %7095  ;;  %1771 = vadd.xlane.f32.xlu1 %v1770_v52  ;;  %v1818_v54 = vpop.permute.xlu1 %1817 }
 0xac3   :  { %v1763_v21 = vmul.f32 1.442695, %v1749_v28  ;;  %v1767_v29 = vsel %vm488_vm2, %v7096_v46, 0.0 }
 0xac4   :  { %1768 = vadd.xlane.f32.xlu0 %v1767_v29  ;;  %v1822_v23 = vpop.permute.xlu0 %1821  ;;  %v6960_v29 = vld [vmem:[%s9881_s2 + $0x10] sm:$0xff]  }
 0xac5   :  { %7107 = vpow2.f32 %v1763_v21  ;;  %6389 = vmatprep.subr.mxu1 %v1822_v23 }
 0xac6   :  { %v8172_v51 = vpop.eup %7097  ;;  %6390 = vmatpush3.msra.mxu1 %v1822_v23  ;;  %v1816_v2 = vpop.permute.xlu1 %1815 }
 0xac7   :  { %6391 = vmatprep.subr.mxu1 %v1820_v12  ;;  %v1776_v14 = vsel %vm488_vm2, %v8172_v51, 0.0 }
 0xac8   :  { %v8176_v33 = vpop.eup %7099  ;;  %1777 = vadd.xlane.f32.xlu1 %v1776_v14  ;;  %6392 = vmatpush3.msra.mxu1 %v1820_v12  ;;  %v1814_v32 = vpop.permute.xlu0 %1813 }
 0xac9   :  { %6393 = vmatprep.subr.mxu1 %v1818_v54  ;;  %v1782_v5 = vsel %vm488_vm2, %v8176_v33, 0.0 }
 0xaca   :  { %v7102_v11 = vpop.eup %7101  ;;  %6394 = vmatpush3.msra.mxu1 %v1818_v54  ;;  %v1812_v4 = vpop.permute.xlu1 %1811  ;;  %v6959_v54 = vld [vmem:[%s9881_s2 + $0x18] sm:$0xff]  }
 0xacb   :  { %6395 = vmatprep.subr.mxu1 %v1816_v2  ;;  %v1773_v30 = vsel %vm488_vm2, %v7102_v11, 0.0 }
 0xacc   :  { %v8181_v3 = vpop.eup %7103  ;;  %1783 = vadd.xlane.f32.xlu1 %v1782_v5  ;;  %1774 = vadd.xlane.f32.xlu0 %v1773_v30 }
 0xacd   :  { %6396 = vmatpush3.msra.mxu1 %v1816_v2  ;;  %v1788_v55 = vsel %vm488_vm2, %v8181_v3, 0.0 }
 0xace   :  { %v7106_v27 = vpop.eup %7105  ;;  %6397 = vmatprep.subr.mxu1 %v1814_v32 }
 0xacf   :  { %6398 = vmatpush3.msra.mxu1 %v1814_v32  ;;  %v1779_v62 = vsel %vm488_vm2, %v7106_v27, 0.0 }
 0xad0   :  { %6399 = vmatprep.subr.mxu1 %v1812_v4  ;;  %1789 = vadd.xlane.f32.xlu1 %v1788_v55 }
 0xad1   :  { %1780 = vadd.xlane.f32.xlu0 %v1779_v62  ;;  %6400 = vmatpush3.msra.mxu1 %v1812_v4 }
 0xad2   :  { %v7108_v43 = vpop.eup %7107 }
 0xad3   :  { %v1785_v0 = vsel %vm488_vm2, %v7108_v43, 0.0 }
 0xad5   :  { %1786 = vadd.xlane.f32.xlu0 %v1785_v0 }
 0xae1   :  { %1807 = vrot.lane.b32.xlu1 %v7589_v63, %s7442_s22  ;;  %v9900_v63 = vpack.i.bf16 %v7987_v6, %v7989_v7 }
 0xae5   :  { %6843 = vrot.lane.b32.xlu1 %v6842_v15, %s7431_s16 }
 0xae9   :  { %6853 = vrot.lane.b32.xlu1 %v6852_v24, %s7443_s23 }
 0xaeb   :  { %1809 = vrot.lane.b32.xlu0 %v7598_v1, %s7442_s22 }
 0xaed   :  { %6863 = vrot.lane.b32.xlu1 %v9899_v57, %s7431_s16 }
 0xaef   :  { %6838 = vrot.lane.b32.xlu0 %v9900_v63, %s7431_s16 }
 0xaf3   :  { %6848 = vrot.lane.b32.xlu0 %v6847_v45, %s7443_s23 }
 0xaf7   :  { %6858 = vrot.lane.b32.xlu0 %v9901_v9, %s7431_s16 }
 0xb4b   :  { %v1772_v13 = vpop.xlane.xlu1 %1771 }
 0xb4d   :  { %v1769_v1 = vpop.xlane.xlu0 %1768 }
 0xb4e   :  { %7109 = vrcp.f32 %v1769_v1 }
 0xb4f   :  { %7111 = vrcp.f32 %v1772_v13 }
 0xb51   :  { %v1778_v15 = vpop.xlane.xlu1 %1777 }
 0xb55   :  { %v1775_v37 = vpop.xlane.xlu0 %1774  ;;  %v1784_v42 = vpop.xlane.xlu1 %1783 }
 0xb56   :  { %7113 = vrcp.f32 %v1775_v37 }
 0xb57   :  { %7115 = vrcp.f32 %v1778_v15 }
 0xb59   :  { %v1790_v19 = vpop.xlane.xlu1 %1789 }
 0xb5a   :  { %v1781_v6 = vpop.xlane.xlu0 %1780 }
 0xb5b   :  { %v7110_v7 = vpop.eup %7109  ;;  %7117 = vrcp.f32 %v1781_v6 }
 0xb5c   :  { %v1799_v35 = vmul.f32 %v7110_v7, %v7096_v46  ;;  %7119 = vrcp.f32 %v1784_v42  ;;  %v7112_v18 = vpop.eup %7111 }
 0xb5d   :  { %v1808_v16 = vpop.permute.xlu1 %1807  ;;  %v1800_v24 = vmul.f32 %v7112_v18, %v8167_v8 }
 0xb5e   :  { %v1787_v49 = vpop.xlane.xlu0 %1786  ;;  %6405 = vmatprep.mubr.msk.f32.mxu1 %vm488_vm2, %v1799_v35 }
 0xb5f   :  { %7121 = vrcp.f32 %v1787_v49 }
 0xb60   :  { %7123 = vrcp.f32 %v1790_v19 }
 0xb61   :  { %v6844_v62 = vpop.permute.xlu1 %6843 }
 0xb62   :  { %v1810_v22 = vpop.permute.xlu0 %1809  ;;  %v6846_v9 = vunpack.i.h.bf16 %v6844_v62  ;;  %v6845_v1 = vunpack.i.l.bf16 %v6844_v62 }
 0xb63   :  { %6401 = vmatprep.subr.mxu1 %v1810_v22  ;;  %v7114_v45 = vpop.eup %7113 }
 0xb64   :  { %6402 = vmatpush3.msra.mxu1 %v1810_v22  ;;  %v1801_v38 = vmul.f32 %v7114_v45, %v7102_v11  ;;  %v7116_v53 = vpop.eup %7115  ;;  %v2059_v18 = vsel %vm342_vm1, %v7839_v39, %v6846_v9 }
 0xb65   :  { %6403 = vmatprep.subr.mxu1 %v1808_v16  ;;  %v1802_v12 = vmul.f32 %v7116_v53, %v8172_v51  ;;  %v6854_v20 = vpop.permute.xlu1 %6853 }
 0xb66   :  { %6404 = vmatpush3.msra.mxu1 %v1808_v16  ;;  %v6839_v55 = vpop.permute.xlu0 %6838  ;;  %v6856_v42 = vunpack.i.h.bf16 %v6854_v20  ;;  %v6855_v6 = vunpack.i.l.bf16 %v6854_v20 }
 0xb67   :  { %6406 = vmatmul.mubr.msk.f32.vlgmr.msra.gmra.mxu1 %vm488_vm2, %v1800_v24  ;;  %6417 = vmatprep.subr.bf16.mxu1 %v6959_v54  ;;  %v6840_v0 = vunpack.i.l.bf16 %v6839_v55 }
 0xb68   :  { %v7118_v44 = vpop.eup %7117  ;;  %6408 = vmatprep.mubr.msk.f32.mxu1 %vm488_vm2, %v1801_v38  ;;  %6418 = vmatpush3.bf16.msra.mxu1 %v6959_v54 }
 0xb69   :  { %v1803_v17 = vmul.f32 %v7118_v44, %v7106_v27  ;;  %v7120_v50 = vpop.eup %7119  ;;  %6419 = vmatprep.subr.bf16.mxu1 %v6960_v29  ;;  %v6864_v41 = vpop.permute.xlu1 %6863  ;;  %v2056_v13 = vsel %vm342_vm1, %v7837_v59, %v6840_v0 }
 0xb6a   :  { %v1804_v8 = vmul.f32 %v7120_v50, %v8176_v33  ;;  %v6849_v31 = vpop.permute.xlu0 %6848 }
 0xb6b   :  { %6409 = vmatmul.mubr.msk.f32.gmra.mxu1 %vm488_vm2, %v1802_v12  ;;  %v6851_v57 = vunpack.i.h.bf16 %v6849_v31  ;;  %v6850_v63 = vunpack.i.l.bf16 %v6849_v31  ;;  %v2068_v12 = vsel %vm2064_vm3, %v2059_v18, %v6856_v42  ;;  %v7366_v42 = vld [vmem:[%s9879_s0] sm:$0xff] }
 0xb6c   :  { %v7122_v28 = vpop.eup %7121  ;;  %6411 = vmatprep.mubr.msk.f32.mxu1 %vm488_vm2, %v1803_v17  ;;  %6420 = vmatpush3.bf16.msra.mxu1 %v6960_v29 }
 0xb6d   :  { %v1805_v52 = vmul.f32 %v7122_v28, %v7108_v43  ;;  %v7124_v46 = vpop.eup %7123  ;;  %v6841_v43 = vunpack.i.h.bf16 %v6839_v55  ;;  %v2065_v7 = vsel %vm2064_vm3, %v2056_v13, %v6850_v63 }
 0xb6e   :  { %v1806_v21 = vmul.f32 %v7124_v46, %v8181_v3 }
 0xb6f   :  { %6412 = vmatmul.mubr.msk.f32.gmra.mxu1 %vm488_vm2, %v1804_v8  ;;  %v6865_v8 = vunpack.i.l.bf16 %v6864_v41 }
 0xb70   :  { %6414 = vmatprep.mubr.msk.f32.mxu1 %vm488_vm2, %v1805_v52 }
 0xb73   :  { %6415 = vmatmul.mubr.msk.f32.gmra.mxu1 %vm488_vm2, %v1806_v21 }
 0xc27   :  { %v6407_v23 = vpop.f32.mrf.mxu1 }
 0xc29   :  { %v1921_v51 = vpop.f32.mrf.mxu1 }
 0xc2a   :  { %v6867_v14 = vpack.i.bf16 %v6407_v23, %v1921_v51 }
 0xc2b   :  { %v6410_v33 = vpop.f32.mrf.mxu1 }
 0xc2c   :  { %6868 = vrot.lane.b32.xlu0 %v6867_v14, %s7444_s27 }
 0xc2d   :  { %v1931_v2 = vpop.f32.mrf.mxu1 }
 0xc2e   :  { %v6877_v11 = vpack.i.bf16 %v6410_v33, %v1931_v2 }
 0xc2f   :  { %v6413_v5 = vpop.f32.mrf.mxu1 }
 0xc30   :  { %6873 = vrot.lane.b32.xlu0 %v6872_v36, %s7443_s23  ;;  %6878 = vrot.lane.b32.xlu1 %v6877_v11, %s7444_s27  ;;  %v6859_v36 = vpop.permute.xlu0 %6858 }
 0xc31   :  { %v1941_v30 = vpop.f32.mrf.mxu1  ;;  %v6861_v16 = vunpack.i.h.bf16 %v6859_v36  ;;  %v6860_v24 = vunpack.i.l.bf16 %v6859_v36 }
 0xc32   :  { %v6887_v3 = vpack.i.bf16 %v6413_v5, %v1941_v30 }
 0xc33   :  { %v6416_v32 = vpop.f32.mrf.mxu1  ;;  %v2061_v54 = vsel %vm342_vm1, %v7843_v48, %v6861_v16  ;;  %v2060_v29 = vsel %vm342_vm1, %v7845_v61, %v6860_v24  ;;  %v2062_v61 = vsel %vm342_vm1, %v7849_v25, %v6865_v8  ;;  %v8283_v25 = vld [vmem:[#allocation2] sm:$0xff] }
 0xc34   :  { %6883 = vrot.lane.b32.xlu1 %v6882_v47, %s7443_s23  ;;  %6888 = vrot.lane.b32.xlu0 %v6887_v3, %s7444_s27  ;;  %v2057_v47 = vsel %vm342_vm1, %v7835_v58, %v6841_v43  ;;  %v2058_v58 = vsel %vm342_vm1, %v7841_v60, %v6845_v1  ;;  %v6866_v60 = vunpack.i.h.bf16 %v6864_v41  ;;  %v2181_v43 = vsub.s32 3, %v7547_v10 }
 0xc35   :  { %v1951_v27 = vpop.f32.mrf.mxu1  ;;  %v2066_v35 = vsel %vm2064_vm3, %v2057_v47, %v6851_v57  ;;  %v2067_v44 = vsel %vm2064_vm3, %v2058_v58, %v6855_v6 }
 0xc36   :  { %v6892_v4 = vpack.i.bf16 %v6416_v32, %v1951_v27  ;;  %v2063_v48 = vsel %vm342_vm1, %v7847_v40, %v6866_v60  ;;  %v2088_v40 = vsub.s32 2, %v7547_v10  ;;  %v8293_v63 = vrot.slane %v8283_v25, %v2181_v43 }
 0xc38   :  { %6893 = vrot.lane.b32.xlu1 %v6892_v4, %s7444_s27  ;;  %v8288_v0 = vrot.slane %v8283_v25, %v2088_v40 }
 0xc9e   :  { %v6869_v56 = vpop.permute.xlu0 %6868 }
 0xc9f   :  { %v6871_v15 = vunpack.i.h.bf16 %v6869_v56  ;;  %v6870_v37 = vunpack.i.l.bf16 %v6869_v56 }
 0xca1   :  { %v2074_v19 = vsel %vm2073_vm4, %v2065_v7, %v6870_v37  ;;  %v2075_v49 = vsel %vm2073_vm4, %v2066_v35, %v6871_v15  ;;  %v7367_v35 = vld [vmem:[%s9879_s0 + $0x10] sm:$0xff] }
 0xca2   :  { %v6879_v22 = vpop.permute.xlu1 %6878  ;;  %v6874_v59 = vpop.permute.xlu0 %6873  ;;  %v2082_v45 = vpack.c.bf16 %v2075_v49, %v2074_v19 }
 0xca3   :  { %v6881_v38 = vunpack.i.h.bf16 %v6879_v22  ;;  %v6880_v53 = vunpack.i.l.bf16 %v6879_v22  ;;  %v6876_v17 = vunpack.i.h.bf16 %v6874_v59  ;;  %v6875_v50 = vunpack.i.l.bf16 %v6874_v59 }
 0xca4   :  { %6421 = vmatprep.mubr.msk.bf16.mxu1 %vm87_vm0, %v2082_v45  ;;  %v7368_v45 = vld [vmem:[%s9879_s0 + $0x8] sm:$0xff] }
 0xca5   :  { %v2077_v39 = vsel %vm2073_vm4, %v2068_v12, %v6881_v38  ;;  %v2076_v28 = vsel %vm2073_vm4, %v2067_v44, %v6880_v53  ;;  %v2069_v14 = vsel %vm2064_vm3, %v2060_v29, %v6875_v50  ;;  %v2070_v33 = vsel %vm2064_vm3, %v2061_v54, %v6876_v17  ;;  %v7369_v12 = vld [vmem:[%s9879_s0 + $0x18] sm:$0xff] }
 0xca6   :  { %v2083_v52 = vpack.c.bf16 %v2077_v39, %v2076_v28  ;;  %v6884_v46 = vpop.permute.xlu1 %6883  ;;  %v6889_v21 = vpop.permute.xlu0 %6888 }
 0xca7   :  { %v6891_v23 = vunpack.i.h.bf16 %v6889_v21  ;;  %v6890_v51 = vunpack.i.l.bf16 %v6889_v21  ;;  %v6886_v2 = vunpack.i.h.bf16 %v6884_v46  ;;  %v6885_v11 = vunpack.i.l.bf16 %v6884_v46  ;;  %v7370_v46 = vld [vmem:[%s9879_s0 + $0x20] sm:$0xff] }
 0xca8   :  { %6422 = vmatmul.mubr.msk.bf16.vlgmr.msra.gmra.mxu1 %vm87_vm0, %v2083_v52 }
 0xca9   :  { %v2078_v5 = vsel %vm2073_vm4, %v2069_v14, %v6890_v51  ;;  %v2079_v30 = vsel %vm2073_vm4, %v2070_v33, %v6891_v23  ;;  %v2072_v55 = vsel %vm2064_vm3, %v2063_v48, %v6886_v2  ;;  %v2071_v62 = vsel %vm2064_vm3, %v2062_v61, %v6885_v11  ;;  %v7371_v51 = vld [vmem:[%s9879_s0 + $0x28] sm:$0xff]  ;;  %v7372_v33 = vld [vmem:[%s9879_s0 + $0x30] sm:$0xff]  ;;  %v7373_v11 = vld [vmem:[%s9879_s0 + $0x38] sm:$0xff] }
 0xcaa   :  { %v6894_v3 = vpop.permute.xlu1 %6893  ;;  %v2084_v32 = vpack.c.bf16 %v2079_v30, %v2078_v5 }
 0xcab   :  { %v6896_v27 = vunpack.i.h.bf16 %v6894_v3  ;;  %v6895_v4 = vunpack.i.l.bf16 %v6894_v3 }
 0xcac   :  { %6425 = vmatprep.mubr.msk.bf16.mxu1 %vm87_vm0, %v2084_v32 }
 0xcad   :  { %v2081_v31 = vsel %vm2073_vm4, %v2072_v55, %v6896_v27  ;;  %v2080_v20 = vsel %vm2073_vm4, %v2071_v62, %v6895_v4 }
 0xcae   :  { %v2085_v36 = vpack.c.bf16 %v2081_v31, %v2080_v20 }
 0xcb0   :  { %6426 = vmatmul.mubr.msk.bf16.gmra.mxu1 %vm87_vm0, %v2085_v36 }
 0xd68   :  { %v6423_v57 = vpop.f32.mrf.mxu1 }
 0xd69   :  { %v2157_v9 = vadd.f32 %v6423_v57, %v8288_v0 }
 0xd6a   :  { %v2148_v1 = vpop.f32.mrf.mxu1 }
 0xd6b   :  { %v2149_v41 = vadd.f32 %v2148_v1, %v8288_v0  ;;  %v2185_v56 = vmul.f32 %v8293_v63, %v2157_v9 }
 0xd6c   :  { %v6424_v47 = vpop.f32.mrf.mxu1 }
 0xd6d   :  { %v2183_v13 = vmul.f32 %v8293_v63, %v2149_v41  ;;  %v2160_v15 = vadd.f32 %v6424_v47, %v8288_v0  ;;  %v8309_v19 = vadd.f32 %v7367_v35, %v2185_v56 }
 0xd6e   :  { %v2151_v37 = vpop.f32.mrf.mxu1 }
 0xd6f   :  { %v8303_v6 = vadd.f32 %v7366_v42, %v2183_v13  ;;  %v2152_v7 = vadd.f32 %v2151_v37, %v8288_v0  ;;  %v2186_v18 = vmul.f32 %v8293_v63, %v2160_v15  ;;  %v2205_v44 = vsel %vm87_vm0, %v8309_v19, 0.0 }
 0xd70   :  { %v6427_v49 = vpop.f32.mrf.mxu1 }
 0xd71   :  { %v2184_v58 = vmul.f32 %v8293_v63, %v2152_v7  ;;  %v2199_v22 = vsel %vm87_vm0, %v8303_v6, 0.0  ;;  %v2173_v38 = vadd.f32 %v6427_v49, %v8288_v0  ;;  %v8327_v17 = vadd.f32 %v7369_v12, %v2186_v18 }
 0xd72   :  { %v2164_v59 = vpop.f32.mrf.mxu1  ;;  %2200 = vadd.xlane.f32.xlu0 %v2199_v22 }
 0xd73   :  { %v8318_v16 = vadd.f32 %v7368_v45, %v2184_v58  ;;  %v2165_v24 = vadd.f32 %v2164_v59, %v8288_v0  ;;  %v2189_v52 = vmul.f32 %v8293_v63, %v2173_v38  ;;  %v2208_v23 = vsel %vm87_vm0, %v8327_v17, 0.0 }
 0xd74   :  { %v6428_v53 = vpop.f32.mrf.mxu1 }
 0xd75   :  { %v2187_v50 = vmul.f32 %v8293_v63, %v2165_v24  ;;  %v2176_v39 = vadd.f32 %v6428_v53, %v8288_v0  ;;  %v2202_v28 = vsel %vm87_vm0, %v8318_v16, 0.0  ;;  %v8352_v2 = vadd.f32 %v7372_v33, %v2189_v52 }
 0xd76   :  { %v2167_v60 = vpop.f32.mrf.mxu1  ;;  %2203 = vadd.xlane.f32.xlu1 %v2202_v28  ;;  %2206 = vadd.xlane.f32.xlu0 %v2205_v44 }
 0xd77   :  { %v2168_v8 = vadd.f32 %v2167_v60, %v8288_v0  ;;  %v8338_v21 = vadd.f32 %v7370_v46, %v2187_v50  ;;  %v2190_v54 = vmul.f32 %v8293_v63, %v2176_v39  ;;  %v2217_v48 = vsel %vm87_vm0, %v8352_v2, 0.0 }
 0xd79   :  { %v2188_v29 = vmul.f32 %v8293_v63, %v2168_v8  ;;  %v8357_v5 = vadd.f32 %v7373_v11, %v2190_v54  ;;  %v2211_v3 = vsel %vm87_vm0, %v8338_v21, 0.0  ;;  %v8416_v54 = vld [vmem:[%s9879_s0 + $0x48] sm:$0xff] }
 0xd7a   :  { %2209 = vadd.xlane.f32.xlu0 %v2208_v23  ;;  %v2948_v33 = vsel %vm87_vm0, %v8416_v54, 0.0 }
 0xd7b   :  { %v8347_v14 = vadd.f32 %v7371_v51, %v2188_v29  ;;  %v2220_v32 = vsel %vm87_vm0, %v8357_v5, 0.0  ;;  %v8421_v29 = vld [vmem:[%s9879_s0 + $0x40] sm:$0xff] }
 0xd7c   :  { %v2945_v11 = vsel %vm87_vm0, %v8421_v29, 0.0 }
 0xd7d   :  { %v2214_v30 = vsel %vm87_vm0, %v8347_v14, 0.0 }
 0xd7e   :  { %2215 = vadd.xlane.f32.xlu1 %v2214_v30  ;;  %2212 = vadd.xlane.f32.xlu0 %v2211_v3  ;;  %v8432_v30 = vld [vmem:[%s9879_s0 + $0x58] sm:$0xff]  ;;  %v8437_v3 = vld [vmem:[%s9879_s0 + $0x50] sm:$0xff] }
 0xd82   :  { %2221 = vadd.xlane.f32.xlu1 %v2220_v32  ;;  %2218 = vadd.xlane.f32.xlu0 %v2217_v48  ;;  %v2954_v32 = vsel %vm87_vm0, %v8432_v30, 0.0  ;;  %v2951_v48 = vsel %vm87_vm0, %v8437_v3, 0.0 }
 0xdfb   :  { %v2201_v61 = vpop.xlane.xlu0 %2200 }
 0xdfc   :  { %v2223_v27 = vmul.f32 0.03125, %v2201_v61  ;;  %v8446_v61 = vld [vmem:[%s9879_s0 + $0x68] sm:$0xff] }
 0xdfe   :  { %v8368_v4 = vsub.f32 %v8303_v6, %v2223_v27  ;;  %v8451_v27 = vld [vmem:[%s9879_s0 + $0x60] sm:$0xff] }
 0xdff   :  { %v2204_v55 = vpop.xlane.xlu1 %2203  ;;  %v2207_v62 = vpop.xlane.xlu0 %2206 }
 0xe00   :  { %v2224_v31 = vmul.f32 0.03125, %v2204_v55  ;;  %v2225_v20 = vmul.f32 0.03125, %v2207_v62  ;;  %v2239_v36 = vmul.f32 %v8368_v4, %v8368_v4  ;;  %v2960_v55 = vsel %vm87_vm0, %v8446_v61, 0.0 }
 0xe01   :  { %v2957_v62 = vsel %vm87_vm0, %v8451_v27, 0.0 }
 0xe02   :  { %v8373_v57 = vsub.f32 %v8318_v16, %v2224_v31  ;;  %v8376_v9 = vsub.f32 %v8309_v19, %v2225_v20  ;;  %v2247_v1 = vsel %vm87_vm0, %v2239_v36, 0.0  ;;  %v8460_v31 = vld [vmem:[%s9879_s0 + $0x78] sm:$0xff]  ;;  %v8465_v20 = vld [vmem:[%s9879_s0 + $0x70] sm:$0xff] }
 0xe03   :  { %2248 = vadd.xlane.f32.xlu0 %v2247_v1  ;;  %v2210_v41 = vpop.xlane.xlu0 %2209  ;;  %v2966_v36 = vsel %vm87_vm0, %v8460_v31, 0.0  ;;  %v2963_v1 = vsel %vm87_vm0, %v8465_v20, 0.0 }
 0xe04   :  { %v2226_v56 = vmul.f32 0.03125, %v2210_v41  ;;  %v2240_v47 = vmul.f32 %v8373_v57, %v8373_v57  ;;  %v2241_v13 = vmul.f32 %v8376_v9, %v8376_v9  ;;  %v6961_v41 = vld [vmem:[%s9881_s2 + $0x28] sm:$0xff]  }
 0xe05   :  { %6429 = vmatprep.subr.bf16.mxu0 %v6961_v41 }
 0xe06   :  { %v8384_v15 = vsub.f32 %v8327_v17, %v2226_v56  ;;  %v2250_v37 = vsel %vm87_vm0, %v2240_v47, 0.0  ;;  %v2253_v42 = vsel %vm87_vm0, %v2241_v13, 0.0  ;;  %6430 = vmatpush3.bf16.msra.mxu0 %v6961_v41  ;;  %v6962_v56 = vld [vmem:[%s9881_s2 + $0x20] sm:$0xff]   ;;  %v8480_v47 = vld [vmem:[%s9881_s2 + $0x38] sm:$0xff]  }
 0xe07   :  { %2251 = vadd.xlane.f32.xlu1 %v2250_v37  ;;  %v2216_v7 = vpop.xlane.xlu1 %2215  ;;  %2254 = vadd.xlane.f32.xlu0 %v2253_v42  ;;  %v2213_v35 = vpop.xlane.xlu0 %2212 }
 0xe08   :  { %v2228_v49 = vmul.f32 0.03125, %v2216_v7  ;;  %v2227_v18 = vmul.f32 0.03125, %v2213_v35  ;;  %v2242_v58 = vmul.f32 %v8384_v15, %v8384_v15  ;;  %6431 = vmatprep.subr.bf16.mxu0 %v6962_v56 }
 0xe0a   :  { %v8391_v22 = vsub.f32 %v8347_v14, %v2228_v49  ;;  %v8394_v59 = vsub.f32 %v8338_v21, %v2227_v18  ;;  %v2256_v45 = vsel %vm87_vm0, %v2242_v58, 0.0  ;;  %6432 = vmatpush3.bf16.msra.mxu0 %v6962_v56  ;;  %v2317_v56 = vsub.s32 5, %v7547_v10 }
 0xe0b   :  { %v2222_v24 = vpop.xlane.xlu1 %2221  ;;  %2257 = vadd.xlane.f32.xlu1 %v2256_v45  ;;  %v2219_v38 = vpop.xlane.xlu0 %2218  ;;  %6465 = vmatprep.subr.bf16.mxu0 %v8480_v47 }
 0xe0c   :  { %v2230_v53 = vmul.f32 0.03125, %v2222_v24  ;;  %v2229_v44 = vmul.f32 0.03125, %v2219_v38  ;;  %v2244_v12 = vmul.f32 %v8391_v22, %v8391_v22  ;;  %v2243_v50 = vmul.f32 %v8394_v59, %v8394_v59 }
 0xe0e   :  { %v8402_v39 = vsub.f32 %v8357_v5, %v2230_v53  ;;  %v8405_v28 = vsub.f32 %v8352_v2, %v2229_v44  ;;  %v2262_v60 = vsel %vm87_vm0, %v2244_v12, 0.0  ;;  %v2259_v8 = vsel %vm87_vm0, %v2243_v50, 0.0 }
 0xe0f   :  { %2263 = vadd.xlane.f32.xlu1 %v2262_v60  ;;  %2260 = vadd.xlane.f32.xlu0 %v2259_v8 }
 0xe10   :  { %v2246_v52 = vmul.f32 %v8402_v39, %v8402_v39  ;;  %v2245_v46 = vmul.f32 %v8405_v28, %v8405_v28 }
 0xe12   :  { %v2268_v23 = vsel %vm87_vm0, %v2246_v52, 0.0  ;;  %v2265_v51 = vsel %vm87_vm0, %v2245_v46, 0.0  ;;  %v2305_v46 = vsub.s32 4, %v7547_v10 }
 0xe13   :  { %2269 = vadd.xlane.f32.xlu1 %v2268_v23  ;;  %2266 = vadd.xlane.f32.xlu0 %v2265_v51 }
 0xe17   :  { %2949 = vadd.xlane.f32.xlu1 %v2948_v33  ;;  %2946 = vadd.xlane.f32.xlu0 %v2945_v11 }
 0xe1b   :  { %2955 = vadd.xlane.f32.xlu1 %v2954_v32  ;;  %2952 = vadd.xlane.f32.xlu0 %v2951_v48 }
 0xe1f   :  { %2961 = vadd.xlane.f32.xlu1 %v2960_v55  ;;  %2958 = vadd.xlane.f32.xlu0 %v2957_v62  ;;  %v8487_v62 = vrot.slane %v8283_v25, %v2305_v46 }
 0xe23   :  { %2967 = vadd.xlane.f32.xlu1 %v2966_v36  ;;  %2964 = vadd.xlane.f32.xlu0 %v2963_v1 }
 0xe8c   :  { %v2249_v13 = vpop.xlane.xlu0 %2248 }
 0xe8d   :  { %v2271_v37 = vmul.f32 0.03125, %v2249_v13 }
 0xe8f   :  { %v2279_v42 = vadd.f32 1e-05, %v2271_v37 }
 0xe90   :  { %v2252_v7 = vpop.xlane.xlu1 %2251  ;;  %v2255_v35 = vpop.xlane.xlu0 %2254 }
 0xe91   :  { %7125 = vrsqrt.f32 %v2279_v42  ;;  %v2272_v49 = vmul.f32 0.03125, %v2252_v7  ;;  %v2273_v18 = vmul.f32 0.03125, %v2255_v35 }
 0xe93   :  { %v2280_v58 = vadd.f32 1e-05, %v2272_v49  ;;  %v2281_v45 = vadd.f32 1e-05, %v2273_v18 }
 0xe94   :  { %v2258_v24 = vpop.xlane.xlu1 %2257 }
 0xe95   :  { %7127 = vrsqrt.f32 %v2280_v58  ;;  %v2274_v38 = vmul.f32 0.03125, %v2258_v24  ;;  %v2587_v58 = vsub.s32 7, %v7547_v10 }
 0xe96   :  { %7129 = vrsqrt.f32 %v2281_v45 }
 0xe97   :  { %v2282_v53 = vadd.f32 1e-05, %v2274_v38 }
 0xe98   :  { %v2264_v44 = vpop.xlane.xlu1 %2263  ;;  %v2261_v12 = vpop.xlane.xlu0 %2260 }
 0xe99   :  { %7131 = vrsqrt.f32 %v2282_v53  ;;  %v2276_v50 = vmul.f32 0.03125, %v2264_v44  ;;  %v2275_v60 = vmul.f32 0.03125, %v2261_v12  ;;  %v8504_v53 = vrot.slane %v8283_v25, %v2317_v56 }
 0xe9b   :  { %v2284_v8 = vadd.f32 1e-05, %v2276_v50  ;;  %v2283_v52 = vadd.f32 1e-05, %v2275_v60  ;;  %v8513_v60 = vld [vmem:[#allocation2 + $0x8] sm:$0x1f] }
 0xe9c   :  { %v2270_v23 = vpop.xlane.xlu1 %2269  ;;  %v2267_v51 = vpop.xlane.xlu0 %2266 }
 0xe9d   :  { %7133 = vrsqrt.f32 %v2284_v8  ;;  %v2278_v33 = vmul.f32 0.03125, %v2270_v23  ;;  %v2277_v11 = vmul.f32 0.03125, %v2267_v51 }
 0xe9e   :  { %v7126_v32 = vpop.eup %7125  ;;  %7135 = vrsqrt.f32 %v2283_v52 }
 0xe9f   :  { %v2286_v48 = vadd.f32 1e-05, %v2278_v33  ;;  %v2285_v55 = vadd.f32 1e-05, %v2277_v11  ;;  %v2295_v41 = vmul.f32 %v7126_v32, %v8368_v4  ;;  %v8526_v33 = vrot.slane %v8283_v25, %v2587_v58 }
 0xea0   :  { %v2950_v36 = vpop.xlane.xlu1 %2949  ;;  %v2947_v1 = vpop.xlane.xlu0 %2946 }
 0xea1   :  { %7137 = vrsqrt.f32 %v2286_v48  ;;  %v2970_v13 = vmul.f32 0.03125, %v2950_v36  ;;  %v2969_v37 = vmul.f32 0.03125, %v2947_v1  ;;  %v2307_v38 = vmul.f32 %v8487_v62, %v2295_v41  ;;  %9902 = vst [vmem:[#allocation5_spill] sm:$0xff] %v8526_v33 }
 0xea2   :  { %v7128_v42 = vpop.eup %7127  ;;  %7139 = vrsqrt.f32 %v2285_v55  ;;  %v9903_v1 = vsub.s32 0, %v7547_v10 }
 0xea3   :  { %v7130_v7 = vpop.eup %7129  ;;  %v8492_v35 = vsub.f32 %v8416_v54, %v2970_v13  ;;  %v8495_v49 = vsub.f32 %v8421_v29, %v2969_v37  ;;  %v2296_v18 = vmul.f32 %v7128_v42, %v8373_v57  ;;  %v2319_v55 = vadd.f32 %v8504_v53, %v2307_v38 }
 0xea4   :  { %v8500_v4 = vmul.f32 %v7130_v7, %v8376_v9  ;;  %v2956_v45 = vpop.xlane.xlu1 %2955  ;;  %v2953_v24 = vpop.xlane.xlu0 %2952  ;;  %v8536_v25 = vrot.slane %v8513_v60, %v9903_v1 }
 0xea5   :  { %v2972_v44 = vmul.f32 0.03125, %v2956_v45  ;;  %v2971_v54 = vmul.f32 0.03125, %v2953_v24  ;;  %v2986_v29 = vmul.f32 %v8492_v35, %v8492_v35  ;;  %v2985_v57 = vmul.f32 %v8495_v49, %v8495_v49 }
 0xea6   :  { %v7132_v12 = vpop.eup %7131  ;;  %v2309_v9 = vmul.f32 %v8487_v62, %v8500_v4  ;;  %v2308_v50 = vmul.f32 %v8487_v62, %v2296_v18  ;;  %9904 = vst [vmem:[#allocation6_spill] sm:$0xff] %v8536_v25 }
 0xea7   :  { %v8516_v8 = vmul.f32 %v7132_v12, %v8384_v15  ;;  %v8519_v52 = vsub.f32 %v8432_v30, %v2972_v44  ;;  %v8522_v23 = vsub.f32 %v8437_v3, %v2971_v54  ;;  %v2996_v51 = vsel %vm87_vm0, %v2986_v29, 0.0 }
 0xea8   :  { %2997 = vadd.xlane.f32.xlu1 %v2996_v51  ;;  %v2962_v11 = vpop.xlane.xlu1 %2961  ;;  %v2993_v32 = vsel %vm87_vm0, %v2985_v57, 0.0  ;;  %v2959_v48 = vpop.xlane.xlu0 %2958  ;;  %v2320_v15 = vadd.f32 %v8504_v53, %v2308_v50  ;;  %v2321_v7 = vadd.f32 %v8504_v53, %v2309_v9 }
 0xea9   :  { %v2310_v30 = vmul.f32 %v8487_v62, %v8516_v8  ;;  %v2974_v36 = vmul.f32 0.03125, %v2962_v11  ;;  %2994 = vadd.xlane.f32.xlu0 %v2993_v32  ;;  %v2973_v3 = vmul.f32 0.03125, %v2959_v48  ;;  %v2988_v37 = vmul.f32 %v8519_v52, %v8519_v52 }
 0xeaa   :  { %v7134_v56 = vpop.eup %7133  ;;  %v2327_v13 = vpack.c.bf16 %v2320_v15, %v2319_v55  ;;  %v2987_v42 = vmul.f32 %v8522_v23, %v8522_v23 }
 0xeab   :  { %v7136_v58 = vpop.eup %7135  ;;  %v8544_v45 = vsub.f32 %v8446_v61, %v2974_v36  ;;  %v8547_v24 = vsub.f32 %v8451_v27, %v2973_v3  ;;  %v2322_v38 = vadd.f32 %v8504_v53, %v2310_v30  ;;  %v2300_v44 = vmul.f32 %v7134_v56, %v8391_v22 }
 0xeac   :  { %6433 = vmatprep.mubr.msk.bf16.mxu0 %vm87_vm0, %v2327_v13  ;;  %v3002_v54 = vsel %vm87_vm0, %v2988_v37, 0.0  ;;  %v2968_v29 = vpop.xlane.xlu1 %2967  ;;  %v2999_v57 = vsel %vm87_vm0, %v2987_v42, 0.0  ;;  %v2965_v12 = vpop.xlane.xlu0 %2964  ;;  %v2299_v9 = vmul.f32 %v7136_v58, %v8394_v59  ;;  %v2589_v61 = vmul.f32 %v8526_v33, %v2295_v41  ;;  %v6964_v41 = vld [vmem:[%s9881_s2 + $0x30] sm:$0xff]  }
 0xead   :  { %3003 = vadd.xlane.f32.xlu1 %v3002_v54  ;;  %v2976_v50 = vmul.f32 0.03125, %v2968_v29  ;;  %3000 = vadd.xlane.f32.xlu0 %v2999_v57  ;;  %v2975_v27 = vmul.f32 0.03125, %v2965_v12  ;;  %v2328_v51 = vpack.c.bf16 %v2322_v38, %v2321_v7  ;;  %v2990_v22 = vmul.f32 %v8544_v45, %v8544_v45 }
 0xeae   :  { %v7138_v11 = vpop.eup %7137  ;;  %v2989_v32 = vmul.f32 %v8547_v24, %v8547_v24  ;;  %v2311_v48 = vmul.f32 %v8487_v62, %v2299_v9  ;;  %v2312_v55 = vmul.f32 %v8487_v62, %v2300_v44  ;;  %v2590_v59 = vmul.f32 %v8526_v33, %v2296_v18 }
 0xeaf   :  { %v7140_v15 = vpop.eup %7139  ;;  %v8567_v30 = vsub.f32 %v8460_v31, %v2976_v50  ;;  %v8570_v36 = vsub.f32 %v8465_v20, %v2975_v27  ;;  %6434 = vmatmul.mubr.msk.bf16.vlgmr.msra.gmra.mxu0 %vm87_vm0, %v2328_v51  ;;  %v3008_v3 = vsel %vm87_vm0, %v2990_v22, 0.0  ;;  %v2302_v1 = vmul.f32 %v7138_v11, %v8402_v39 }
 0xeb0   :  { %v3005_v56 = vsel %vm87_vm0, %v2989_v32, 0.0  ;;  %v2323_v18 = vadd.f32 %v8504_v53, %v2311_v48  ;;  %v2324_v13 = vadd.f32 %v8504_v53, %v2312_v55  ;;  %v2301_v37 = vmul.f32 %v7140_v15, %v8405_v28  ;;  %6466 = vmatpush3.bf16.msra.mxu0 %v8480_v47  ;;  %v6965_v15 = vld [vmem:[%s9881_s2 + $0x78] sm:$0xff]  }
 0xeb1   :  { %3009 = vadd.xlane.f32.xlu1 %v3008_v3  ;;  %3006 = vadd.xlane.f32.xlu0 %v3005_v56  ;;  %v2992_v31 = vmul.f32 %v8567_v30, %v8567_v30  ;;  %v2991_v20 = vmul.f32 %v8570_v36, %v8570_v36  ;;  %v2314_v39 = vmul.f32 %v8487_v62, %v2302_v1  ;;  %v6966_v3 = vld [vmem:[%s9881_s2 + $0x70] sm:$0xff]   ;;  %v6968_v56 = vld [vmem:[%s9881_s2 + $0x60] sm:$0xff]  }
 0xeb2   :  { %v2329_v42 = vpack.c.bf16 %v2324_v13, %v2323_v18  ;;  %v2313_v7 = vmul.f32 %v8487_v62, %v2301_v37  ;;  %6467 = vmatprep.subr.bf16.mxu0 %v6964_v41  ;;  %v2602_v38 = vadd.f32 %v8536_v25, %v2590_v59  ;;  %v2601_v29 = vadd.f32 %v8536_v25, %v2589_v61  ;;  %v6969_v18 = vld [vmem:[%s9881_s2 + $0x58] sm:$0xff]  }
 0xeb3   :  { %v3014_v58 = vsel %vm87_vm0, %v2992_v31, 0.0  ;;  %v3011_v28 = vsel %vm87_vm0, %v2991_v20, 0.0  ;;  %v2326_v47 = vadd.f32 %v8504_v53, %v2314_v39  ;;  %v2592_v57 = vmul.f32 %v8526_v33, %v8516_v8  ;;  %6441 = vmatprep.subr.bf16.mxu1 %v6965_v15  ;;  %v6970_v13 = vld [vmem:[%s9881_s2 + $0xb8] sm:$0xff]   ;;  %v6972_v31 = vld [vmem:[%s9881_s2 + $0xb0] sm:$0xff]   ;;  %v6973_v20 = vld [vmem:[%s9881_s2 + $0x48] sm:$0xff]  }
 0xeb4   :  { %6437 = vmatprep.mubr.msk.bf16.mxu0 %vm87_vm0, %v2329_v42  ;;  %v2325_v54 = vadd.f32 %v8504_v53, %v2313_v7  ;;  %6468 = vmatpush3.bf16.msra.mxu0 %v6964_v41  ;;  %v2609_v50 = vpack.c.bf16 %v2602_v38, %v2601_v29  ;;  %v2593_v27 = vmul.f32 %v8526_v33, %v2299_v9  ;;  %v6974_v39 = vld [vmem:[%s9881_s2 + $0xa8] sm:$0xff]   ;;  %v6975_v42 = vld [vmem:[%s9881_s2 + $0x40] sm:$0xff]  }
 0xeb5   :  { %3015 = vadd.xlane.f32.xlu1 %v3014_v58  ;;  %3012 = vadd.xlane.f32.xlu0 %v3011_v28  ;;  %v2594_v51 = vmul.f32 %v8526_v33, %v2300_v44  ;;  %v2591_v22 = vmul.f32 %v8526_v33, %v8500_v4  ;;  %v2604_v11 = vadd.f32 %v8536_v25, %v2592_v57  ;;  %v6976_v7 = vld [vmem:[%s9881_s2 + $0xa0] sm:$0xff]   ;;  %v6977_v58 = vld [vmem:[%s9881_s2 + $0x98] sm:$0xff]   ;;  %v8654_v28 = vld [vmem:[%s9881_s2 + $0x8] sm:$0xff]  }
 0xeb6   :  { %v2330_v12 = vpack.c.bf16 %v2326_v47, %v2325_v54  ;;  %v2605_v61 = vadd.f32 %v8536_v25, %v2593_v27  ;;  %v2595_v9 = vmul.f32 %v8526_v33, %v2301_v37  ;;  %v2596_v44 = vmul.f32 %v8526_v33, %v2302_v1  ;;  %6442 = vmatpush3.bf16.msra.mxu1 %v6965_v15  ;;  %v6967_v1 = vld [vmem:[%s9881_s2 + $0x68] sm:$0xff]   ;;  %v6971_v37 = vld [vmem:[%s9881_s2 + $0x50] sm:$0xff]   ;;  %v6980_v54 = vld [vmem:[%s9881_s2 + $0x80] sm:$0xff]  }
 0xeb7   :  { %v2606_v32 = vadd.f32 %v8536_v25, %v2594_v51  ;;  %v2603_v8 = vadd.f32 %v8536_v25, %v2591_v22  ;;  %6443 = vmatprep.subr.bf16.mxu1 %v6966_v3  ;;  %6477 = vmatprep.subr.bf16.mxu0 %v6970_v13  ;;  %v6978_v47 = vld [vmem:[%s9881_s2 + $0x90] sm:$0xff]   ;;  %v6979_v38 = vld [vmem:[%s9881_s2 + $0x88] sm:$0xff]   ;;  %v8669_v27 = vrot.slane %v8513_v60, %v2181_v43 }
 0xeb8   :  { %6438 = vmatmul.mubr.msk.bf16.gmra.mxu0 %vm87_vm0, %v2330_v12  ;;  %v2607_v4 = vadd.f32 %v8536_v25, %v2595_v9  ;;  %v2608_v59 = vadd.f32 %v8536_v25, %v2596_v44 }
 0xeb9   :  { %6469 = vmatprep.mubr.msk.bf16.mxu0 %vm87_vm0, %v2609_v50  ;;  %v2610_v48 = vpack.c.bf16 %v2604_v11, %v2603_v8  ;;  %v2611_v55 = vpack.c.bf16 %v2606_v32, %v2605_v61  ;;  %9905 = vst [vmem:[#allocation7_spill] sm:$0xff] %v8669_v27 }
 0xeba   :  { %v2612_v41 = vpack.c.bf16 %v2608_v59, %v2607_v4  ;;  %6444 = vmatpush3.bf16.msra.mxu1 %v6966_v3 }
 0xebb   :  { %6445 = vmatprep.subr.bf16.mxu1 %v6967_v1 }
 0xebe   :  { %6446 = vmatpush3.bf16.msra.mxu1 %v6967_v1 }
 0xebf   :  { %6447 = vmatprep.subr.bf16.mxu1 %v6968_v56 }
 0xec0   :  { %6470 = vmatmul.mubr.msk.bf16.vlgmr.msra.gmra.mxu0 %vm87_vm0, %v2610_v48 }
 0xec1   :  { %6473 = vmatprep.mubr.msk.bf16.mxu0 %vm87_vm0, %v2611_v55  ;;  %6478 = vmatpush3.bf16.msra.mxu0 %v6970_v13 }
 0xec2   :  { %6448 = vmatpush3.bf16.msra.mxu1 %v6968_v56  ;;  %6479 = vmatprep.subr.bf16.mxu0 %v6972_v31 }
 0xec3   :  { %6449 = vmatprep.subr.bf16.mxu1 %v6969_v18 }
 0xec5   :  { %6480 = vmatpush3.bf16.msra.mxu0 %v6972_v31 }
 0xec6   :  { %6450 = vmatpush3.bf16.msra.mxu1 %v6969_v18  ;;  %6481 = vmatprep.subr.bf16.mxu0 %v6974_v39 }
 0xec7   :  { %6451 = vmatprep.subr.bf16.mxu1 %v6971_v37 }
 0xec8   :  { %6474 = vmatmul.mubr.msk.bf16.gmra.mxu0 %vm87_vm0, %v2612_v41 }
 0xec9   :  { %6482 = vmatpush3.bf16.msra.mxu0 %v6974_v39 }
 0xeca   :  { %6452 = vmatpush3.bf16.msra.mxu1 %v6971_v37  ;;  %6483 = vmatprep.subr.bf16.mxu0 %v6976_v7 }
 0xecb   :  { %6453 = vmatprep.subr.bf16.mxu1 %v6973_v20 }
 0xecd   :  { %6484 = vmatpush3.bf16.msra.mxu0 %v6976_v7 }
 0xece   :  { %6454 = vmatpush3.bf16.msra.mxu1 %v6973_v20  ;;  %6485 = vmatprep.subr.bf16.mxu0 %v6977_v58 }
 0xecf   :  { %6455 = vmatprep.subr.bf16.mxu1 %v6975_v42 }
 0xed1   :  { %6486 = vmatpush3.bf16.msra.mxu0 %v6977_v58 }
 0xed2   :  { %6456 = vmatpush3.bf16.msra.mxu1 %v6975_v42  ;;  %6487 = vmatprep.subr.bf16.mxu0 %v6978_v47 }
 0xed3   :  { %6501 = vmatprep.subr.bf16.mxu1 %v8654_v28 }
 0xed5   :  { %6488 = vmatpush3.bf16.msra.mxu0 %v6978_v47 }
 0xed6   :  { %6489 = vmatprep.subr.bf16.mxu0 %v6979_v38 }
 0xed9   :  { %6490 = vmatpush3.bf16.msra.mxu0 %v6979_v38 }
 0xeda   :  { %6491 = vmatprep.subr.bf16.mxu0 %v6980_v54 }
 0xedd   :  { %6492 = vmatpush3.bf16.msra.mxu0 %v6980_v54 }
 0xf31   :  { %v2998_v29 = vpop.xlane.xlu1 %2997 }
 0xf32   :  { %v2995_v57 = vpop.xlane.xlu0 %2994  ;;  %v3018_v50 = vmul.f32 0.03125, %v2998_v29 }
 0xf33   :  { %v3017_v51 = vmul.f32 0.03125, %v2995_v57 }
 0xf34   :  { %v3026_v61 = vadd.f32 1e-05, %v3018_v50 }
 0xf35   :  { %v3025_v8 = vadd.f32 1e-05, %v3017_v51 }
 0xf36   :  { %v3004_v12 = vpop.xlane.xlu1 %3003  ;;  %v3001_v22 = vpop.xlane.xlu0 %3000  ;;  %7141 = vrsqrt.f32 %v3026_v61 }
 0xf37   :  { %v3020_v55 = vmul.f32 0.03125, %v3004_v12  ;;  %v3019_v43 = vmul.f32 0.03125, %v3001_v22  ;;  %7143 = vrsqrt.f32 %v3025_v8  ;;  %v8698_v8 = vrot.slane %v8513_v60, %v2305_v46 }
 0xf39   :  { %v3028_v31 = vadd.f32 1e-05, %v3020_v55  ;;  %v3027_v39 = vadd.f32 1e-05, %v3019_v43  ;;  %9906 = vst [vmem:[#allocation8_spill] sm:$0xff] %v8698_v8 }
 0xf3a   :  { %v3010_v48 = vpop.xlane.xlu1 %3009  ;;  %v3007_v4 = vpop.xlane.xlu0 %3006 }
 0xf3b   :  { %v3022_v1 = vmul.f32 0.03125, %v3010_v48  ;;  %v3021_v18 = vmul.f32 0.03125, %v3007_v4 }
 0xf3d   :  { %v3030_v58 = vadd.f32 1e-05, %v3022_v1  ;;  %v3029_v54 = vadd.f32 1e-05, %v3021_v18 }
 0xf3e   :  { %v3016_v20 = vpop.xlane.xlu1 %3015  ;;  %v3013_v47 = vpop.xlane.xlu0 %3012 }
 0xf3f   :  { %v3024_v29 = vmul.f32 0.03125, %v3016_v20  ;;  %v3023_v50 = vmul.f32 0.03125, %v3013_v47 }
 0xf41   :  { %v3032_v48 = vadd.f32 1e-05, %v3024_v29 }
 0xf43   :  { %v7142_v43 = vpop.eup %7141 }
 0xf44   :  { %v7144_v46 = vpop.eup %7143 }
 0xf45   :  { %v3041_v47 = vmul.f32 %v7144_v46, %v8495_v49 }
 0xf6f   :  { %v6435_v11 = vpop.f32.mrf.mxu0 }
 0xf70   :  { %v8672_v32 = vadd.f32 %v6435_v11, %v8669_v27 }
 0xf71   :  { %v2393_v9 = vpop.f32.mrf.mxu0 }
 0xf72   :  { %v8675_v44 = vadd.f32 %v2393_v9, %v8669_v27  ;;  %v2434_v59 = vmul.f32 0.70710677, %v8672_v32  ;;  %v2426_v29 = vmul.f32 0.5, %v8672_v32 }
 0xf73   :  { %v6436_v41 = vpop.f32.mrf.mxu0 }
 0xf74   :  { %v2432_v15 = vmul.f32 0.70710677, %v8675_v44  ;;  %v2405_v3 = vadd.f32 %v6436_v41, %v8669_v27 }
 0xf75   :  { %v2396_v56 = vpop.f32.mrf.mxu0 }
 0xf76   :  { %7145 = verf.f32 %v2432_v15  ;;  %v2435_v13 = vmul.f32 0.70710677, %v2405_v3  ;;  %v8681_v37 = vadd.f32 %v2396_v56, %v8669_v27 }
 0xf77   :  { %7147 = verf.f32 %v2434_v59  ;;  %v3031_v59 = vadd.f32 1e-05, %v3023_v50  ;;  %v2427_v50 = vmul.f32 0.5, %v2405_v3 }
 0xf78   :  { %7149 = verf.f32 %v2435_v13  ;;  %v2433_v42 = vmul.f32 0.70710677, %v8681_v37  ;;  %v6439_v7 = vpop.f32.mrf.mxu0  ;;  %v2425_v49 = vmul.f32 0.5, %v8681_v37 }
 0xf79   :  { %v8685_v38 = vadd.f32 %v6439_v7, %v8669_v27 }
 0xf7a   :  { %7151 = verf.f32 %v2433_v42  ;;  %v2409_v57 = vpop.f32.mrf.mxu0 }
 0xf7b   :  { %7153 = vrsqrt.f32 %v3028_v31  ;;  %v8688_v12 = vadd.f32 %v2409_v57, %v8669_v27  ;;  %v2438_v51 = vmul.f32 0.70710677, %v8685_v38 }
 0xf7c   :  { %7155 = vrsqrt.f32 %v3027_v39  ;;  %v6440_v22 = vpop.f32.mrf.mxu0 }
 0xf7d   :  { %7157 = vrsqrt.f32 %v3030_v58  ;;  %v2436_v11 = vmul.f32 0.70710677, %v8688_v12  ;;  %v8693_v61 = vadd.f32 %v6440_v22, %v8669_v27 }
 0xf7e   :  { %7159 = vrsqrt.f32 %v3029_v54  ;;  %v2412_v9 = vpop.f32.mrf.mxu0  ;;  %v3042_v54 = vmul.f32 %v7142_v43, %v8492_v35 }
 0xf7f   :  { %7161 = verf.f32 %v2436_v11  ;;  %v2439_v55 = vmul.f32 0.70710677, %v8693_v61  ;;  %v8702_v4 = vadd.f32 %v2412_v9, %v8669_v27 }
 0xf80   :  { %7163 = verf.f32 %v2438_v51  ;;  %v6471_v41 = vpop.f32.mrf.mxu0 }
 0xf81   :  { %7165 = verf.f32 %v2439_v55  ;;  %v2437_v15 = vmul.f32 0.70710677, %v8702_v4  ;;  %v8706_v1 = vadd.f32 %v6471_v41, %v8698_v8  ;;  %v2424_v41 = vmul.f32 0.5, %v8675_v44 }
 0xf82   :  { %7167 = vrsqrt.f32 %v3032_v48  ;;  %v2675_v56 = vpop.f32.mrf.mxu0  ;;  %v3050_v44 = vmul.f32 %v3042_v54, %v7553_v26 }
 0xf83   :  { %v7146_v18 = vpop.eup %7145  ;;  %7169 = verf.f32 %v2437_v15  ;;  %v8709_v13 = vadd.f32 %v2675_v56, %v8698_v8  ;;  %v2716_v20 = vmul.f32 0.70710677, %v8706_v1 }
 0xf84   :  { %v7148_v31 = vpop.eup %7147  ;;  %7171 = vrsqrt.f32 %v3031_v59  ;;  %v6472_v39 = vpop.f32.mrf.mxu0  ;;  %v2448_v57 = vadd.f32 1.0, %v7146_v18 }
 0xf85   :  { %v7150_v42 = vpop.eup %7149  ;;  %v2714_v7 = vmul.f32 0.70710677, %v8709_v13  ;;  %v8714_v58 = vadd.f32 %v6472_v39, %v8698_v8  ;;  %v2450_v48 = vadd.f32 1.0, %v7148_v31 }
 0xf86   :  { %v2451_v51 = vadd.f32 1.0, %v7150_v42  ;;  %v2678_v22 = vpop.f32.mrf.mxu0  ;;  %v2456_v18 = vmul.f32 %v2448_v57, %v2424_v41  ;;  %v3049_v42 = vmul.f32 %v3041_v47, %v7553_v26 }
 0xf87   :  { %v7152_v11 = vpop.eup %7151  ;;  %7173 = verf.f32 %v2714_v7  ;;  %v2717_v9 = vmul.f32 0.70710677, %v8714_v58  ;;  %v8721_v55 = vadd.f32 %v2678_v22, %v8698_v8  ;;  %v2458_v7 = vmul.f32 %v2450_v48, %v2426_v29 }
 0xf88   :  { %v7154_v59 = vpop.eup %7153  ;;  %v2449_v35 = vadd.f32 1.0, %v7152_v11  ;;  %7175 = verf.f32 %v2716_v20  ;;  %v6475_v32 = vpop.f32.mrf.mxu0  ;;  %v2459_v3 = vmul.f32 %v2451_v51, %v2427_v50  ;;  %v3057_v48 = vadd.f32 %v3049_v42, %v7560_v34 }
 0xf89   :  { %v7156_v43 = vpop.eup %7155  ;;  %7177 = verf.f32 %v2717_v9  ;;  %v2715_v15 = vmul.f32 0.70710677, %v8721_v55  ;;  %v8727_v46 = vadd.f32 %v6475_v32, %v8698_v8  ;;  %v3044_v47 = vmul.f32 %v7154_v59, %v8519_v52 }
 0xf8a   :  { %v7158_v56 = vpop.eup %7157  ;;  %v2457_v31 = vmul.f32 %v2449_v35, %v2425_v49  ;;  %v2691_v39 = vpop.f32.mrf.mxu0  ;;  %v2465_v32 = vpack.c.bf16 %v2459_v3, %v2458_v7  ;;  %v3058_v49 = vadd.f32 %v3050_v44, %v7560_v34  ;;  %v2431_v7 = vmul.f32 0.5, %v8693_v61 }
 0xf8b   :  { %v7160_v37 = vpop.eup %7159  ;;  %7179 = verf.f32 %v2715_v15  ;;  %v2720_v20 = vmul.f32 0.70710677, %v8727_v46  ;;  %v8733_v51 = vadd.f32 %v2691_v39, %v8698_v8  ;;  %v2428_v42 = vmul.f32 0.5, %v8688_v12 }
 0xf8c   :  { %v7162_v50 = vpop.eup %7161  ;;  %v6476_v22 = vpop.f32.mrf.mxu0  ;;  %v2464_v11 = vpack.c.bf16 %v2457_v31, %v2456_v18  ;;  %v2429_v44 = vmul.f32 0.5, %v8702_v4  ;;  %v3043_v61 = vmul.f32 %v7156_v43, %v8522_v23  ;;  %v3045_v12 = vmul.f32 %v7160_v37, %v8547_v24 }
 0xf8d   :  { %v7164_v9 = vpop.eup %7163  ;;  %v8736_v57 = vadd.f32 %v6476_v22, %v8698_v8  ;;  %v2718_v54 = vmul.f32 0.70710677, %v8733_v51  ;;  %v2452_v15 = vadd.f32 1.0, %v7162_v50  ;;  %7181 = verf.f32 %v2720_v20  ;;  %v7375_v20 = vld [vmem:[%s9881_s2] sm:$0xff]  }
 0xf8e   :  { %v7166_v41 = vpop.eup %7165  ;;  %v2694_v29 = vpop.f32.mrf.mxu0  ;;  %6457 = vmatprep.mubr.bf16.mxu1 %v2464_v11  ;;  %v2454_v31 = vadd.f32 1.0, %v7164_v9  ;;  %v2430_v22 = vmul.f32 0.5, %v8685_v38  ;;  %v3046_v4 = vmul.f32 %v7158_v56, %v8544_v45  ;;  %v3051_v38 = vmul.f32 %v3043_v61, %v7553_v26 }
 0xf8f   :  { %v7168_v35 = vpop.eup %7167  ;;  %v2455_v39 = vadd.f32 1.0, %v7166_v41  ;;  %v2721_v3 = vmul.f32 0.70710677, %v8736_v57  ;;  %6458 = vmatmul.mubr.bf16.vlgmr.msra.gmra.mxu1 %v2465_v32  ;;  %7183 = verf.f32 %v2718_v54  ;;  %v8745_v52 = vadd.f32 %v2694_v29, %v8698_v8 }
 0xf90   :  { %v7170_v18 = vpop.eup %7169  ;;  %6502 = vmatpush3.bf16.msra.mxu1 %v8654_v28  ;;  %v2460_v28 = vmul.f32 %v2452_v15, %v2428_v42  ;;  %v3052_v54 = vmul.f32 %v3044_v47, %v7553_v26  ;;  %v2462_v29 = vmul.f32 %v2454_v31, %v2430_v22  ;;  %v3053_v24 = vmul.f32 %v3045_v12, %v7553_v26 }
 0xf91   :  { %v7172_v59 = vpop.eup %7171  ;;  %v2453_v50 = vadd.f32 1.0, %v7170_v18  ;;  %7185 = verf.f32 %v2721_v3  ;;  %6503 = vmatprep.subr.bf16.mxu1 %v7375_v20  ;;  %v2463_v11 = vmul.f32 %v2455_v39, %v2431_v7  ;;  %v2719_v9 = vmul.f32 0.70710677, %v8745_v52 }
 0xf92   :  { %v3065_v39 = vpack.c.bf16 %v3058_v49, %v3057_v48  ;;  %v3054_v45 = vmul.f32 %v3046_v4, %v7553_v26  ;;  %v2709_v47 = vmul.f32 0.5, %v8714_v58  ;;  %v3060_v31 = vadd.f32 %v3052_v54, %v7560_v34 }
 0xf93   :  { %v2461_v32 = vmul.f32 %v2453_v50, %v2429_v44  ;;  %7187 = verf.f32 %v2719_v9  ;;  %v2467_v43 = vpack.c.bf16 %v2463_v11, %v2462_v29  ;;  %v2706_v42 = vmul.f32 0.5, %v8709_v13 }
 0xf94   :  { %v7174_v41 = vpop.eup %7173  ;;  %6504 = vmatpush3.bf16.msra.mxu1 %v7375_v20  ;;  %v2707_v44 = vmul.f32 0.5, %v8721_v55  ;;  %v3048_v48 = vmul.f32 %v7168_v35, %v8567_v30  ;;  %v2708_v49 = vmul.f32 0.5, %v8706_v1  ;;  %v3059_v61 = vadd.f32 %v3051_v38, %v7560_v34 }
 0xf95   :  { %v7176_v3 = vpop.eup %7175  ;;  %v2466_v18 = vpack.c.bf16 %v2461_v32, %v2460_v28  ;;  %v2730_v7 = vadd.f32 1.0, %v7174_v41  ;;  %v3047_v22 = vmul.f32 %v7172_v59, %v8570_v36  ;;  %v3061_v9 = vadd.f32 %v3053_v24, %v7560_v34 }
 0xf96   :  { %v7178_v23 = vpop.eup %7177  ;;  %v2732_v37 = vadd.f32 1.0, %v7176_v3  ;;  %v3062_v13 = vadd.f32 %v3054_v45, %v7560_v34  ;;  %v3056_v4 = vmul.f32 %v3048_v48, %v7553_v26  ;;  %v3066_v1 = vpack.c.bf16 %v3060_v31, %v3059_v61  ;;  %v7376_v31 = vld [vmem:[#allocation2] sm:$0xff] }
 0xf97   :  { %v2733_v15 = vadd.f32 1.0, %v7178_v23  ;;  %6461 = vmatprep.mubr.bf16.mxu1 %v2466_v18  ;;  %v2738_v58 = vmul.f32 %v2730_v7, %v2706_v42  ;;  %v3055_v41 = vmul.f32 %v3047_v22, %v7553_v26  ;;  %v2713_v18 = vmul.f32 0.5, %v8736_v57 }
 0xf98   :  { %v7180_v56 = vpop.eup %7179  ;;  %6462 = vmatmul.mubr.bf16.gmra.mxu1 %v2467_v43  ;;  %v2740_v55 = vmul.f32 %v2732_v37, %v2708_v49  ;;  %v3067_v36 = vpack.c.bf16 %v3062_v13, %v3061_v9  ;;  %v3064_v23 = vadd.f32 %v3056_v4, %v7560_v34  ;;  %v2710_v38 = vmul.f32 0.5, %v8733_v51 }
 0xf99   :  { %v2731_v50 = vadd.f32 1.0, %v7180_v56  ;;  %6505 = vmatprep.mubr.msk.bf16.mxu1 %vm87_vm0, %v3065_v39  ;;  %v2741_v20 = vmul.f32 %v2733_v15, %v2709_v47  ;;  %v2711_v43 = vmul.f32 0.5, %v8745_v52  ;;  %v3063_v39 = vadd.f32 %v3055_v41, %v7560_v34 }
 0xf9a   :  { %v7182_v28 = vpop.eup %7181  ;;  %v2712_v7 = vmul.f32 0.5, %v8727_v46  ;;  %v2470_v51 = vsub.s32 6, %v7547_v10  ;;  %v8790_v34 = vrot.slane %v8513_v60, %v2088_v40 }
 0xf9b   :  { %v2739_v11 = vmul.f32 %v2731_v50, %v2707_v44  ;;  %v2747_v35 = vpack.c.bf16 %v2741_v20, %v2740_v55  ;;  %v2736_v3 = vadd.f32 1.0, %v7182_v28  ;;  %v3068_v47 = vpack.c.bf16 %v3064_v23, %v3063_v39 }
 0xf9c   :  { %v7184_v32 = vpop.eup %7183  ;;  %v8785_v52 = vrot.slane %v7376_v31, %v2470_v51  ;;  %9908 = vst [vmem:[#allocation10_spill] sm:$0xff] %v8790_v34 }
 0xf9d   :  { %v2746_v12 = vpack.c.bf16 %v2739_v11, %v2738_v58  ;;  %v2734_v59 = vadd.f32 1.0, %v7184_v32  ;;  %v2744_v56 = vmul.f32 %v2736_v3, %v2712_v7  ;;  %v9909_v3 = vsub.s32 1, %v7547_v10 }
 0xf9e   :  { %v7186_v30 = vpop.eup %7185  ;;  %9907 = vst [vmem:[#allocation9_spill] sm:$0xff] %v8785_v52 }
 0xf9f   :  { %v2737_v54 = vadd.f32 1.0, %v7186_v30  ;;  %6493 = vmatprep.mubr.bf16.mxu0 %v2746_v12  ;;  %v2742_v24 = vmul.f32 %v2734_v59, %v2710_v38 }
 0xfa0   :  { %6494 = vmatmul.mubr.bf16.vlgmr.msra.gmra.mxu0 %v2747_v35  ;;  %6506 = vmatmul.mubr.msk.bf16.vlgmr.msra.gmra.mxu1 %vm87_vm0, %v3066_v1  ;;  %v7188_v29 = vpop.eup %7187 }
 0xfa1   :  { %6509 = vmatprep.mubr.msk.bf16.mxu1 %vm87_vm0, %v3067_v36  ;;  %v2735_v26 = vadd.f32 1.0, %v7188_v29  ;;  %v2745_v15 = vmul.f32 %v2737_v54, %v2713_v18  ;;  %v8843_v18 = vrot.slane %v8513_v60, %v9909_v3 }
 0xfa3   :  { %v2743_v45 = vmul.f32 %v2735_v26, %v2711_v43  ;;  %v2749_v57 = vpack.c.bf16 %v2745_v15, %v2744_v56  ;;  %9910 = vst [vmem:[#allocation11_spill] sm:$0xff] %v8843_v18 }
 0xfa5   :  { %v2748_v37 = vpack.c.bf16 %v2743_v45, %v2742_v24 }
 0xfa7   :  { %6497 = vmatprep.mubr.bf16.mxu0 %v2748_v37 }
 0xfa8   :  { %6510 = vmatmul.mubr.msk.bf16.gmra.mxu1 %vm87_vm0, %v3068_v47  ;;  %6498 = vmatmul.mubr.bf16.gmra.mxu0 %v2749_v57 }
0x104f   :  { %v6459_v46 = vpop.f32.mrf.mxu1 }
0x1050   :  { %v2563_v42 = vadd.f32 %v6459_v46, %v8785_v52 }
0x1051   :  { %v2554_v44 = vpop.f32.mrf.mxu1 }
0x1052   :  { %v2914_v50 = vmul.f32 %v8790_v34, %v2563_v42  ;;  %v2555_v48 = vadd.f32 %v2554_v44, %v8785_v52 }
0x1053   :  { %v6460_v49 = vpop.f32.mrf.mxu1 }
0x1054   :  { %v2922_v20 = vadd.f32 %v2914_v50, %v8309_v19  ;;  %v2912_v61 = vmul.f32 %v8790_v34, %v2555_v48  ;;  %v2566_v22 = vadd.f32 %v6460_v49, %v8785_v52 }
0x1055   :  { %v2557_v58 = vpop.f32.mrf.mxu1 }
0x1056   :  { %2930 = vst.msk [vmem:[%s9882_s3 + $0x10] sm:$0xff] %vm87_vm0, %v2922_v20  ;;  %v2920_v40 = vadd.f32 %v2912_v61, %v8303_v6  ;;  %v2915_v11 = vmul.f32 %v8790_v34, %v2566_v22  ;;  %v2558_v9 = vadd.f32 %v2557_v58, %v8785_v52 }
0x1058   :  { %2928 = vst.msk [vmem:[%s9882_s3] sm:$0xff] %vm87_vm0, %v2920_v40  ;;  %v2923_v19 = vadd.f32 %v2915_v11, %v8327_v17  ;;  %v2913_v13 = vmul.f32 %v8790_v34, %v2558_v9  ;;  %v6463_v28 = vpop.f32.mrf.mxu1 }
0x105a   :  { %2931 = vst.msk [vmem:[%s9882_s3 + $0x18] sm:$0xff] %vm87_vm0, %v2923_v19  ;;  %v2921_v6 = vadd.f32 %v2913_v13, %v8318_v16  ;;  %v2570_v55 = vpop.f32.mrf.mxu1 }
0x105b   :  { %v2571_v32 = vadd.f32 %v2570_v55, %v8785_v52 }
0x105c   :  { %2929 = vst.msk [vmem:[%s9882_s3 + $0x8] sm:$0xff] %vm87_vm0, %v2921_v6  ;;  %v6464_v12 = vpop.f32.mrf.mxu1 }
0x105d   :  { %v2916_v17 = vmul.f32 %v8790_v34, %v2571_v32 }
0x105e   :  { %v2573_v4 = vpop.f32.mrf.mxu1 }
0x105f   :  { %v2924_v30 = vadd.f32 %v2916_v17, %v8338_v21 }
0x1060   :  { %v6495_v35 = vpop.f32.mrf.mxu0  ;;  %v8823_v1 = vpop.f32.mrf.mxu1 }
0x1061   :  { %2932 = vst.msk [vmem:[%s9882_s3 + $0x20] sm:$0xff] %vm87_vm0, %v2924_v30  ;;  %v8930_v11 = vmul.f32 0.35355338, %v8823_v1 }
0x1062   :  { %v2836_v16 = vpop.f32.mrf.mxu0  ;;  %v8829_v41 = vpop.f32.mrf.mxu1 }
0x1063   :  { %v8832_v54 = vmul.f32 0.35355338, %v8829_v41 }
0x1064   :  { %v6496_v36 = vpop.f32.mrf.mxu0  ;;  %v8834_v59 = vpop.f32.mrf.mxu1 }
0x1065   :  { %6529 = vmatprep.mubr.msk.f32.mxu1 %vm342_vm1, %v8832_v54  ;;  %v8939_v19 = vmul.f32 0.35355338, %v8834_v59 }
0x1066   :  { %v2839_v21 = vpop.f32.mrf.mxu0  ;;  %v8838_v29 = vpop.f32.mrf.mxu1 }
0x1067   :  { %v8927_v40 = vmul.f32 0.35355338, %v8838_v29 }
0x1068   :  { %v8845_v23 = vpop.f32.mrf.mxu1  ;;  %v6499_v38 = vpop.f32.mrf.mxu0 }
0x1069   :  { %3174 = vrot.lane.b32.xlu1 %v8845_v23, %s7432_s11  ;;  %v2861_v43 = vadd.f32 %v6499_v38, %v8843_v18  ;;  %v8952_v32 = vmul.f32 0.35355338, %v8845_v23 }
0x106a   :  { %v8850_v26 = vpop.f32.mrf.mxu1  ;;  %v2852_v39 = vpop.f32.mrf.mxu0 }
0x106b   :  { %v2918_v7 = vmul.f32 %v8790_v34, %v2861_v43  ;;  %v8942_v13 = vmul.f32 0.35355338, %v8850_v26 }
0x106c   :  { %v8853_v15 = vpop.f32.mrf.mxu1  ;;  %v6500_v24 = vpop.f32.mrf.mxu0 }
0x106d   :  { %3176 = vrot.lane.b32.xlu0 %v8853_v15, %s7432_s11  ;;  %v2926_v10 = vadd.f32 %v2918_v7, %v8352_v2  ;;  %v2864_v60 = vadd.f32 %v6500_v24, %v8843_v18  ;;  %v8959_v12 = vmul.f32 0.35355338, %v8853_v15 }
0x106e   :  { %v8859_v45 = vpop.f32.mrf.mxu1  ;;  %v2855_v56 = vpop.f32.mrf.mxu0 }
0x106f   :  { %3172 = vrot.lane.b32.xlu1 %v8859_v45, %s7432_s11  ;;  %2934 = vst.msk [vmem:[%s9882_s3 + $0x30] sm:$0xff] %vm87_vm0, %v2926_v10  ;;  %v2919_v37 = vmul.f32 %v8790_v34, %v2864_v60  ;;  %v2856_v47 = vadd.f32 %v2855_v56, %v8843_v18  ;;  %v8949_v55 = vmul.f32 0.35355338, %v8859_v45 }
0x1071   :  { %3168 = vrot.lane.b32.xlu0 %v8834_v59, %s7432_s11  ;;  %v2927_v2 = vadd.f32 %v2919_v37, %v8357_v5  ;;  %v2917_v57 = vmul.f32 %v8790_v34, %v2856_v47 }
0x1073   :  { %3170 = vrot.lane.b32.xlu1 %v8850_v26, %s7432_s11  ;;  %2935 = vst.msk [vmem:[%s9882_s3 + $0x38] sm:$0xff] %vm87_vm0, %v2927_v2  ;;  %v2925_v51 = vadd.f32 %v2917_v57, %v8347_v14 }
0x1075   :  { %3164 = vrot.lane.b32.xlu0 %v8838_v29, %s7432_s11  ;;  %2933 = vst.msk [vmem:[%s9882_s3 + $0x28] sm:$0xff] %vm87_vm0, %v2925_v51 }
0x1077   :  { %3166 = vrot.lane.b32.xlu1 %v8823_v1, %s7432_s11 }
0x1079   :  { %3425 = vrot.lane.b32.xlu0 %v8853_v15, %s7433_s12 }
0x107b   :  { %3162 = vrot.lane.b32.xlu1 %v8829_v41, %s7432_s11 }
0x107d   :  { %3417 = vrot.lane.b32.xlu0 %v8834_v59, %s7433_s12 }
0x107f   :  { %3423 = vrot.lane.b32.xlu1 %v8845_v23, %s7433_s12 }
0x1081   :  { %3413 = vrot.lane.b32.xlu0 %v8838_v29, %s7433_s12 }
0x1083   :  { %3419 = vrot.lane.b32.xlu1 %v8850_v26, %s7433_s12 }
0x1085   :  { %3594 = vrot.lane.b32.xlu0 %v8853_v15, %s7434_s13 }
0x1087   :  { %3415 = vrot.lane.b32.xlu1 %v8823_v1, %s7433_s12 }
0x108b   :  { %3411 = vrot.lane.b32.xlu1 %v8829_v41, %s7433_s12 }
0x108f   :  { %3592 = vrot.lane.b32.xlu1 %v8845_v23, %s7434_s13 }
0x1093   :  { %3421 = vrot.lane.b32.xlu1 %v8859_v45, %s7433_s12 }
0x10db   :  { %v3175_v14 = vpop.permute.xlu1 %3174 }
0x10df   :  { %v3177_v5 = vpop.permute.xlu0 %3176 }
0x10e0   :  { %6513 = vmatprep.subr.msk.mxu1 %vm342_vm1, %v3177_v5 }
0x10e1   :  { %6514 = vmatpush3.xpose.msk.msra.mxu1 %vm342_vm1, %v3177_v5  ;;  %v3173_v31 = vpop.permute.xlu1 %3172 }
0x10e2   :  { %6515 = vmatprep.subr.msk.mxu1 %vm342_vm1, %v3175_v14 }
0x10e3   :  { %v3169_v46 = vpop.permute.xlu0 %3168 }
0x10e5   :  { %6516 = vmatpush3.xpose.msk.msra.mxu1 %vm342_vm1, %v3175_v14  ;;  %v3171_v42 = vpop.permute.xlu1 %3170 }
0x10e6   :  { %6517 = vmatprep.subr.msk.mxu1 %vm342_vm1, %v3173_v31 }
0x10e7   :  { %v3165_v44 = vpop.permute.xlu0 %3164 }
0x10e9   :  { %6518 = vmatpush3.xpose.msk.msra.mxu1 %vm342_vm1, %v3173_v31  ;;  %v3167_v50 = vpop.permute.xlu1 %3166 }
0x10ea   :  { %6519 = vmatprep.subr.msk.mxu1 %vm342_vm1, %v3171_v42 }
0x10eb   :  { %v3426_v48 = vpop.permute.xlu0 %3425 }
0x10ec   :  { %6541 = vmatprep.subr.mxu0 %v3426_v48 }
0x10ed   :  { %6520 = vmatpush3.xpose.msk.msra.mxu1 %vm342_vm1, %v3171_v42  ;;  %6542 = vmatpush3.msra.mxu0 %v3426_v48  ;;  %v3163_v49 = vpop.permute.xlu1 %3162 }
0x10ee   :  { %6521 = vmatprep.subr.msk.mxu1 %vm342_vm1, %v3169_v46 }
0x10ef   :  { %v3418_v28 = vpop.permute.xlu0 %3417 }
0x10f1   :  { %6522 = vmatpush3.xpose.msk.msra.mxu1 %vm342_vm1, %v3169_v46  ;;  %v3424_v20 = vpop.permute.xlu1 %3423 }
0x10f2   :  { %6523 = vmatprep.subr.msk.mxu1 %vm342_vm1, %v3167_v50  ;;  %6543 = vmatprep.subr.mxu0 %v3424_v20 }
0x10f3   :  { %6544 = vmatpush3.msra.mxu0 %v3424_v20  ;;  %v3414_v17 = vpop.permute.xlu0 %3413 }
0x10f5   :  { %6524 = vmatpush3.xpose.msk.msra.mxu1 %vm342_vm1, %v3167_v50  ;;  %v3420_v61 = vpop.permute.xlu1 %3419 }
0x10f6   :  { %6525 = vmatprep.subr.msk.mxu1 %vm342_vm1, %v3165_v44 }
0x10f7   :  { %v8963_v4 = vpop.permute.xlu0 %3594 }
0x10f9   :  { %6526 = vmatpush3.xpose.msk.msra.mxu1 %vm342_vm1, %v3165_v44  ;;  %v3416_v22 = vpop.permute.xlu1 %3415 }
0x10fa   :  { %6527 = vmatprep.subr.msk.mxu1 %vm342_vm1, %v3163_v49 }
0x10fd   :  { %6528 = vmatpush3.xpose.msk.msra.mxu1 %vm342_vm1, %v3163_v49  ;;  %v3412_v58 = vpop.permute.xlu1 %3411 }
0x1100   :  { %6530 = vmatmul.mubr.msk.f32.vlgmr.msra.gmra.mxu1 %vm342_vm1, %v8927_v40 }
0x1101   :  { %6532 = vmatprep.mubr.msk.f32.mxu1 %vm342_vm1, %v8930_v11  ;;  %v8936_v9 = vpop.permute.xlu1 %3592 }
0x1104   :  { %6533 = vmatmul.mubr.msk.f32.gmra.mxu1 %vm342_vm1, %v8939_v19 }
0x1105   :  { %6535 = vmatprep.mubr.msk.f32.mxu1 %vm342_vm1, %v8942_v13  ;;  %v3422_v6 = vpop.permute.xlu1 %3421 }
0x1106   :  { %6545 = vmatprep.subr.mxu0 %v3422_v6 }
0x1107   :  { %6546 = vmatpush3.msra.mxu0 %v3422_v6 }
0x1108   :  { %6536 = vmatmul.mubr.msk.f32.gmra.mxu1 %vm342_vm1, %v8949_v55  ;;  %6547 = vmatprep.subr.mxu0 %v3420_v61 }
0x1109   :  { %6538 = vmatprep.mubr.msk.f32.mxu1 %vm342_vm1, %v8952_v32  ;;  %6548 = vmatpush3.msra.mxu0 %v3420_v61 }
0x110a   :  { %6549 = vmatprep.subr.mxu0 %v3418_v28 }
0x110b   :  { %6550 = vmatpush3.msra.mxu0 %v3418_v28 }
0x110c   :  { %6539 = vmatmul.mubr.msk.f32.gmra.mxu1 %vm342_vm1, %v8959_v12  ;;  %6551 = vmatprep.subr.mxu0 %v3416_v22 }
0x110d   :  { %6552 = vmatpush3.msra.mxu0 %v3416_v22 }
0x110e   :  { %6553 = vmatprep.subr.mxu0 %v3414_v17 }
0x110f   :  { %6554 = vmatpush3.msra.mxu0 %v3414_v17 }
0x1110   :  { %6555 = vmatprep.subr.mxu0 %v3412_v58 }
0x1111   :  { %6556 = vmatpush3.msra.mxu0 %v3412_v58 }
0x1112   :  { %6569 = vmatprep.subr.msk.mxu0 %vm342_vm1, %v8963_v4 }
0x11c0   :  { %v6531_v30 = vpop.f32.mrf.mxu1 }
0x11c1   :  { %v3326_v35 = vsel %vm488_vm2, %v6531_v30, -inf }
0x11c2   :  { %3327 = vmax.xlane.f32.xlu1 %v3326_v35  ;;  %v3284_v16 = vpop.f32.mrf.mxu1 }
0x11c3   :  { %v3323_v36 = vsel %vm488_vm2, %v3284_v16, -inf }
0x11c4   :  { %3324 = vmax.xlane.f32.xlu0 %v3323_v36  ;;  %v6534_v21 = vpop.f32.mrf.mxu1 }
0x11c5   :  { %v3332_v38 = vsel %vm488_vm2, %v6534_v21, -inf }
0x11c6   :  { %v3294_v3 = vpop.f32.mrf.mxu1 }
0x11c7   :  { %v3329_v24 = vsel %vm488_vm2, %v3294_v3, -inf }
0x11c8   :  { %3333 = vmax.xlane.f32.xlu0 %v3332_v38  ;;  %v6537_v43 = vpop.f32.mrf.mxu1 }
0x11c9   :  { %v3338_v39 = vsel %vm488_vm2, %v6537_v43, -inf }
0x11ca   :  { %3339 = vmax.xlane.f32.xlu1 %v3338_v39  ;;  %v3304_v7 = vpop.f32.mrf.mxu1 }
0x11cb   :  { %v3335_v56 = vsel %vm488_vm2, %v3304_v7, -inf }
0x11cc   :  { %3330 = vmax.xlane.f32.xlu0 %v3329_v24  ;;  %v6540_v10 = vpop.f32.mrf.mxu1 }
0x11cd   :  { %v3344_v60 = vsel %vm488_vm2, %v6540_v10, -inf }
0x11ce   :  { %3345 = vmax.xlane.f32.xlu1 %v3344_v60  ;;  %v3314_v37 = vpop.f32.mrf.mxu1 }
0x11cf   :  { %v3341_v47 = vsel %vm488_vm2, %v3314_v37, -inf }
0x11d0   :  { %3336 = vmax.xlane.f32.xlu0 %v3335_v56 }
0x11d4   :  { %3342 = vmax.xlane.f32.xlu0 %v3341_v47 }
0x11df   :  { %3588 = vrot.lane.b32.xlu1 %v8850_v26, %s7434_s13 }
0x11ea   :  { %3590 = vrot.lane.b32.xlu0 %v8859_v45, %s7434_s13 }
0x124b   :  { %v3328_v2 = vpop.xlane.xlu1 %3327 }
0x124c   :  { %v3348_v57 = vsub.f32 %v6531_v30, %v3328_v2 }
0x124d   :  { %v3325_v51 = vpop.xlane.xlu0 %3324 }
0x124e   :  { %v3357_v14 = vmul.f32 1.442695, %v3348_v57  ;;  %v3347_v5 = vsub.f32 %v3284_v16, %v3325_v51 }
0x1250   :  { %7189 = vpow2.f32 %v3357_v14  ;;  %v3355_v31 = vmul.f32 1.442695, %v3347_v5 }
0x1251   :  { %v3334_v48 = vpop.xlane.xlu0 %3333 }
0x1252   :  { %7191 = vpow2.f32 %v3355_v31  ;;  %v3350_v61 = vsub.f32 %v6534_v21, %v3334_v48 }
0x1253   :  { %v3340_v20 = vpop.xlane.xlu1 %3339 }
0x1254   :  { %v3361_v28 = vmul.f32 1.442695, %v3350_v61  ;;  %v3352_v6 = vsub.f32 %v6537_v43, %v3340_v20 }
0x1255   :  { %v3331_v49 = vpop.xlane.xlu0 %3330 }
0x1256   :  { %v3349_v58 = vsub.f32 %v3294_v3, %v3331_v49  ;;  %7193 = vpow2.f32 %v3361_v28  ;;  %v3365_v36 = vmul.f32 1.442695, %v3352_v6 }
0x1257   :  { %v3346_v17 = vpop.xlane.xlu1 %3345 }
0x1258   :  { %v3359_v30 = vmul.f32 1.442695, %v3349_v58  ;;  %v3354_v38 = vsub.f32 %v6540_v10, %v3346_v17 }
0x1259   :  { %v3337_v22 = vpop.xlane.xlu0 %3336 }
0x125a   :  { %v3351_v35 = vsub.f32 %v3304_v7, %v3337_v22  ;;  %7195 = vpow2.f32 %v3359_v30  ;;  %v3369_v60 = vmul.f32 1.442695, %v3354_v38 }
0x125b   :  { %7197 = vpow2.f32 %v3365_v36  ;;  %v3589_v31 = vpop.permute.xlu1 %3588 }
0x125c   :  { %v3363_v39 = vmul.f32 1.442695, %v3351_v35 }
0x125d   :  { %v8979_v46 = vpop.eup %7189  ;;  %v3343_v16 = vpop.xlane.xlu0 %3342 }
0x125e   :  { %v3374_v42 = vsel %vm488_vm2, %v8979_v46, 0.0  ;;  %v3353_v24 = vsub.f32 %v3314_v37, %v3343_v16  ;;  %7199 = vpow2.f32 %v3363_v39 }
0x125f   :  { %v8983_v44 = vpop.eup %7191  ;;  %3375 = vadd.xlane.f32.xlu1 %v3374_v42  ;;  %7201 = vpow2.f32 %v3369_v60 }
0x1260   :  { %v3371_v50 = vsel %vm488_vm2, %v8983_v44, 0.0  ;;  %v3367_v56 = vmul.f32 1.442695, %v3353_v24 }
0x1261   :  { %3372 = vadd.xlane.f32.xlu0 %v3371_v50  ;;  %v3591_v42 = vpop.permute.xlu0 %3590 }
0x1262   :  { %7203 = vpow2.f32 %v3367_v56 }
0x1263   :  { %v8991_v21 = vpop.eup %7193 }
0x1264   :  { %v3380_v43 = vsel %vm488_vm2, %v8991_v21, 0.0 }
0x1267   :  { %v8993_v3 = vpop.eup %7195 }
0x1268   :  { %v8997_v7 = vpop.eup %7197  ;;  %v3377_v10 = vsel %vm488_vm2, %v8993_v3, 0.0 }
0x1269   :  { %v3386_v47 = vsel %vm488_vm2, %v8997_v7, 0.0 }
0x126b   :  { %v9001_v37 = vpop.eup %7199 }
0x126c   :  { %v9005_v2 = vpop.eup %7201  ;;  %v3383_v57 = vsel %vm488_vm2, %v9001_v37, 0.0 }
0x126d   :  { %v3392_v14 = vsel %vm488_vm2, %v9005_v2, 0.0 }
0x126f   :  { %v9009_v51 = vpop.eup %7203 }
0x1270   :  { %3584 = vrot.lane.b32.xlu1 %v8823_v1, %s7434_s13  ;;  %v3389_v5 = vsel %vm488_vm2, %v9009_v51, 0.0 }
0x1277   :  { %3586 = vrot.lane.b32.xlu0 %v8834_v59, %s7434_s13 }
0x1294   :  { %3381 = vadd.xlane.f32.xlu1 %v3380_v43 }
0x1296   :  { %3378 = vadd.xlane.f32.xlu0 %v3377_v10 }
0x1298   :  { %3387 = vadd.xlane.f32.xlu1 %v3386_v47 }
0x129a   :  { %3384 = vadd.xlane.f32.xlu0 %v3383_v57 }
0x129c   :  { %3393 = vadd.xlane.f32.xlu1 %v3392_v14 }
0x129e   :  { %3390 = vadd.xlane.f32.xlu0 %v3389_v5 }
0x12ad   :  { %3580 = vrot.lane.b32.xlu1 %v8829_v41, %s7434_s13 }
0x12b1   :  { %3566 = vrot.lane.b32.xlu1 %v8927_v40, %s7435_s14 }
0x12b4   :  { %3582 = vrot.lane.b32.xlu0 %v8838_v29, %s7434_s13 }
0x12b5   :  { %3570 = vrot.lane.b32.xlu1 %v8939_v19, %s7435_s14 }
0x12b8   :  { %3564 = vrot.lane.b32.xlu0 %v8832_v54, %s7435_s14 }
0x12b9   :  { %3574 = vrot.lane.b32.xlu1 %v8949_v55, %s7435_s14 }
0x12bc   :  { %3568 = vrot.lane.b32.xlu0 %v8930_v11, %s7435_s14 }
0x12bd   :  { %3578 = vrot.lane.b32.xlu1 %v8959_v12, %s7435_s14 }
0x12c0   :  { %3572 = vrot.lane.b32.xlu0 %v8942_v13, %s7435_s14 }
0x12c1   :  { %3833 = vrot.lane.b32.xlu1 %v8845_v23, %s7436_s15 }
0x12c4   :  { %3576 = vrot.lane.b32.xlu0 %v8952_v32, %s7435_s14 }
0x12c5   :  { %3831 = vrot.lane.b32.xlu1 %v8859_v45, %s7436_s15 }
0x12c8   :  { %3835 = vrot.lane.b32.xlu0 %v8853_v15, %s7436_s15 }
0x12c9   :  { %3829 = vrot.lane.b32.xlu1 %v8850_v26, %s7436_s15 }
0x12cc   :  { %3827 = vrot.lane.b32.xlu0 %v8834_v59, %s7436_s15 }
0x12cd   :  { %3825 = vrot.lane.b32.xlu1 %v8823_v1, %s7436_s15 }
0x12d0   :  { %3823 = vrot.lane.b32.xlu0 %v8838_v29, %s7436_s15 }
0x12d1   :  { %3821 = vrot.lane.b32.xlu1 %v8829_v41, %s7436_s15 }
0x12d4   :  { %4004 = vrot.lane.b32.xlu0 %v8853_v15, %s7437_s17 }
0x12d5   :  { %4002 = vrot.lane.b32.xlu1 %v8845_v23, %s7437_s17 }
0x12e8   :  { %v3376_v50 = vpop.xlane.xlu1 %3375 }
0x12e9   :  { %7205 = vrcp.f32 %v3376_v50 }
0x12ea   :  { %v3373_v48 = vpop.xlane.xlu0 %3372 }
0x12eb   :  { %7207 = vrcp.f32 %v3373_v48 }
0x12f6   :  { %v7206_v49 = vpop.eup %7205 }
0x12f7   :  { %v3404_v22 = vmul.f32 %v7206_v49, %v8979_v46  ;;  %v3587_v46 = vpop.permute.xlu0 %3586 }
0x12f8   :  { %v7208_v20 = vpop.eup %7207 }
0x12f9   :  { %v3403_v61 = vmul.f32 %v7208_v20, %v8983_v44  ;;  %v3585_v44 = vpop.permute.xlu1 %3584 }
0x12fb   :  { %6557 = vmatprep.mubr.msk.f32.mxu0 %vm488_vm2, %v3403_v61 }
0x12fc   :  { %6558 = vmatmul.mubr.msk.f32.vlgmr.msra.gmra.mxu0 %vm488_vm2, %v3404_v22 }
0x12fd   :  { %6570 = vmatpush3.xpose.msk.msra.mxu0 %vm342_vm1, %v8963_v4 }
0x12fe   :  { %6571 = vmatprep.subr.msk.mxu0 %vm342_vm1, %v8936_v9 }
0x1301   :  { %6572 = vmatpush3.xpose.msk.msra.mxu0 %vm342_vm1, %v8936_v9 }
0x1302   :  { %6573 = vmatprep.subr.msk.mxu0 %vm342_vm1, %v3591_v42 }
0x1305   :  { %6574 = vmatpush3.xpose.msk.msra.mxu0 %vm342_vm1, %v3591_v42 }
0x1306   :  { %6575 = vmatprep.subr.msk.mxu0 %vm342_vm1, %v3589_v31 }
0x1309   :  { %6576 = vmatpush3.xpose.msk.msra.mxu0 %vm342_vm1, %v3589_v31 }
0x130a   :  { %6577 = vmatprep.subr.msk.mxu0 %vm342_vm1, %v3587_v46 }
0x130d   :  { %6578 = vmatpush3.xpose.msk.msra.mxu0 %vm342_vm1, %v3587_v46 }
0x130e   :  { %6579 = vmatprep.subr.msk.mxu0 %vm342_vm1, %v3585_v44 }
0x1311   :  { %6580 = vmatpush3.xpose.msk.msra.mxu0 %vm342_vm1, %v3585_v44 }
0x131d   :  { %v3382_v4 = vpop.xlane.xlu1 %3381 }
0x131e   :  { %7209 = vrcp.f32 %v3382_v4 }
0x131f   :  { %v3379_v9 = vpop.xlane.xlu0 %3378 }
0x1320   :  { %7211 = vrcp.f32 %v3379_v9 }
0x1321   :  { %v3388_v58 = vpop.xlane.xlu1 %3387 }
0x1322   :  { %7213 = vrcp.f32 %v3388_v58 }
0x1323   :  { %v3385_v28 = vpop.xlane.xlu0 %3384 }
0x1324   :  { %7215 = vrcp.f32 %v3385_v28 }
0x1325   :  { %v3394_v6 = vpop.xlane.xlu1 %3393 }
0x1326   :  { %7217 = vrcp.f32 %v3394_v6 }
0x1327   :  { %v3391_v17 = vpop.xlane.xlu0 %3390 }
0x1328   :  { %7219 = vrcp.f32 %v3391_v17 }
0x1329   :  { %v3581_v30 = vpop.permute.xlu1 %3580 }
0x132b   :  { %v3583_v35 = vpop.permute.xlu0 %3582  ;;  %v7210_v16 = vpop.eup %7209 }
0x132c   :  { %6581 = vmatprep.subr.msk.mxu0 %vm342_vm1, %v3583_v35  ;;  %v3406_v60 = vmul.f32 %v7210_v16, %v8991_v21 }
0x132d   :  { %v7212_v36 = vpop.eup %7211  ;;  %v3567_v38 = vpop.permute.xlu1 %3566  ;;  %6582 = vmatpush3.xpose.msk.msra.mxu0 %vm342_vm1, %v3583_v35 }
0x132e   :  { %6583 = vmatprep.subr.msk.mxu0 %vm342_vm1, %v3581_v30  ;;  %v3405_v39 = vmul.f32 %v7212_v36, %v8993_v3 }
0x132f   :  { %v3565_v24 = vpop.permute.xlu0 %3564  ;;  %v7214_v56 = vpop.eup %7213 }
0x1330   :  { %6560 = vmatprep.mubr.msk.f32.mxu0 %vm488_vm2, %v3405_v39  ;;  %v3408_v14 = vmul.f32 %v7214_v56, %v8997_v7 }
0x1331   :  { %v7216_v43 = vpop.eup %7215  ;;  %v3571_v10 = vpop.permute.xlu1 %3570  ;;  %6561 = vmatmul.mubr.msk.f32.gmra.mxu0 %vm488_vm2, %v3406_v60 }
0x1332   :  { %6584 = vmatpush3.xpose.msk.msra.mxu0 %vm342_vm1, %v3581_v30  ;;  %v3407_v47 = vmul.f32 %v7216_v43, %v9001_v37 }
0x1333   :  { %v3569_v57 = vpop.permute.xlu0 %3568  ;;  %v7218_v5 = vpop.eup %7217 }
0x1334   :  { %6563 = vmatprep.mubr.msk.f32.mxu0 %vm488_vm2, %v3407_v47  ;;  %v3410_v50 = vmul.f32 %v7218_v5, %v9005_v2 }
0x1335   :  { %v7220_v3 = vpop.eup %7219  ;;  %v3575_v31 = vpop.permute.xlu1 %3574  ;;  %6564 = vmatmul.mubr.msk.f32.gmra.mxu0 %vm488_vm2, %v3408_v14 }
0x1336   :  { %v3409_v21 = vmul.f32 %v7220_v3, %v9009_v51 }
0x1337   :  { %v3573_v42 = vpop.permute.xlu0 %3572 }
0x1338   :  { %6566 = vmatprep.mubr.msk.f32.mxu0 %vm488_vm2, %v3409_v21 }
0x1339   :  { %v3579_v48 = vpop.permute.xlu1 %3578  ;;  %6567 = vmatmul.mubr.msk.f32.gmra.mxu0 %vm488_vm2, %v3410_v50 }
0x133a   :  { %6585 = vmatprep.mubr.msk.f32.mxu0 %vm342_vm1, %v3565_v24 }
0x133b   :  { %v3577_v7 = vpop.permute.xlu0 %3576 }
0x133d   :  { %v3834_v37 = vpop.permute.xlu1 %3833  ;;  %6586 = vmatmul.mubr.msk.f32.vlgmr.msra.gmra.mxu0 %vm342_vm1, %v3567_v38 }
0x133e   :  { %6588 = vmatprep.mubr.msk.f32.mxu0 %vm342_vm1, %v3569_v57 }
0x133f   :  { %v3836_v49 = vpop.permute.xlu0 %3835 }
0x1340   :  { %6597 = vmatprep.subr.mxu1 %v3836_v49 }
0x1341   :  { %v3832_v20 = vpop.permute.xlu1 %3831  ;;  %6589 = vmatmul.mubr.msk.f32.gmra.mxu0 %vm342_vm1, %v3571_v10  ;;  %6598 = vmatpush3.msra.mxu1 %v3836_v49 }
0x1342   :  { %6591 = vmatprep.mubr.msk.f32.mxu0 %vm342_vm1, %v3573_v42  ;;  %6599 = vmatprep.subr.mxu1 %v3834_v37 }
0x1343   :  { %6600 = vmatpush3.msra.mxu1 %v3834_v37  ;;  %v3828_v2 = vpop.permute.xlu0 %3827 }
0x1344   :  { %6601 = vmatprep.subr.mxu1 %v3832_v20 }
0x1345   :  { %v3830_v51 = vpop.permute.xlu1 %3829  ;;  %6592 = vmatmul.mubr.msk.f32.gmra.mxu0 %vm342_vm1, %v3575_v31  ;;  %6602 = vmatpush3.msra.mxu1 %v3832_v20 }
0x1346   :  { %6594 = vmatprep.mubr.msk.f32.mxu0 %vm342_vm1, %v3577_v7  ;;  %6603 = vmatprep.subr.mxu1 %v3830_v51 }
0x1347   :  { %6604 = vmatpush3.msra.mxu1 %v3830_v51  ;;  %v3824_v61 = vpop.permute.xlu0 %3823 }
0x1348   :  { %6605 = vmatprep.subr.mxu1 %v3828_v2 }
0x1349   :  { %v3826_v22 = vpop.permute.xlu1 %3825  ;;  %6595 = vmatmul.mubr.msk.f32.gmra.mxu0 %vm342_vm1, %v3579_v48  ;;  %6606 = vmatpush3.msra.mxu1 %v3828_v2 }
0x134a   :  { %6607 = vmatprep.subr.mxu1 %v3826_v22 }
0x134b   :  { %6608 = vmatpush3.msra.mxu1 %v3826_v22  ;;  %v9097_v44 = vpop.permute.xlu0 %4004 }
0x134c   :  { %6609 = vmatprep.subr.mxu1 %v3824_v61 }
0x134d   :  { %v3822_v46 = vpop.permute.xlu1 %3821  ;;  %6610 = vmatpush3.msra.mxu1 %v3824_v61 }
0x134e   :  { %6611 = vmatprep.subr.mxu1 %v3822_v46 }
0x134f   :  { %6612 = vmatpush3.msra.mxu1 %v3822_v46 }
0x1350   :  { %6625 = vmatprep.subr.msk.mxu1 %vm342_vm1, %v9097_v44 }
0x1351   :  { %v9129_v42 = vpop.permute.xlu1 %4002 }
0x13bc   :  { %v9101_v4 = vpop.f32.mrf.mxu0 }
0x13be   :  { %v9103_v9 = vpop.f32.mrf.mxu0 }
0x13f1   :  { %v9105_v58 = vpop.f32.mrf.mxu0 }
0x13f3   :  { %v9107_v28 = vpop.f32.mrf.mxu0 }
0x13f5   :  { %v9109_v6 = vpop.f32.mrf.mxu0 }
0x13f7   :  { %v9111_v17 = vpop.f32.mrf.mxu0 }
0x13f9   :  { %v9113_v30 = vpop.f32.mrf.mxu0 }
0x13fb   :  { %v9115_v35 = vpop.f32.mrf.mxu0 }
0x13fd   :  { %v6587_v16 = vpop.f32.mrf.mxu0 }
0x13fe   :  { %v3736_v36 = vsel %vm488_vm2, %v6587_v16, -inf }
0x13ff   :  { %3737 = vmax.xlane.f32.xlu1 %v3736_v36  ;;  %v3694_v38 = vpop.f32.mrf.mxu0 }
0x1400   :  { %v3733_v39 = vsel %vm488_vm2, %v3694_v38, -inf }
0x1401   :  { %3734 = vmax.xlane.f32.xlu0 %v3733_v39  ;;  %v6590_v24 = vpop.f32.mrf.mxu0 }
0x1402   :  { %v3742_v56 = vsel %vm488_vm2, %v6590_v24, -inf }
0x1403   :  { %v3704_v60 = vpop.f32.mrf.mxu0 }
0x1404   :  { %v3739_v57 = vsel %vm488_vm2, %v3704_v60, -inf }
0x1405   :  { %3743 = vmax.xlane.f32.xlu0 %v3742_v56  ;;  %v6593_v43 = vpop.f32.mrf.mxu0 }
0x1406   :  { %v3748_v10 = vsel %vm488_vm2, %v6593_v43, -inf }
0x1407   :  { %3749 = vmax.xlane.f32.xlu1 %v3748_v10  ;;  %v3714_v47 = vpop.f32.mrf.mxu0 }
0x1408   :  { %v3745_v3 = vsel %vm488_vm2, %v3714_v47, -inf }
0x1409   :  { %3740 = vmax.xlane.f32.xlu0 %v3739_v57  ;;  %v6596_v14 = vpop.f32.mrf.mxu0 }
0x140a   :  { %v3754_v5 = vsel %vm488_vm2, %v6596_v14, -inf }
0x140b   :  { %3755 = vmax.xlane.f32.xlu1 %v3754_v5  ;;  %v3724_v31 = vpop.f32.mrf.mxu0 }
0x140c   :  { %v3751_v21 = vsel %vm488_vm2, %v3724_v31, -inf }
0x140d   :  { %3746 = vmax.xlane.f32.xlu0 %v3745_v3 }
0x1411   :  { %3752 = vmax.xlane.f32.xlu0 %v3751_v21 }
0x141c   :  { %3998 = vrot.lane.b32.xlu1 %v8850_v26, %s7437_s17 }
0x1427   :  { %4000 = vrot.lane.b32.xlu0 %v8859_v45, %s7437_s17 }
0x1488   :  { %v3738_v50 = vpop.xlane.xlu1 %3737 }
0x1489   :  { %v3758_v48 = vsub.f32 %v6587_v16, %v3738_v50 }
0x148a   :  { %v3735_v7 = vpop.xlane.xlu0 %3734 }
0x148b   :  { %v3767_v37 = vmul.f32 1.442695, %v3758_v48  ;;  %v3757_v49 = vsub.f32 %v3694_v38, %v3735_v7 }
0x148d   :  { %7221 = vpow2.f32 %v3767_v37  ;;  %v3765_v20 = vmul.f32 1.442695, %v3757_v49 }
0x148e   :  { %v3744_v46 = vpop.xlane.xlu0 %3743 }
0x148f   :  { %7223 = vpow2.f32 %v3765_v20  ;;  %v3760_v38 = vsub.f32 %v6590_v24, %v3744_v46 }
0x1490   :  { %v3750_v36 = vpop.xlane.xlu1 %3749 }
0x1491   :  { %v3771_v10 = vmul.f32 1.442695, %v3760_v38  ;;  %v3762_v57 = vsub.f32 %v6593_v43, %v3750_v36 }
0x1492   :  { %v3741_v16 = vpop.xlane.xlu0 %3740 }
0x1493   :  { %v3759_v56 = vsub.f32 %v3704_v60, %v3741_v16  ;;  %7225 = vpow2.f32 %v3771_v10  ;;  %v3775_v48 = vmul.f32 1.442695, %v3762_v57 }
0x1494   :  { %v3756_v5 = vpop.xlane.xlu1 %3755 }
0x1495   :  { %v3769_v3 = vmul.f32 1.442695, %v3759_v56  ;;  %v3764_v7 = vsub.f32 %v6596_v14, %v3756_v5 }
0x1496   :  { %v3747_v39 = vpop.xlane.xlu0 %3746 }
0x1497   :  { %v3761_v21 = vsub.f32 %v3714_v47, %v3747_v39  ;;  %7227 = vpow2.f32 %v3769_v3  ;;  %v3779_v20 = vmul.f32 1.442695, %v3764_v7 }
0x1498   :  { %7229 = vpow2.f32 %v3775_v48  ;;  %v3999_v56 = vpop.permute.xlu1 %3998 }
0x1499   :  { %v3773_v37 = vmul.f32 1.442695, %v3761_v21 }
0x149a   :  { %v9131_v2 = vpop.eup %7221  ;;  %v3753_v50 = vpop.xlane.xlu0 %3752 }
0x149b   :  { %v3784_v51 = vsel %vm488_vm2, %v9131_v2, 0.0  ;;  %v3763_v49 = vsub.f32 %v3724_v31, %v3753_v50  ;;  %7231 = vpow2.f32 %v3773_v37 }
0x149c   :  { %v9135_v61 = vpop.eup %7223  ;;  %3785 = vadd.xlane.f32.xlu1 %v3784_v51  ;;  %7233 = vpow2.f32 %v3779_v20 }
0x149d   :  { %v3781_v22 = vsel %vm488_vm2, %v9135_v61, 0.0  ;;  %v3777_v51 = vmul.f32 1.442695, %v3763_v49 }
0x149e   :  { %3782 = vadd.xlane.f32.xlu0 %v3781_v22  ;;  %v4001_v10 = vpop.permute.xlu0 %4000 }
0x149f   :  { %7235 = vpow2.f32 %v3777_v51 }
0x14a0   :  { %v9143_v24 = vpop.eup %7225 }
0x14a1   :  { %v3790_v43 = vsel %vm488_vm2, %v9143_v24, 0.0 }
0x14a4   :  { %v9145_v60 = vpop.eup %7227 }
0x14a5   :  { %v9149_v47 = vpop.eup %7229  ;;  %v3787_v14 = vsel %vm488_vm2, %v9145_v60, 0.0 }
0x14a6   :  { %v3796_v22 = vsel %vm488_vm2, %v9149_v47, 0.0 }
0x14a8   :  { %v9153_v31 = vpop.eup %7231 }
0x14a9   :  { %v9157_v46 = vpop.eup %7233  ;;  %v3793_v16 = vsel %vm488_vm2, %v9153_v31, 0.0 }
0x14aa   :  { %v3802_v38 = vsel %vm488_vm2, %v9157_v46, 0.0 }
0x14ac   :  { %v9161_v36 = vpop.eup %7235 }
0x14ad   :  { %3994 = vrot.lane.b32.xlu1 %v8823_v1, %s7437_s17  ;;  %v3799_v39 = vsel %vm488_vm2, %v9161_v36, 0.0 }
0x14b4   :  { %3996 = vrot.lane.b32.xlu0 %v8834_v59, %s7437_s17 }
0x14d1   :  { %3791 = vadd.xlane.f32.xlu1 %v3790_v43 }
0x14d3   :  { %3788 = vadd.xlane.f32.xlu0 %v3787_v14 }
0x14d5   :  { %3797 = vadd.xlane.f32.xlu1 %v3796_v22 }
0x14d7   :  { %3794 = vadd.xlane.f32.xlu0 %v3793_v16 }
0x14d9   :  { %3803 = vadd.xlane.f32.xlu1 %v3802_v38 }
0x14db   :  { %3800 = vadd.xlane.f32.xlu0 %v3799_v39 }
0x14ea   :  { %3990 = vrot.lane.b32.xlu1 %v8829_v41, %s7437_s17 }
0x14ee   :  { %3976 = vrot.lane.b32.xlu1 %v8927_v40, %s7438_s18 }
0x14f1   :  { %3992 = vrot.lane.b32.xlu0 %v8838_v29, %s7437_s17 }
0x14f2   :  { %3980 = vrot.lane.b32.xlu1 %v8939_v19, %s7438_s18 }
0x14f5   :  { %3974 = vrot.lane.b32.xlu0 %v8832_v54, %s7438_s18 }
0x14f6   :  { %3984 = vrot.lane.b32.xlu1 %v8949_v55, %s7438_s18 }
0x14f9   :  { %3978 = vrot.lane.b32.xlu0 %v8930_v11, %s7438_s18 }
0x14fa   :  { %3988 = vrot.lane.b32.xlu1 %v8959_v12, %s7438_s18 }
0x14fd   :  { %3982 = vrot.lane.b32.xlu0 %v8942_v13, %s7438_s18 }
0x14fe   :  { %4243 = vrot.lane.b32.xlu1 %v8845_v23, %s7439_s19 }
0x1501   :  { %3986 = vrot.lane.b32.xlu0 %v8952_v32, %s7438_s18 }
0x1502   :  { %4241 = vrot.lane.b32.xlu1 %v8859_v45, %s7439_s19 }
0x1505   :  { %4245 = vrot.lane.b32.xlu0 %v8853_v15, %s7439_s19 }
0x1506   :  { %4239 = vrot.lane.b32.xlu1 %v8850_v26, %s7439_s19 }
0x1509   :  { %4237 = vrot.lane.b32.xlu0 %v8834_v59, %s7439_s19 }
0x150a   :  { %4235 = vrot.lane.b32.xlu1 %v8823_v1, %s7439_s19 }
0x150d   :  { %4233 = vrot.lane.b32.xlu0 %v8838_v29, %s7439_s19 }
0x150e   :  { %4231 = vrot.lane.b32.xlu1 %v8829_v41, %s7439_s19 }
0x1511   :  { %4414 = vrot.lane.b32.xlu0 %v8853_v15, %s7440_s20 }
0x1512   :  { %4412 = vrot.lane.b32.xlu1 %v8845_v23, %s7440_s20 }
0x1525   :  { %v3786_v57 = vpop.xlane.xlu1 %3785 }
0x1526   :  { %7237 = vrcp.f32 %v3786_v57 }
0x1527   :  { %v3783_v5 = vpop.xlane.xlu0 %3782 }
0x1528   :  { %7239 = vrcp.f32 %v3783_v5 }
0x1533   :  { %v7238_v3 = vpop.eup %7237 }
0x1534   :  { %v3814_v48 = vmul.f32 %v7238_v3, %v9131_v2  ;;  %v3997_v2 = vpop.permute.xlu0 %3996 }
0x1535   :  { %v7240_v21 = vpop.eup %7239 }
0x1536   :  { %v3813_v50 = vmul.f32 %v7240_v21, %v9135_v61  ;;  %v3995_v61 = vpop.permute.xlu1 %3994 }
0x1538   :  { %6613 = vmatprep.mubr.msk.f32.mxu1 %vm488_vm2, %v3813_v50 }
0x1539   :  { %6614 = vmatmul.mubr.msk.f32.vlgmr.msra.gmra.mxu1 %vm488_vm2, %v3814_v48 }
0x153a   :  { %6626 = vmatpush3.xpose.msk.msra.mxu1 %vm342_vm1, %v9097_v44 }
0x153b   :  { %6627 = vmatprep.subr.msk.mxu1 %vm342_vm1, %v9129_v42 }
0x153e   :  { %6628 = vmatpush3.xpose.msk.msra.mxu1 %vm342_vm1, %v9129_v42 }
0x153f   :  { %6629 = vmatprep.subr.msk.mxu1 %vm342_vm1, %v4001_v10 }
0x1542   :  { %6630 = vmatpush3.xpose.msk.msra.mxu1 %vm342_vm1, %v4001_v10 }
0x1543   :  { %6631 = vmatprep.subr.msk.mxu1 %vm342_vm1, %v3999_v56 }
0x1546   :  { %6632 = vmatpush3.xpose.msk.msra.mxu1 %vm342_vm1, %v3999_v56 }
0x1547   :  { %6633 = vmatprep.subr.msk.mxu1 %vm342_vm1, %v3997_v2 }
0x154a   :  { %6634 = vmatpush3.xpose.msk.msra.mxu1 %vm342_vm1, %v3997_v2 }
0x154b   :  { %6635 = vmatprep.subr.msk.mxu1 %vm342_vm1, %v3995_v61 }
0x154e   :  { %6636 = vmatpush3.xpose.msk.msra.mxu1 %vm342_vm1, %v3995_v61 }
0x155a   :  { %v3792_v44 = vpop.xlane.xlu1 %3791 }
0x155b   :  { %7241 = vrcp.f32 %v3792_v44 }
0x155c   :  { %v3789_v42 = vpop.xlane.xlu0 %3788 }
0x155d   :  { %7243 = vrcp.f32 %v3789_v42 }
0x155e   :  { %v3798_v7 = vpop.xlane.xlu1 %3797 }
0x155f   :  { %7245 = vrcp.f32 %v3798_v7 }
0x1560   :  { %v3795_v37 = vpop.xlane.xlu0 %3794 }
0x1561   :  { %7247 = vrcp.f32 %v3795_v37 }
0x1562   :  { %v3804_v49 = vpop.xlane.xlu1 %3803 }
0x1563   :  { %7249 = vrcp.f32 %v3804_v49 }
0x1564   :  { %v3801_v20 = vpop.xlane.xlu0 %3800 }
0x1565   :  { %7251 = vrcp.f32 %v3801_v20 }
0x1566   :  { %v3991_v51 = vpop.permute.xlu1 %3990 }
0x1568   :  { %v3993_v43 = vpop.permute.xlu0 %3992  ;;  %v7242_v14 = vpop.eup %7241 }
0x1569   :  { %6637 = vmatprep.subr.msk.mxu1 %vm342_vm1, %v3993_v43  ;;  %v3816_v56 = vmul.f32 %v7242_v14, %v9143_v24 }
0x156a   :  { %v7244_v22 = vpop.eup %7243  ;;  %v3977_v16 = vpop.permute.xlu1 %3976  ;;  %6638 = vmatpush3.xpose.msk.msra.mxu1 %vm342_vm1, %v3993_v43 }
0x156b   :  { %6639 = vmatprep.subr.msk.mxu1 %vm342_vm1, %v3991_v51  ;;  %v3815_v38 = vmul.f32 %v7244_v22, %v9145_v60 }
0x156c   :  { %v3975_v39 = vpop.permute.xlu0 %3974  ;;  %v7246_v10 = vpop.eup %7245 }
0x156d   :  { %6616 = vmatprep.mubr.msk.f32.mxu1 %vm488_vm2, %v3815_v38  ;;  %v3818_v50 = vmul.f32 %v7246_v10, %v9149_v47 }
0x156e   :  { %v7248_v57 = vpop.eup %7247  ;;  %v3981_v5 = vpop.permute.xlu1 %3980  ;;  %6617 = vmatmul.mubr.msk.f32.gmra.mxu1 %vm488_vm2, %v3816_v56 }
0x156f   :  { %6640 = vmatpush3.xpose.msk.msra.mxu1 %vm342_vm1, %v3991_v51  ;;  %v3817_v3 = vmul.f32 %v7248_v57, %v9153_v31 }
0x1570   :  { %v3979_v21 = vpop.permute.xlu0 %3978  ;;  %v7250_v48 = vpop.eup %7249 }
0x1571   :  { %6619 = vmatprep.mubr.msk.f32.mxu1 %vm488_vm2, %v3817_v3  ;;  %v3820_v44 = vmul.f32 %v7250_v48, %v9157_v46 }
0x1572   :  { %v7252_v60 = vpop.eup %7251  ;;  %v3985_v2 = vpop.permute.xlu1 %3984  ;;  %6620 = vmatmul.mubr.msk.f32.gmra.mxu1 %vm488_vm2, %v3818_v50 }
0x1573   :  { %v3819_v24 = vmul.f32 %v7252_v60, %v9161_v36 }
0x1574   :  { %v3983_v61 = vpop.permute.xlu0 %3982 }
0x1575   :  { %6622 = vmatprep.mubr.msk.f32.mxu1 %vm488_vm2, %v3819_v24 }
0x1576   :  { %v3989_v42 = vpop.permute.xlu1 %3988  ;;  %6623 = vmatmul.mubr.msk.f32.gmra.mxu1 %vm488_vm2, %v3820_v44 }
0x1577   :  { %6641 = vmatprep.mubr.msk.f32.mxu1 %vm342_vm1, %v3975_v39 }
0x1578   :  { %v3987_v47 = vpop.permute.xlu0 %3986 }
0x157a   :  { %v4244_v31 = vpop.permute.xlu1 %4243  ;;  %6642 = vmatmul.mubr.msk.f32.vlgmr.msra.gmra.mxu1 %vm342_vm1, %v3977_v16 }
0x157b   :  { %6644 = vmatprep.mubr.msk.f32.mxu1 %vm342_vm1, %v3979_v21 }
0x157c   :  { %v4246_v7 = vpop.permute.xlu0 %4245 }
0x157d   :  { %6653 = vmatprep.subr.mxu0 %v4246_v7 }
0x157e   :  { %v4242_v37 = vpop.permute.xlu1 %4241  ;;  %6645 = vmatmul.mubr.msk.f32.gmra.mxu1 %vm342_vm1, %v3981_v5  ;;  %6654 = vmatpush3.msra.mxu0 %v4246_v7 }
0x157f   :  { %6647 = vmatprep.mubr.msk.f32.mxu1 %vm342_vm1, %v3983_v61  ;;  %6655 = vmatprep.subr.mxu0 %v4244_v31 }
0x1580   :  { %6656 = vmatpush3.msra.mxu0 %v4244_v31  ;;  %v4238_v46 = vpop.permute.xlu0 %4237 }
0x1581   :  { %6657 = vmatprep.subr.mxu0 %v4242_v37 }
0x1582   :  { %v4240_v36 = vpop.permute.xlu1 %4239  ;;  %6648 = vmatmul.mubr.msk.f32.gmra.mxu1 %vm342_vm1, %v3985_v2  ;;  %6658 = vmatpush3.msra.mxu0 %v4242_v37 }
0x1583   :  { %6650 = vmatprep.mubr.msk.f32.mxu1 %vm342_vm1, %v3987_v47  ;;  %6659 = vmatprep.subr.mxu0 %v4240_v36 }
0x1584   :  { %6660 = vmatpush3.msra.mxu0 %v4240_v36  ;;  %v4234_v49 = vpop.permute.xlu0 %4233 }
0x1585   :  { %6661 = vmatprep.subr.mxu0 %v4238_v46 }
0x1586   :  { %v4236_v20 = vpop.permute.xlu1 %4235  ;;  %6651 = vmatmul.mubr.msk.f32.gmra.mxu1 %vm342_vm1, %v3989_v42  ;;  %6662 = vmatpush3.msra.mxu0 %v4238_v46 }
0x1587   :  { %6663 = vmatprep.subr.mxu0 %v4236_v20 }
0x1588   :  { %6664 = vmatpush3.msra.mxu0 %v4236_v20  ;;  %v9249_v43 = vpop.permute.xlu0 %4414 }
0x1589   :  { %6665 = vmatprep.subr.mxu0 %v4234_v49 }
0x158a   :  { %v4232_v51 = vpop.permute.xlu1 %4231  ;;  %6666 = vmatpush3.msra.mxu0 %v4234_v49 }
0x158b   :  { %6667 = vmatprep.subr.mxu0 %v4232_v51 }
0x158c   :  { %6668 = vmatpush3.msra.mxu0 %v4232_v51 }
0x158d   :  { %6681 = vmatprep.subr.msk.mxu0 %vm342_vm1, %v9249_v43 }
0x15f9   :  { %v9253_v14 = vpop.f32.mrf.mxu1 }
0x15fb   :  { %v9255_v22 = vpop.f32.mrf.mxu1 }
0x162e   :  { %v9259_v38 = vpop.f32.mrf.mxu1 }
0x1630   :  { %v9261_v39 = vpop.f32.mrf.mxu1 }
0x1632   :  { %v9265_v10 = vpop.f32.mrf.mxu1 }
0x1634   :  { %v9267_v57 = vpop.f32.mrf.mxu1 }
0x1636   :  { %v9271_v3 = vpop.f32.mrf.mxu1 }
0x1638   :  { %v9273_v21 = vpop.f32.mrf.mxu1 }
0x163a   :  { %v6643_v48 = vpop.f32.mrf.mxu1 }
0x163b   :  { %v4146_v60 = vsel %vm488_vm2, %v6643_v48, -inf }
0x163c   :  { %4147 = vmax.xlane.f32.xlu1 %v4146_v60  ;;  %v4104_v2 = vpop.f32.mrf.mxu1  ;;  %v9289_v60 = vpop.permute.xlu1 %4412 }
0x163d   :  { %v4143_v24 = vsel %vm488_vm2, %v4104_v2, -inf }
0x163e   :  { %4144 = vmax.xlane.f32.xlu0 %v4143_v24  ;;  %v6646_v61 = vpop.f32.mrf.mxu1 }
0x163f   :  { %v4152_v42 = vsel %vm488_vm2, %v6646_v61, -inf }
0x1640   :  { %v4114_v44 = vpop.f32.mrf.mxu1 }
0x1641   :  { %v4149_v37 = vsel %vm488_vm2, %v4114_v44, -inf }
0x1642   :  { %4153 = vmax.xlane.f32.xlu0 %v4152_v42  ;;  %v6649_v47 = vpop.f32.mrf.mxu1 }
0x1643   :  { %v4158_v31 = vsel %vm488_vm2, %v6649_v47, -inf }
0x1644   :  { %4159 = vmax.xlane.f32.xlu1 %v4158_v31  ;;  %v4124_v7 = vpop.f32.mrf.mxu1 }
0x1645   :  { %v4155_v49 = vsel %vm488_vm2, %v4124_v7, -inf }
0x1646   :  { %4150 = vmax.xlane.f32.xlu0 %v4149_v37  ;;  %v6652_v46 = vpop.f32.mrf.mxu1 }
0x1647   :  { %v4164_v36 = vsel %vm488_vm2, %v6652_v46, -inf }
0x1648   :  { %4165 = vmax.xlane.f32.xlu1 %v4164_v36  ;;  %v4134_v20 = vpop.f32.mrf.mxu1 }
0x1649   :  { %v4161_v51 = vsel %vm488_vm2, %v4134_v20, -inf }
0x164a   :  { %4156 = vmax.xlane.f32.xlu0 %v4155_v49 }
0x164e   :  { %4162 = vmax.xlane.f32.xlu0 %v4161_v51 }
0x1659   :  { %4408 = vrot.lane.b32.xlu1 %v8850_v26, %s7440_s20 }
0x1664   :  { %4410 = vrot.lane.b32.xlu0 %v8859_v45, %s7440_s20 }
0x16c5   :  { %v4148_v24 = vpop.xlane.xlu1 %4147 }
0x16c6   :  { %v4168_v42 = vsub.f32 %v6643_v48, %v4148_v24 }
0x16c7   :  { %v4145_v31 = vpop.xlane.xlu0 %4144 }
0x16c8   :  { %v4177_v37 = vmul.f32 1.442695, %v4168_v42  ;;  %v4167_v36 = vsub.f32 %v4104_v2, %v4145_v31 }
0x16ca   :  { %7253 = vpow2.f32 %v4177_v37  ;;  %v4175_v5 = vmul.f32 1.442695, %v4167_v36 }
0x16cb   :  { %v4154_v56 = vpop.xlane.xlu0 %4153 }
0x16cc   :  { %7255 = vpow2.f32 %v4175_v5  ;;  %v4170_v2 = vsub.f32 %v6646_v61, %v4154_v56 }
0x16cd   :  { %v4160_v5 = vpop.xlane.xlu1 %4159 }
0x16ce   :  { %v4181_v31 = vmul.f32 1.442695, %v4170_v2  ;;  %v4172_v37 = vsub.f32 %v6649_v47, %v4160_v5 }
0x16cf   :  { %v4151_v48 = vpop.xlane.xlu0 %4150 }
0x16d0   :  { %v4169_v42 = vsub.f32 %v4114_v44, %v4151_v48  ;;  %7257 = vpow2.f32 %v4181_v31 }
0x16d1   :  { %v4166_v36 = vpop.xlane.xlu1 %4165 }
0x16d2   :  { %v4174_v52 = vsub.f32 %v6652_v46, %v4166_v36 }
0x16d3   :  { %v4157_v24 = vpop.xlane.xlu0 %4156 }
0x16d4   :  { %v4171_v18 = vsub.f32 %v4124_v7, %v4157_v24  ;;  %v4189_v25 = vmul.f32 1.442695, %v4174_v52 }
0x16d6   :  { %v4183_v8 = vmul.f32 1.442695, %v4171_v18 }
0x16d7   :  { %v9291_v49 = vpop.eup %7253  ;;  %v4163_v34 = vpop.xlane.xlu0 %4162 }
0x16d8   :  { %v4194_v51 = vsel %vm488_vm2, %v9291_v49, 0.0  ;;  %v4173_v27 = vsub.f32 %v4134_v20, %v4163_v34 }
0x16d9   :  { %v9295_v16 = vpop.eup %7255  ;;  %4195 = vadd.xlane.f32.xlu1 %v4194_v51  ;;  %v4179_v51 = vmul.f32 1.442695, %v4169_v42 }
0x16da   :  { %v4191_v50 = vsel %vm488_vm2, %v9295_v16, 0.0  ;;  %v4187_v33 = vmul.f32 1.442695, %v4173_v27 }
0x16db   :  { %4192 = vadd.xlane.f32.xlu0 %v4191_v50  ;;  %v4185_v50 = vmul.f32 1.442695, %v4172_v37  ;;  %7259 = vpow2.f32 %v4179_v51 }
0x16dd   :  { %7261 = vpow2.f32 %v4185_v50  ;;  %v9303_v56 = vpop.eup %7257 }
0x16de   :  { %7263 = vpow2.f32 %v4183_v8  ;;  %v4200_v44 = vsel %vm488_vm2, %v9303_v56, 0.0 }
0x16df   :  { %7265 = vpow2.f32 %v4189_v25 }
0x16e0   :  { %7267 = vpow2.f32 %v4187_v33 }
0x16e8   :  { %v9305_v61 = vpop.eup %7259 }
0x16e9   :  { %v4197_v18 = vsel %vm488_vm2, %v9305_v61, 0.0 }
0x16ea   :  { %4404 = vrot.lane.b32.xlu1 %v8823_v1, %s7440_s20  ;;  %v9309_v47 = vpop.eup %7261 }
0x16eb   :  { %v9313_v34 = vpop.eup %7263  ;;  %v4206_v25 = vsel %vm488_vm2, %v9309_v47, 0.0 }
0x16ec   :  { %v9317_v33 = vpop.eup %7265  ;;  %v4203_v27 = vsel %vm488_vm2, %v9313_v34, 0.0 }
0x16ed   :  { %v9321_v8 = vpop.eup %7267  ;;  %v4212_v52 = vsel %vm488_vm2, %v9317_v33, 0.0 }
0x16ee   :  { %v4209_v7 = vsel %vm488_vm2, %v9321_v8, 0.0 }
0x16f1   :  { %4406 = vrot.lane.b32.xlu0 %v8834_v59, %s7440_s20 }
0x170e   :  { %4201 = vadd.xlane.f32.xlu1 %v4200_v44 }
0x1710   :  { %4198 = vadd.xlane.f32.xlu0 %v4197_v18 }
0x1712   :  { %4207 = vadd.xlane.f32.xlu1 %v4206_v25 }
0x1714   :  { %4204 = vadd.xlane.f32.xlu0 %v4203_v27  ;;  %v7377_v27 = vld [vmem:[%s9881_s2 + $0x28] sm:$0xff]  }
0x1716   :  { %4213 = vadd.xlane.f32.xlu1 %v4212_v52 }
0x1718   :  { %4210 = vadd.xlane.f32.xlu0 %v4209_v7 }
0x1727   :  { %4400 = vrot.lane.b32.xlu1 %v8829_v41, %s7440_s20 }
0x172b   :  { %4386 = vrot.lane.b32.xlu1 %v8927_v40, %s7441_s21  ;;  %v4409_v40 = vpop.permute.xlu1 %4408 }
0x172e   :  { %4402 = vrot.lane.b32.xlu0 %v8838_v29, %s7440_s20 }
0x172f   :  { %4390 = vrot.lane.b32.xlu1 %v8939_v19, %s7441_s21  ;;  %v4411_v19 = vpop.permute.xlu0 %4410 }
0x1732   :  { %4384 = vrot.lane.b32.xlu0 %v8832_v54, %s7441_s21 }
0x1733   :  { %4394 = vrot.lane.b32.xlu1 %v8949_v55, %s7441_s21 }
0x1736   :  { %4388 = vrot.lane.b32.xlu0 %v8930_v11, %s7441_s21 }
0x1737   :  { %4398 = vrot.lane.b32.xlu1 %v8959_v12, %s7441_s21 }
0x173a   :  { %4392 = vrot.lane.b32.xlu0 %v8942_v13, %s7441_s21 }
0x173e   :  { %4396 = vrot.lane.b32.xlu0 %v8952_v32, %s7441_s21 }
0x1762   :  { %v4196_v46 = vpop.xlane.xlu1 %4195 }
0x1763   :  { %7269 = vrcp.f32 %v4196_v46  ;;  %v9395_v46 = vld [vmem:[%s9881_s2 + $0x38] sm:$0xff]  }
0x1764   :  { %v4193_v54 = vpop.xlane.xlu0 %4192 }
0x1765   :  { %7271 = vrcp.f32 %v4193_v54 }
0x1766   :  { %v4405_v32 = vpop.permute.xlu1 %4404 }
0x1768   :  { %v4407_v13 = vpop.permute.xlu0 %4406 }
0x1770   :  { %v7270_v20 = vpop.eup %7269 }
0x1771   :  { %v4224_v11 = vmul.f32 %v7270_v20, %v9291_v49 }
0x1772   :  { %v7272_v55 = vpop.eup %7271 }
0x1773   :  { %v4223_v48 = vmul.f32 %v7272_v55, %v9295_v16 }
0x1775   :  { %6669 = vmatprep.mubr.msk.f32.mxu0 %vm488_vm2, %v4223_v48 }
0x1776   :  { %6670 = vmatmul.mubr.msk.f32.vlgmr.msra.gmra.mxu0 %vm488_vm2, %v4224_v11 }
0x1777   :  { %6682 = vmatpush3.xpose.msk.msra.mxu0 %vm342_vm1, %v9249_v43 }
0x1778   :  { %6683 = vmatprep.subr.msk.mxu0 %vm342_vm1, %v9289_v60 }
0x177b   :  { %6684 = vmatpush3.xpose.msk.msra.mxu0 %vm342_vm1, %v9289_v60 }
0x177c   :  { %6685 = vmatprep.subr.msk.mxu0 %vm342_vm1, %v4411_v19 }
0x177f   :  { %6686 = vmatpush3.xpose.msk.msra.mxu0 %vm342_vm1, %v4411_v19 }
0x1780   :  { %6687 = vmatprep.subr.msk.mxu0 %vm342_vm1, %v4409_v40 }
0x1783   :  { %6688 = vmatpush3.xpose.msk.msra.mxu0 %vm342_vm1, %v4409_v40 }
0x1784   :  { %6689 = vmatprep.subr.msk.mxu0 %vm342_vm1, %v4407_v13 }
0x1787   :  { %6690 = vmatpush3.xpose.msk.msra.mxu0 %vm342_vm1, %v4407_v13 }
0x1788   :  { %6691 = vmatprep.subr.msk.mxu0 %vm342_vm1, %v4405_v32 }
0x178b   :  { %6692 = vmatpush3.xpose.msk.msra.mxu0 %vm342_vm1, %v4405_v32 }
0x1797   :  { %v4202_v12 = vpop.xlane.xlu1 %4201 }
0x1798   :  { %7273 = vrcp.f32 %v4202_v12 }
0x1799   :  { %v4199_v43 = vpop.xlane.xlu0 %4198 }
0x179a   :  { %7275 = vrcp.f32 %v4199_v43 }
0x179b   :  { %v4208_v16 = vpop.xlane.xlu1 %4207 }
0x179c   :  { %7277 = vrcp.f32 %v4208_v16 }
0x179d   :  { %v4205_v60 = vpop.xlane.xlu0 %4204 }
0x179e   :  { %7279 = vrcp.f32 %v4205_v60 }
0x179f   :  { %v4214_v49 = vpop.xlane.xlu1 %4213 }
0x17a0   :  { %7281 = vrcp.f32 %v4214_v49 }
0x17a1   :  { %v4211_v5 = vpop.xlane.xlu0 %4210 }
0x17a2   :  { %7283 = vrcp.f32 %v4211_v5 }
0x17a3   :  { %v4401_v31 = vpop.permute.xlu1 %4400 }
0x17a5   :  { %v4403_v2 = vpop.permute.xlu0 %4402  ;;  %v7274_v24 = vpop.eup %7273 }
0x17a6   :  { %6693 = vmatprep.subr.msk.mxu0 %vm342_vm1, %v4403_v2  ;;  %v4226_v36 = vmul.f32 %v7274_v24, %v9303_v56 }
0x17a7   :  { %v7276_v42 = vpop.eup %7275  ;;  %6694 = vmatpush3.xpose.msk.msra.mxu0 %vm342_vm1, %v4403_v2  ;;  %v4387_v52 = vpop.permute.xlu1 %4386 }
0x17a8   :  { %6695 = vmatprep.subr.msk.mxu0 %vm342_vm1, %v4401_v31  ;;  %v4225_v37 = vmul.f32 %v7276_v42, %v9305_v61 }
0x17a9   :  { %v7278_v51 = vpop.eup %7277  ;;  %v4385_v18 = vpop.permute.xlu0 %4384 }
0x17aa   :  { %6672 = vmatprep.mubr.msk.f32.mxu0 %vm488_vm2, %v4225_v37  ;;  %v4228_v25 = vmul.f32 %v7278_v51, %v9309_v47 }
0x17ab   :  { %v7280_v50 = vpop.eup %7279  ;;  %6673 = vmatmul.mubr.msk.f32.gmra.mxu0 %vm488_vm2, %v4226_v36  ;;  %v4391_v47 = vpop.permute.xlu1 %4390 }
0x17ac   :  { %6696 = vmatpush3.xpose.msk.msra.mxu0 %vm342_vm1, %v4401_v31  ;;  %v4227_v44 = vmul.f32 %v7280_v50, %v9313_v34 }
0x17ad   :  { %6749 = vmatprep.subr.bf16.mxu0 %v7377_v27  ;;  %v7282_v61 = vpop.eup %7281  ;;  %v4389_v34 = vpop.permute.xlu0 %4388 }
0x17ae   :  { %6675 = vmatprep.mubr.msk.f32.mxu0 %vm488_vm2, %v4227_v44  ;;  %v4230_v40 = vmul.f32 %v7282_v61, %v9317_v33 }
0x17af   :  { %v7284_v56 = vpop.eup %7283  ;;  %6676 = vmatmul.mubr.msk.f32.gmra.mxu0 %vm488_vm2, %v4228_v25  ;;  %v4395_v33 = vpop.permute.xlu1 %4394 }
0x17b0   :  { %v4229_v7 = vmul.f32 %v7284_v56, %v9321_v8  ;;  %v7378_v8 = vld [vmem:[%s9881_s2 + $0x20] sm:$0xff]  }
0x17b1   :  { %v4393_v19 = vpop.permute.xlu0 %4392 }
0x17b2   :  { %6678 = vmatprep.mubr.msk.f32.mxu0 %vm488_vm2, %v4229_v7 }
0x17b3   :  { %6679 = vmatmul.mubr.msk.f32.gmra.mxu0 %vm488_vm2, %v4230_v40  ;;  %v4399_v20 = vpop.permute.xlu1 %4398 }
0x17b4   :  { %6697 = vmatprep.mubr.msk.f32.mxu0 %vm342_vm1, %v4385_v18 }
0x17b5   :  { %v4397_v54 = vpop.permute.xlu0 %4396 }
0x17b7   :  { %6698 = vmatmul.mubr.msk.f32.vlgmr.msra.gmra.mxu0 %vm342_vm1, %v4387_v52 }
0x17b8   :  { %6700 = vmatprep.mubr.msk.f32.mxu0 %vm342_vm1, %v4389_v34  ;;  %6750 = vmatpush3.bf16.msra.mxu0 %v7377_v27 }
0x17b9   :  { %6751 = vmatprep.subr.bf16.mxu0 %v7378_v8 }
0x17bb   :  { %6701 = vmatmul.mubr.msk.f32.gmra.mxu0 %vm342_vm1, %v4391_v47 }
0x17bc   :  { %6703 = vmatprep.mubr.msk.f32.mxu0 %vm342_vm1, %v4393_v19  ;;  %6752 = vmatpush3.bf16.msra.mxu0 %v7378_v8 }
0x17bd   :  { %6785 = vmatprep.subr.bf16.mxu0 %v9395_v46 }
0x17bf   :  { %6704 = vmatmul.mubr.msk.f32.gmra.mxu0 %vm342_vm1, %v4395_v33 }
0x17c0   :  { %6706 = vmatprep.mubr.msk.f32.mxu0 %vm342_vm1, %v4397_v54 }
0x17c3   :  { %6707 = vmatmul.mubr.msk.f32.gmra.mxu0 %vm342_vm1, %v4399_v20 }
0x1836   :  { %v9401_v55 = vpop.f32.mrf.mxu0 }
0x1838   :  { %v9403_v48 = vpop.f32.mrf.mxu0 }
0x1839   :  { %v6907_v11 = vpack.i.bf16 %v9401_v55, %v9403_v48 }
0x186b   :  { %v9407_v13 = vpop.f32.mrf.mxu0 }
0x186d   :  { %v9409_v32 = vpop.f32.mrf.mxu0 }
0x186e   :  { %v6912_v12 = vpack.i.bf16 %v9407_v13, %v9409_v32 }
0x186f   :  { %v9413_v43 = vpop.f32.mrf.mxu0 }
0x1871   :  { %v9415_v16 = vpop.f32.mrf.mxu0 }
0x1872   :  { %v6932_v60 = vpack.i.bf16 %v9413_v43, %v9415_v16 }
0x1873   :  { %v9419_v49 = vpop.f32.mrf.mxu0 }
0x1875   :  { %v9421_v5 = vpop.f32.mrf.mxu0 }
0x1876   :  { %v6942_v2 = vpack.i.bf16 %v9419_v49, %v9421_v5 }
0x1877   :  { %v6699_v24 = vpop.f32.mrf.mxu0 }
0x1878   :  { %v4556_v42 = vsel %vm488_vm2, %v6699_v24, -inf }
0x1879   :  { %4557 = vmax.xlane.f32.xlu1 %v4556_v42  ;;  %v4514_v31 = vpop.f32.mrf.mxu0 }
0x187a   :  { %v4553_v37 = vsel %vm488_vm2, %v4514_v31, -inf }
0x187b   :  { %4554 = vmax.xlane.f32.xlu0 %v4553_v37  ;;  %v6702_v36 = vpop.f32.mrf.mxu0 }
0x187c   :  { %v4562_v50 = vsel %vm488_vm2, %v6702_v36, -inf }
0x187d   :  { %v4524_v51 = vpop.f32.mrf.mxu0 }
0x187e   :  { %v4559_v27 = vsel %vm488_vm2, %v4524_v51, -inf }
0x187f   :  { %4563 = vmax.xlane.f32.xlu0 %v4562_v50  ;;  %v6705_v44 = vpop.f32.mrf.mxu0 }
0x1880   :  { %v4568_v18 = vsel %vm488_vm2, %v6705_v44, -inf }
0x1881   :  { %4569 = vmax.xlane.f32.xlu1 %v4568_v18  ;;  %v4534_v25 = vpop.f32.mrf.mxu0 }
0x1882   :  { %v4565_v52 = vsel %vm488_vm2, %v4534_v25, -inf }
0x1883   :  { %4560 = vmax.xlane.f32.xlu0 %v4559_v27  ;;  %v6708_v61 = vpop.f32.mrf.mxu0 }
0x1884   :  { %v4574_v56 = vsel %vm488_vm2, %v6708_v61, -inf }
0x1885   :  { %4575 = vmax.xlane.f32.xlu1 %v4574_v56  ;;  %v4544_v7 = vpop.f32.mrf.mxu0 }
0x1886   :  { %v4571_v40 = vsel %vm488_vm2, %v4544_v7, -inf }
0x1887   :  { %4566 = vmax.xlane.f32.xlu0 %v4565_v52 }
0x188b   :  { %4572 = vmax.xlane.f32.xlu0 %v4571_v40 }
0x1896   :  { %4653 = vrot.lane.b32.xlu1 %v8845_v23, %s7442_s22 }
0x189a   :  { %4651 = vrot.lane.b32.xlu1 %v8859_v45, %s7442_s22 }
0x189e   :  { %4649 = vrot.lane.b32.xlu1 %v8850_v26, %s7442_s22 }
0x18a1   :  { %4655 = vrot.lane.b32.xlu0 %v8853_v15, %s7442_s22 }
0x18a2   :  { %4645 = vrot.lane.b32.xlu1 %v8823_v1, %s7442_s22 }
0x18a5   :  { %4647 = vrot.lane.b32.xlu0 %v8834_v59, %s7442_s22 }
0x1902   :  { %v4558_v34 = vpop.xlane.xlu1 %4557 }
0x1903   :  { %v4578_v47 = vsub.f32 %v6699_v24, %v4558_v34 }
0x1904   :  { %v4555_v19 = vpop.xlane.xlu0 %4554 }
0x1905   :  { %v4587_v8 = vmul.f32 1.442695, %v4578_v47  ;;  %v4577_v23 = vsub.f32 %v4514_v31, %v4555_v19 }
0x1907   :  { %7285 = vpow2.f32 %v4587_v8  ;;  %v4585_v33 = vmul.f32 1.442695, %v4577_v23 }
0x1908   :  { %v4564_v45 = vpop.xlane.xlu0 %4563 }
0x1909   :  { %7287 = vpow2.f32 %v4585_v33  ;;  %v4580_v54 = vsub.f32 %v6702_v36, %v4564_v45 }
0x190a   :  { %v4570_v26 = vpop.xlane.xlu1 %4569 }
0x190b   :  { %v4591_v20 = vmul.f32 1.442695, %v4580_v54  ;;  %v4582_v42 = vsub.f32 %v6705_v44, %v4570_v26 }
0x190c   :  { %v4561_v15 = vpop.xlane.xlu0 %4560 }
0x190d   :  { %7289 = vpow2.f32 %v4591_v20  ;;  %v4595_v37 = vmul.f32 1.442695, %v4582_v42  ;;  %v4579_v1 = vsub.f32 %v4524_v51, %v4561_v15 }
0x190e   :  { %v4576_v50 = vpop.xlane.xlu1 %4575 }
0x190f   :  { %7291 = vpow2.f32 %v4595_v37  ;;  %v4589_v59 = vmul.f32 1.442695, %v4579_v1  ;;  %v4584_v18 = vsub.f32 %v6708_v61, %v4576_v50 }
0x1910   :  { %v4567_v24 = vpop.xlane.xlu0 %4566 }
0x1911   :  { %7293 = vpow2.f32 %v4589_v59  ;;  %v4599_v27 = vmul.f32 1.442695, %v4584_v18  ;;  %v4581_v31 = vsub.f32 %v4534_v25, %v4567_v24  ;;  %v9911_v24 = vpack.i.bf16 %v9259_v38, %v9261_v39 }
0x1912   :  { %v4654_v56 = vpop.permute.xlu1 %4653  ;;  %v9914_v38 = vpack.i.bf16 %v9265_v10, %v9267_v57 }
0x1913   :  { %7295 = vpow2.f32 %v4599_v27  ;;  %v4593_v52 = vmul.f32 1.442695, %v4581_v31  ;;  %v9912_v27 = vpack.i.bf16 %v9271_v3, %v9273_v21 }
0x1914   :  { %v9445_v40 = vpop.eup %7285  ;;  %v4573_v36 = vpop.xlane.xlu0 %4572 }
0x1915   :  { %7297 = vpow2.f32 %v4593_v52  ;;  %v4583_v44 = vsub.f32 %v4544_v7, %v4573_v36  ;;  %v4604_v34 = vsel %vm488_vm2, %v9445_v40, 0.0  ;;  %v7380_v36 = vld [vmem:[%s9881_s2 + $0x18] sm:$0xff]  }
0x1916   :  { %v7288_v51 = vpop.eup %7287  ;;  %4605 = vadd.xlane.f32.xlu1 %v4604_v34  ;;  %v4652_v19 = vpop.permute.xlu1 %4651 }
0x1917   :  { %v4597_v47 = vmul.f32 1.442695, %v4583_v44  ;;  %v4601_v61 = vsel %vm488_vm2, %v7288_v51, 0.0 }
0x1918   :  { %4602 = vadd.xlane.f32.xlu0 %v4601_v61  ;;  %v4656_v8 = vpop.permute.xlu0 %4655 }
0x1919   :  { %7299 = vpow2.f32 %v4597_v47  ;;  %6709 = vmatprep.subr.mxu1 %v4656_v8 }
0x191a   :  { %v9450_v25 = vpop.eup %7289  ;;  %6710 = vmatpush3.msra.mxu1 %v4656_v8  ;;  %v4650_v33 = vpop.permute.xlu1 %4649 }
0x191b   :  { %6711 = vmatprep.subr.mxu1 %v4654_v56  ;;  %v4610_v7 = vsel %vm488_vm2, %v9450_v25, 0.0 }
0x191c   :  { %v9454_v23 = vpop.eup %7291  ;;  %4611 = vadd.xlane.f32.xlu1 %v4610_v7  ;;  %6712 = vmatpush3.msra.mxu1 %v4654_v56  ;;  %v4648_v42 = vpop.permute.xlu0 %4647 }
0x191d   :  { %6713 = vmatprep.subr.mxu1 %v4652_v19  ;;  %v4616_v54 = vsel %vm488_vm2, %v9454_v23, 0.0 }
0x191e   :  { %v7294_v45 = vpop.eup %7293  ;;  %6714 = vmatpush3.msra.mxu1 %v4652_v19  ;;  %v4646_v37 = vpop.permute.xlu1 %4645 }
0x191f   :  { %6715 = vmatprep.subr.mxu1 %v4650_v33  ;;  %v4607_v26 = vsel %vm488_vm2, %v7294_v45, 0.0 }
0x1920   :  { %v9459_v20 = vpop.eup %7295  ;;  %4617 = vadd.xlane.f32.xlu1 %v4616_v54  ;;  %4608 = vadd.xlane.f32.xlu0 %v4607_v26 }
0x1921   :  { %6716 = vmatpush3.msra.mxu1 %v4650_v33  ;;  %v4622_v1 = vsel %vm488_vm2, %v9459_v20, 0.0 }
0x1922   :  { %v7298_v15 = vpop.eup %7297  ;;  %6717 = vmatprep.subr.mxu1 %v4648_v42 }
0x1923   :  { %6718 = vmatpush3.msra.mxu1 %v4648_v42  ;;  %v4613_v50 = vsel %vm488_vm2, %v7298_v15, 0.0 }
0x1924   :  { %6719 = vmatprep.subr.mxu1 %v4646_v37  ;;  %4623 = vadd.xlane.f32.xlu1 %v4622_v1 }
0x1925   :  { %4614 = vadd.xlane.f32.xlu0 %v4613_v50  ;;  %6720 = vmatpush3.msra.mxu1 %v4646_v37 }
0x1926   :  { %v7300_v59 = vpop.eup %7299 }
0x1927   :  { %v4619_v18 = vsel %vm488_vm2, %v7300_v59, 0.0 }
0x1929   :  { %4620 = vadd.xlane.f32.xlu0 %v4619_v18 }
0x1935   :  { %4641 = vrot.lane.b32.xlu1 %v8829_v41, %s7442_s22  ;;  %v9913_v41 = vpack.i.bf16 %v9253_v14, %v9255_v22 }
0x1939   :  { %6903 = vrot.lane.b32.xlu1 %v9911_v24, %s7431_s16 }
0x193d   :  { %6913 = vrot.lane.b32.xlu1 %v6912_v12, %s7443_s23 }
0x193f   :  { %4643 = vrot.lane.b32.xlu0 %v8838_v29, %s7442_s22 }
0x1941   :  { %6923 = vrot.lane.b32.xlu1 %v9912_v27, %s7431_s16 }
0x1943   :  { %6898 = vrot.lane.b32.xlu0 %v9913_v41, %s7431_s16 }
0x1947   :  { %6908 = vrot.lane.b32.xlu0 %v6907_v11, %s7443_s23 }
0x194b   :  { %6918 = vrot.lane.b32.xlu0 %v9914_v38, %s7431_s16 }
0x199f   :  { %v4606_v39 = vpop.xlane.xlu1 %4605 }
0x19a1   :  { %v4603_v29 = vpop.xlane.xlu0 %4602 }
0x19a2   :  { %7301 = vrcp.f32 %v4603_v29 }
0x19a3   :  { %7303 = vrcp.f32 %v4606_v39 }
0x19a5   :  { %v4612_v3 = vpop.xlane.xlu1 %4611 }
0x19a9   :  { %v4609_v21 = vpop.xlane.xlu0 %4608  ;;  %v4618_v13 = vpop.xlane.xlu1 %4617 }
0x19aa   :  { %7305 = vrcp.f32 %v4609_v21 }
0x19ab   :  { %7307 = vrcp.f32 %v4612_v3 }
0x19ad   :  { %v4624_v55 = vpop.xlane.xlu1 %4623 }
0x19ae   :  { %v4615_v14 = vpop.xlane.xlu0 %4614 }
0x19af   :  { %v7302_v22 = vpop.eup %7301  ;;  %7309 = vrcp.f32 %v4615_v14 }
0x19b0   :  { %v4633_v32 = vmul.f32 %v7302_v22, %v7288_v51  ;;  %7311 = vrcp.f32 %v4618_v13  ;;  %v7304_v10 = vpop.eup %7303 }
0x19b1   :  { %v4642_v12 = vpop.permute.xlu1 %4641  ;;  %v4634_v31 = vmul.f32 %v7304_v10, %v9445_v40  ;;  %v7381_v40 = vld [vmem:[%s9881_s2 + $0x10] sm:$0xff]  }
0x19b2   :  { %v4621_v48 = vpop.xlane.xlu0 %4620  ;;  %6725 = vmatprep.mubr.msk.f32.mxu1 %vm488_vm2, %v4633_v32 }
0x19b3   :  { %7313 = vrcp.f32 %v4621_v48 }
0x19b4   :  { %7315 = vrcp.f32 %v4624_v55 }
0x19b5   :  { %v6904_v27 = vpop.permute.xlu1 %6903 }
0x19b6   :  { %v4644_v57 = vpop.permute.xlu0 %4643  ;;  %v6906_v3 = vunpack.i.h.bf16 %v6904_v27  ;;  %v6905_v21 = vunpack.i.l.bf16 %v6904_v27 }
0x19b7   :  { %6721 = vmatprep.subr.mxu1 %v4644_v57  ;;  %v7306_v11 = vpop.eup %7305 }
0x19b8   :  { %6722 = vmatpush3.msra.mxu1 %v4644_v57  ;;  %v4635_v56 = vmul.f32 %v7306_v11, %v7294_v45  ;;  %v7308_v52 = vpop.eup %7307 }
0x19b9   :  { %6723 = vmatprep.subr.mxu1 %v4642_v12  ;;  %v4636_v34 = vmul.f32 %v7308_v52, %v9450_v25  ;;  %v9510_v25 = vld [vmem:[%s9881_s2 + $0x78] sm:$0xff]   ;;  %v6914_v16 = vpop.permute.xlu1 %6913 }
0x19ba   :  { %6724 = vmatpush3.msra.mxu1 %v4642_v12  ;;  %v6899_v24 = vpop.permute.xlu0 %6898  ;;  %v6916_v32 = vunpack.i.h.bf16 %v6914_v16  ;;  %v6915_v55 = vunpack.i.l.bf16 %v6914_v16  ;;  %v4893_v12 = vsel %vm342_vm1, %v9105_v58, %v6906_v3  ;;  %v7387_v3 = vld [vmem:[%s9881_s2 + $0x50] sm:$0xff]  }
0x19bb   :  { %6726 = vmatmul.mubr.msk.f32.vlgmr.msra.gmra.mxu1 %vm488_vm2, %v4634_v31  ;;  %6737 = vmatprep.subr.bf16.mxu1 %v7380_v36  ;;  %v6901_v41 = vunpack.i.h.bf16 %v6899_v24  ;;  %v6900_v38 = vunpack.i.l.bf16 %v6899_v24 }
0x19bc   :  { %v7310_v44 = vpop.eup %7309  ;;  %6728 = vmatprep.mubr.msk.f32.mxu1 %vm488_vm2, %v4635_v56  ;;  %6738 = vmatpush3.bf16.msra.mxu1 %v7380_v36 }
0x19bd   :  { %v4637_v51 = vmul.f32 %v7310_v44, %v7298_v15  ;;  %6739 = vmatprep.subr.bf16.mxu1 %v7381_v40  ;;  %v7312_v47 = vpop.eup %7311  ;;  %v6924_v13 = vpop.permute.xlu1 %6923  ;;  %v4891_v5 = vsel %vm342_vm1, %v9101_v4, %v6901_v41  ;;  %v4892_v4 = vsel %vm342_vm1, %v9107_v28, %v6905_v21  ;;  %v7388_v21 = vld [vmem:[%s9881_s2 + $0x48] sm:$0xff]  }
0x19be   :  { %v4638_v61 = vmul.f32 %v7312_v47, %v9454_v23  ;;  %v6909_v43 = vpop.permute.xlu0 %6908  ;;  %v6926_v28 = vunpack.i.h.bf16 %v6924_v13 }
0x19bf   :  { %6729 = vmatmul.mubr.msk.f32.gmra.mxu1 %vm488_vm2, %v4636_v34  ;;  %v6911_v29 = vunpack.i.h.bf16 %v6909_v43  ;;  %v6910_v39 = vunpack.i.l.bf16 %v6909_v43 }
0x19c0   :  { %v7314_v19 = vpop.eup %7313  ;;  %6731 = vmatprep.mubr.msk.f32.mxu1 %vm488_vm2, %v4637_v51  ;;  %6740 = vmatpush3.bf16.msra.mxu1 %v7381_v40  ;;  %v4900_v51 = vsel %vm2064_vm3, %v4892_v4, %v6915_v55  ;;  %v4901_v40 = vsel %vm2064_vm3, %v4893_v12, %v6916_v32  ;;  %v4897_v24 = vsel %vm342_vm1, %v9113_v30, %v6926_v28  ;;  %v7384_v30 = vld [vmem:[%s9881_s2 + $0x68] sm:$0xff]   ;;  %v7391_v4 = vld [vmem:[%s9879_s0 + $0x50] sm:$0xff] }
0x19c1   :  { %v4639_v8 = vmul.f32 %v7314_v19, %v7300_v59  ;;  %6761 = vmatprep.subr.bf16.mxu1 %v9510_v25  ;;  %v7316_v7 = vpop.eup %7315  ;;  %v4899_v10 = vsel %vm2064_vm3, %v4891_v5, %v6911_v29 }
0x19c2   :  { %v4640_v33 = vmul.f32 %v7316_v7, %v9459_v20 }
0x19c3   :  { %6732 = vmatmul.mubr.msk.f32.gmra.mxu1 %vm488_vm2, %v4638_v61 }
0x19c4   :  { %6734 = vmatprep.mubr.msk.f32.mxu1 %vm488_vm2, %v4639_v8  ;;  %v6925_v8 = vunpack.i.l.bf16 %v6924_v13  ;;  %v7389_v13 = vld [vmem:[%s9881_s2 + $0x40] sm:$0xff]  }
0x19c6   :  { %v4896_v27 = vsel %vm342_vm1, %v9115_v35, %v6925_v8  ;;  %v7385_v35 = vld [vmem:[%s9881_s2 + $0x60] sm:$0xff]  }
0x19c7   :  { %6735 = vmatmul.mubr.msk.f32.gmra.mxu1 %vm488_vm2, %v4640_v33 }
0x1a7b   :  { %v6727_v45 = vpop.f32.mrf.mxu1 }
0x1a7d   :  { %v4755_v54 = vpop.f32.mrf.mxu1 }
0x1a7e   :  { %v6927_v23 = vpack.i.bf16 %v6727_v45, %v4755_v54 }
0x1a7f   :  { %v6730_v26 = vpop.f32.mrf.mxu1 }
0x1a80   :  { %6928 = vrot.lane.b32.xlu0 %v6927_v23, %s7444_s27 }
0x1a81   :  { %v4765_v42 = vpop.f32.mrf.mxu1 }
0x1a82   :  { %v6937_v15 = vpack.i.bf16 %v6730_v26, %v4765_v42 }
0x1a83   :  { %v6733_v37 = vpop.f32.mrf.mxu1 }
0x1a84   :  { %6933 = vrot.lane.b32.xlu0 %v6932_v60, %s7443_s23  ;;  %6938 = vrot.lane.b32.xlu1 %v6937_v15, %s7444_s27  ;;  %v6919_v60 = vpop.permute.xlu0 %6918 }
0x1a85   :  { %v4775_v1 = vpop.f32.mrf.mxu1  ;;  %v6921_v52 = vunpack.i.h.bf16 %v6919_v60  ;;  %v6920_v36 = vunpack.i.l.bf16 %v6919_v60 }
0x1a86   :  { %v6947_v20 = vpack.i.bf16 %v6733_v37, %v4775_v1 }
0x1a87   :  { %v6736_v50 = vpop.f32.mrf.mxu1  ;;  %v4895_v54 = vsel %vm342_vm1, %v9109_v6, %v6921_v52  ;;  %v4894_v23 = vsel %vm342_vm1, %v9111_v17, %v6920_v36  ;;  %v7383_v17 = vld [vmem:[%s9881_s2 + $0x70] sm:$0xff]  }
0x1a88   :  { %6943 = vrot.lane.b32.xlu1 %v6942_v2, %s7443_s23  ;;  %6948 = vrot.lane.b32.xlu0 %v6947_v20, %s7444_s27  ;;  %v4890_v2 = vsel %vm342_vm1, %v9103_v9, %v6900_v38 }
0x1a89   :  { %v4785_v59 = vpop.f32.mrf.mxu1  ;;  %v4898_v48 = vsel %vm2064_vm3, %v4890_v2, %v6910_v39  ;;  %v7386_v39 = vld [vmem:[%s9881_s2 + $0x58] sm:$0xff]  }
0x1a8a   :  { %v6952_v18 = vpack.i.bf16 %v6736_v50, %v4785_v59 }
0x1a8c   :  { %6953 = vrot.lane.b32.xlu1 %v6952_v18, %s7444_s27 }
0x1af2   :  { %v6929_v49 = vpop.permute.xlu0 %6928 }
0x1af3   :  { %v6931_v14 = vunpack.i.h.bf16 %v6929_v49  ;;  %v6930_v22 = vunpack.i.l.bf16 %v6929_v49 }
0x1af5   :  { %v4906_v57 = vsel %vm2073_vm4, %v4898_v48, %v6930_v22  ;;  %v4907_v11 = vsel %vm2073_vm4, %v4899_v10, %v6931_v14 }
0x1af6   :  { %v4914_v31 = vpack.c.bf16 %v4907_v11, %v4906_v57  ;;  %v6939_v9 = vpop.permute.xlu1 %6938  ;;  %v6934_v56 = vpop.permute.xlu0 %6933  ;;  %v7390_v57 = vld [vmem:[%s9879_s0 + $0x40] sm:$0xff] }
0x1af7   :  { %v6941_v44 = vunpack.i.h.bf16 %v6939_v9  ;;  %v6940_v34 = vunpack.i.l.bf16 %v6939_v9  ;;  %v6936_v47 = vunpack.i.h.bf16 %v6934_v56  ;;  %v6935_v19 = vunpack.i.l.bf16 %v6934_v56 }
0x1af8   :  { %6741 = vmatprep.mubr.msk.bf16.mxu1 %vm87_vm0, %v4914_v31 }
0x1af9   :  { %v4909_v58 = vsel %vm2073_vm4, %v4901_v40, %v6941_v44  ;;  %v4908_v61 = vsel %vm2073_vm4, %v4900_v51, %v6940_v34  ;;  %v4902_v15 = vsel %vm2064_vm3, %v4894_v23, %v6935_v19  ;;  %v4903_v37 = vsel %vm2064_vm3, %v4895_v54, %v6936_v47  ;;  %v7392_v34 = vld [vmem:[%s9879_s0 + $0x48] sm:$0xff] }
0x1afa   :  { %v4915_v7 = vpack.c.bf16 %v4909_v58, %v4908_v61  ;;  %v6944_v33 = vpop.permute.xlu1 %6943  ;;  %v6949_v45 = vpop.permute.xlu0 %6948  ;;  %v7393_v61 = vld [vmem:[%s9879_s0 + $0x58] sm:$0xff] }
0x1afb   :  { %v6951_v26 = vunpack.i.h.bf16 %v6949_v45  ;;  %v6950_v42 = vunpack.i.l.bf16 %v6949_v45  ;;  %v6946_v1 = vunpack.i.h.bf16 %v6944_v33  ;;  %v6945_v20 = vunpack.i.l.bf16 %v6944_v33 }
0x1afc   :  { %6742 = vmatmul.mubr.msk.bf16.vlgmr.msra.gmra.mxu1 %vm87_vm0, %v4915_v7 }
0x1afd   :  { %v4910_v50 = vsel %vm2073_vm4, %v4902_v15, %v6950_v42  ;;  %v4911_v59 = vsel %vm2073_vm4, %v4903_v37, %v6951_v26  ;;  %6762 = vmatpush3.bf16.msra.mxu1 %v9510_v25  ;;  %v4905_v60 = vsel %vm2064_vm3, %v4897_v24, %v6946_v1  ;;  %v4904_v41 = vsel %vm2064_vm3, %v4896_v27, %v6945_v20  ;;  %v7394_v26 = vld [vmem:[%s9879_s0 + $0x60] sm:$0xff] }
0x1afe   :  { %v4916_v6 = vpack.c.bf16 %v4911_v59, %v4910_v50  ;;  %v6954_v18 = vpop.permute.xlu1 %6953  ;;  %6763 = vmatprep.subr.bf16.mxu1 %v7383_v17  ;;  %v7396_v50 = vld [vmem:[%s9879_s0 + $0x70] sm:$0xff] }
0x1aff   :  { %v6956_v43 = vunpack.i.h.bf16 %v6954_v18  ;;  %v6955_v16 = vunpack.i.l.bf16 %v6954_v18 }
0x1b00   :  { %6745 = vmatprep.mubr.msk.bf16.mxu1 %vm87_vm0, %v4916_v6 }
0x1b01   :  { %v4913_v25 = vsel %vm2073_vm4, %v4905_v60, %v6956_v43  ;;  %v4912_v38 = vsel %vm2073_vm4, %v4904_v41, %v6955_v16  ;;  %6764 = vmatpush3.bf16.msra.mxu1 %v7383_v17 }
0x1b02   :  { %v4917_v29 = vpack.c.bf16 %v4913_v25, %v4912_v38  ;;  %6765 = vmatprep.subr.bf16.mxu1 %v7384_v30 }
0x1b04   :  { %6746 = vmatmul.mubr.msk.bf16.gmra.mxu1 %vm87_vm0, %v4917_v29 }
0x1b05   :  { %6766 = vmatpush3.bf16.msra.mxu1 %v7384_v30 }
0x1b06   :  { %6767 = vmatprep.subr.bf16.mxu1 %v7385_v35 }
0x1b09   :  { %6768 = vmatpush3.bf16.msra.mxu1 %v7385_v35 }
0x1b0a   :  { %6769 = vmatprep.subr.bf16.mxu1 %v7386_v39 }
0x1b0d   :  { %6770 = vmatpush3.bf16.msra.mxu1 %v7386_v39 }
0x1b0e   :  { %6771 = vmatprep.subr.bf16.mxu1 %v7387_v3 }
0x1b11   :  { %6772 = vmatpush3.bf16.msra.mxu1 %v7387_v3 }
0x1b12   :  { %6773 = vmatprep.subr.bf16.mxu1 %v7388_v21 }
0x1b15   :  { %6774 = vmatpush3.bf16.msra.mxu1 %v7388_v21 }
0x1b16   :  { %6775 = vmatprep.subr.bf16.mxu1 %v7389_v13 }
0x1b19   :  { %6776 = vmatpush3.bf16.msra.mxu1 %v7389_v13 }
0x1bbc   :  { %v6743_v49 = vpop.f32.mrf.mxu1 }
0x1bbd   :  { %v4973_v5 = vadd.f32 %v6743_v49, %v8288_v0 }
0x1bbe   :  { %v4964_v2 = vpop.f32.mrf.mxu1 }
0x1bbf   :  { %v4965_v14 = vadd.f32 %v4964_v2, %v8288_v0  ;;  %v4997_v22 = vmul.f32 %v4973_v5, %v8293_v63 }
0x1bc0   :  { %v6744_v32 = vpop.f32.mrf.mxu1 }
0x1bc1   :  { %v4995_v55 = vmul.f32 %v4965_v14, %v8293_v63  ;;  %v4976_v48 = vadd.f32 %v6744_v32, %v8288_v0  ;;  %v9601_v31 = vadd.f32 %v7391_v4, %v4997_v22 }
0x1bc2   :  { %v4967_v10 = vpop.f32.mrf.mxu1 }
0x1bc3   :  { %v9595_v11 = vadd.f32 %v7390_v57, %v4995_v55  ;;  %v4968_v12 = vadd.f32 %v4967_v10, %v8288_v0  ;;  %v4998_v56 = vmul.f32 %v4976_v48, %v8293_v63  ;;  %v5017_v58 = vsel %vm87_vm0, %v9601_v31, 0.0 }
0x1bc4   :  { %v6747_v9 = vpop.f32.mrf.mxu1 }
0x1bc5   :  { %v4996_v52 = vmul.f32 %v4968_v12, %v8293_v63  ;;  %v5011_v36 = vsel %vm87_vm0, %v9595_v11, 0.0  ;;  %v4989_v47 = vadd.f32 %v6747_v9, %v8288_v0  ;;  %v9619_v28 = vadd.f32 %v7393_v61, %v4998_v56 }
0x1bc6   :  { %v4980_v44 = vpop.f32.mrf.mxu1  ;;  %5012 = vadd.xlane.f32.xlu0 %v5011_v36 }
0x1bc7   :  { %v9610_v51 = vadd.f32 %v7392_v34, %v4996_v52  ;;  %v4981_v40 = vadd.f32 %v4980_v44, %v8288_v0  ;;  %v5001_v23 = vmul.f32 %v4989_v47, %v8293_v63  ;;  %v5020_v1 = vsel %vm87_vm0, %v9619_v28, 0.0 }
0x1bc8   :  { %v6748_v19 = vpop.f32.mrf.mxu1 }
0x1bc9   :  { %v4999_v8 = vmul.f32 %v4981_v40, %v8293_v63  ;;  %v4992_v7 = vadd.f32 %v6748_v19, %v8288_v0  ;;  %v5014_v33 = vsel %vm87_vm0, %v9610_v51, 0.0  ;;  %v9644_v59 = vadd.f32 %v7396_v50, %v5001_v23 }
0x1bca   :  { %v4983_v45 = vpop.f32.mrf.mxu1  ;;  %5015 = vadd.xlane.f32.xlu1 %v5014_v33  ;;  %5018 = vadd.xlane.f32.xlu0 %v5017_v58 }
0x1bcb   :  { %v4984_v54 = vadd.f32 %v4983_v45, %v8288_v0  ;;  %v9630_v42 = vadd.f32 %v7394_v26, %v4999_v8  ;;  %v5002_v15 = vmul.f32 %v4992_v7, %v8293_v63  ;;  %v7395_v0 = vld [vmem:[%s9879_s0 + $0x68] sm:$0xff]  ;;  %v5029_v27 = vsel %vm87_vm0, %v9644_v59, 0.0 }
0x1bcd   :  { %v5000_v37 = vmul.f32 %v4984_v54, %v8293_v63  ;;  %v7397_v63 = vld [vmem:[%s9879_s0 + $0x78] sm:$0xff]  ;;  %v5023_v17 = vsel %vm87_vm0, %v9630_v42, 0.0 }
0x1bce   :  { %5021 = vadd.xlane.f32.xlu0 %v5020_v1  ;;  %v9649_v6 = vadd.f32 %v7397_v63, %v5002_v15 }
0x1bcf   :  { %v9639_v20 = vadd.f32 %v7395_v0, %v5000_v37 }
0x1bd0   :  { %v5032_v24 = vsel %vm87_vm0, %v9649_v6, 0.0 }
0x1bd1   :  { %v5026_v18 = vsel %vm87_vm0, %v9639_v20, 0.0 }
0x1bd2   :  { %5027 = vadd.xlane.f32.xlu1 %v5026_v18  ;;  %5024 = vadd.xlane.f32.xlu0 %v5023_v17 }
0x1bd6   :  { %5033 = vadd.xlane.f32.xlu1 %v5032_v24  ;;  %5030 = vadd.xlane.f32.xlu0 %v5029_v27 }
0x1c4f   :  { %v5013_v43 = vpop.xlane.xlu0 %5012 }
0x1c50   :  { %v5035_v16 = vmul.f32 0.03125, %v5013_v43 }
0x1c52   :  { %v9660_v60 = vsub.f32 %v9595_v11, %v5035_v16 }
0x1c53   :  { %v5016_v41 = vpop.xlane.xlu1 %5015  ;;  %v5019_v25 = vpop.xlane.xlu0 %5018 }
0x1c54   :  { %v5036_v38 = vmul.f32 0.03125, %v5016_v41  ;;  %v5037_v29 = vmul.f32 0.03125, %v5019_v25  ;;  %v5051_v30 = vmul.f32 %v9660_v60, %v9660_v60 }
0x1c56   :  { %v9665_v35 = vsub.f32 %v9610_v51, %v5036_v38  ;;  %v9668_v39 = vsub.f32 %v9601_v31, %v5037_v29  ;;  %v5059_v3 = vsel %vm87_vm0, %v5051_v30, 0.0 }
0x1c57   :  { %5060 = vadd.xlane.f32.xlu0 %v5059_v3  ;;  %v5022_v21 = vpop.xlane.xlu0 %5021 }
0x1c58   :  { %v5038_v13 = vmul.f32 0.03125, %v5022_v21  ;;  %v5052_v49 = vmul.f32 %v9665_v35, %v9665_v35  ;;  %v5053_v5 = vmul.f32 %v9668_v39, %v9668_v39 }
0x1c5a   :  { %v9676_v2 = vsub.f32 %v9619_v28, %v5038_v13  ;;  %v5062_v14 = vsel %vm87_vm0, %v5052_v49, 0.0  ;;  %v5065_v22 = vsel %vm87_vm0, %v5053_v5, 0.0 }
0x1c5b   :  { %5063 = vadd.xlane.f32.xlu1 %v5062_v14  ;;  %v5028_v32 = vpop.xlane.xlu1 %5027  ;;  %5066 = vadd.xlane.f32.xlu0 %v5065_v22  ;;  %v5025_v55 = vpop.xlane.xlu0 %5024 }
0x1c5c   :  { %v5040_v48 = vmul.f32 0.03125, %v5028_v32  ;;  %v5039_v10 = vmul.f32 0.03125, %v5025_v55  ;;  %v5054_v57 = vmul.f32 %v9676_v2, %v9676_v2 }
0x1c5e   :  { %v9683_v12 = vsub.f32 %v9639_v20, %v5040_v48  ;;  %v9686_v4 = vsub.f32 %v9630_v42, %v5039_v10  ;;  %v5068_v9 = vsel %vm87_vm0, %v5054_v57, 0.0 }
0x1c5f   :  { %v5034_v56 = vpop.xlane.xlu1 %5033  ;;  %5069 = vadd.xlane.f32.xlu1 %v5068_v9  ;;  %v5031_v52 = vpop.xlane.xlu0 %5030 }
0x1c60   :  { %v5042_v36 = vmul.f32 0.03125, %v5034_v56  ;;  %v5041_v44 = vmul.f32 0.03125, %v5031_v52  ;;  %v5056_v34 = vmul.f32 %v9683_v12, %v9683_v12  ;;  %v5055_v40 = vmul.f32 %v9686_v4, %v9686_v4 }
0x1c62   :  { %v9694_v47 = vsub.f32 %v9649_v6, %v5042_v36  ;;  %v9697_v19 = vsub.f32 %v9644_v59, %v5041_v44  ;;  %v5074_v58 = vsel %vm87_vm0, %v5056_v34, 0.0  ;;  %v5071_v61 = vsel %vm87_vm0, %v5055_v40, 0.0 }
0x1c63   :  { %5075 = vadd.xlane.f32.xlu1 %v5074_v58  ;;  %5072 = vadd.xlane.f32.xlu0 %v5071_v61 }
0x1c64   :  { %v5058_v8 = vmul.f32 %v9694_v47, %v9694_v47  ;;  %v5057_v7 = vmul.f32 %v9697_v19, %v9697_v19 }
0x1c66   :  { %v5080_v33 = vsel %vm87_vm0, %v5058_v8, 0.0  ;;  %v5077_v45 = vsel %vm87_vm0, %v5057_v7, 0.0 }
0x1c67   :  { %5081 = vadd.xlane.f32.xlu1 %v5080_v33  ;;  %5078 = vadd.xlane.f32.xlu0 %v5077_v45 }
0x1ce0   :  { %v5061_v54 = vpop.xlane.xlu0 %5060 }
0x1ce1   :  { %v5083_v23 = vmul.f32 0.03125, %v5061_v54 }
0x1ce3   :  { %v5091_v26 = vadd.f32 1e-05, %v5083_v23 }
0x1ce4   :  { %v5064_v15 = vpop.xlane.xlu1 %5063  ;;  %v5067_v37 = vpop.xlane.xlu0 %5066 }
0x1ce5   :  { %7317 = vrsqrt.f32 %v5091_v26  ;;  %v5084_v1 = vmul.f32 0.03125, %v5064_v15  ;;  %v5085_v0 = vmul.f32 0.03125, %v5067_v37  ;;  %v9915_v15 = vld [vmem:[#allocation5_spill] sm:$0xff] }
0x1ce7   :  { %v5092_v50 = vadd.f32 1e-05, %v5084_v1  ;;  %v5093_v63 = vadd.f32 1e-05, %v5085_v0  ;;  %v7398_v0 = vld [vmem:[%s9881_s2 + $0x30] sm:$0xff]  }
0x1ce8   :  { %v5070_v18 = vpop.xlane.xlu1 %5069 }
0x1ce9   :  { %7319 = vrsqrt.f32 %v5092_v50  ;;  %v5086_v17 = vmul.f32 0.03125, %v5070_v18 }
0x1cea   :  { %7321 = vrsqrt.f32 %v5093_v63 }
0x1ceb   :  { %v5094_v24 = vadd.f32 1e-05, %v5086_v17  ;;  %v9916_v17 = vld [vmem:[#allocation6_spill] sm:$0xff] }
0x1cec   :  { %v5076_v27 = vpop.xlane.xlu1 %5075  ;;  %v5073_v43 = vpop.xlane.xlu0 %5072 }
0x1ced   :  { %7323 = vrsqrt.f32 %v5094_v24  ;;  %v5088_v16 = vmul.f32 0.03125, %v5076_v27  ;;  %v5087_v41 = vmul.f32 0.03125, %v5073_v43  ;;  %v7399_v27 = vld [vmem:[%s9881_s2 + $0xb8] sm:$0xff]  }
0x1cef   :  { %v5096_v25 = vadd.f32 1e-05, %v5088_v16  ;;  %v5095_v38 = vadd.f32 1e-05, %v5087_v41 }
0x1cf0   :  { %v5082_v29 = vpop.xlane.xlu1 %5081  ;;  %v5079_v30 = vpop.xlane.xlu0 %5078 }
0x1cf1   :  { %7325 = vrsqrt.f32 %v5096_v25  ;;  %v5090_v3 = vmul.f32 0.03125, %v5082_v29  ;;  %v5089_v21 = vmul.f32 0.03125, %v5079_v30 }
0x1cf2   :  { %v7318_v13 = vpop.eup %7317  ;;  %7327 = vrsqrt.f32 %v5095_v38 }
0x1cf3   :  { %v5098_v49 = vadd.f32 1e-05, %v5090_v3  ;;  %v5097_v5 = vadd.f32 1e-05, %v5089_v21  ;;  %v5107_v14 = vmul.f32 %v7318_v13, %v9660_v60 }
0x1cf5   :  { %7329 = vrsqrt.f32 %v5098_v49  ;;  %v5115_v48 = vmul.f32 %v5107_v14, %v8487_v62  ;;  %v5321_v50 = vmul.f32 %v5107_v14, %v9915_v15 }
0x1cf6   :  { %v7320_v22 = vpop.eup %7319  ;;  %7331 = vrsqrt.f32 %v5097_v5 }
0x1cf7   :  { %v7322_v32 = vpop.eup %7321  ;;  %v5108_v55 = vmul.f32 %v7320_v22, %v9665_v35  ;;  %v5123_v36 = vadd.f32 %v5115_v48, %v8504_v53  ;;  %v5329_v24 = vadd.f32 %v5321_v50, %v9916_v17  ;;  %v7401_v48 = vld [vmem:[%s9881_s2 + $0xa8] sm:$0xff]  }
0x1cf8   :  { %v5109_v10 = vmul.f32 %v7322_v32, %v9668_v39  ;;  %v7400_v32 = vld [vmem:[%s9881_s2 + $0xb0] sm:$0xff]  }
0x1cf9   :  { %v5116_v57 = vmul.f32 %v5108_v55, %v8487_v62  ;;  %v5322_v37 = vmul.f32 %v5108_v55, %v9915_v15 }
0x1cfa   :  { %v7324_v9 = vpop.eup %7323  ;;  %v5117_v56 = vmul.f32 %v5109_v10, %v8487_v62  ;;  %v5323_v38 = vmul.f32 %v5109_v10, %v9915_v15  ;;  %v7402_v10 = vld [vmem:[%s9881_s2 + $0xa0] sm:$0xff]  }
0x1cfb   :  { %v5110_v52 = vmul.f32 %v7324_v9, %v9676_v2  ;;  %v5124_v60 = vadd.f32 %v5116_v57, %v8504_v53  ;;  %v7403_v57 = vld [vmem:[%s9881_s2 + $0x98] sm:$0xff]   ;;  %v7404_v9 = vld [vmem:[%s9881_s2 + $0x90] sm:$0xff]  }
0x1cfc   :  { %v5125_v39 = vadd.f32 %v5117_v56, %v8504_v53  ;;  %v5331_v3 = vadd.f32 %v5323_v38, %v9916_v17  ;;  %v7405_v56 = vld [vmem:[%s9881_s2 + $0x88] sm:$0xff]  }
0x1cfd   :  { %v5118_v44 = vmul.f32 %v5110_v52, %v8487_v62  ;;  %v5131_v34 = vpack.c.bf16 %v5124_v60, %v5123_v36  ;;  %v5324_v43 = vmul.f32 %v5110_v52, %v9915_v15  ;;  %v7406_v52 = vld [vmem:[%s9881_s2 + $0x80] sm:$0xff]  }
0x1cfe   :  { %v7326_v40 = vpop.eup %7325  ;;  %v9917_v60 = vld [vmem:[#allocation7_spill] sm:$0xff] }
0x1cff   :  { %v7328_v35 = vpop.eup %7327  ;;  %6753 = vmatprep.mubr.msk.bf16.mxu0 %vm87_vm0, %v5131_v34  ;;  %v5126_v58 = vadd.f32 %v5118_v44, %v8504_v53  ;;  %v5112_v61 = vmul.f32 %v7326_v40, %v9683_v12 }
0x1d00   :  { %v5111_v8 = vmul.f32 %v7328_v35, %v9686_v4 }
0x1d01   :  { %v5132_v2 = vpack.c.bf16 %v5126_v58, %v5125_v39  ;;  %v5120_v7 = vmul.f32 %v5112_v61, %v8487_v62  ;;  %v5326_v25 = vmul.f32 %v5112_v61, %v9915_v15 }
0x1d02   :  { %v7330_v33 = vpop.eup %7329  ;;  %v5119_v45 = vmul.f32 %v5111_v8, %v8487_v62  ;;  %v5325_v41 = vmul.f32 %v5111_v8, %v9915_v15 }
0x1d03   :  { %v7332_v54 = vpop.eup %7331  ;;  %6754 = vmatmul.mubr.msk.bf16.vlgmr.msra.gmra.mxu0 %vm87_vm0, %v5132_v2  ;;  %v5128_v23 = vadd.f32 %v5120_v7, %v8504_v53  ;;  %v5114_v26 = vmul.f32 %v7330_v33, %v9694_v47  ;;  %v5334_v30 = vadd.f32 %v5326_v25, %v9916_v17 }
0x1d04   :  { %6786 = vmatpush3.bf16.msra.mxu0 %v9395_v46  ;;  %v5127_v12 = vadd.f32 %v5119_v45, %v8504_v53  ;;  %v5113_v4 = vmul.f32 %v7332_v54, %v9697_v19  ;;  %v5330_v46 = vadd.f32 %v5322_v37, %v9916_v17  ;;  %v5333_v29 = vadd.f32 %v5325_v41, %v9916_v17 }
0x1d05   :  { %v5122_v1 = vmul.f32 %v5114_v26, %v8487_v62  ;;  %6787 = vmatprep.subr.bf16.mxu0 %v7398_v0  ;;  %v5328_v49 = vmul.f32 %v5114_v26, %v9915_v15 }
0x1d06   :  { %v5133_v63 = vpack.c.bf16 %v5128_v23, %v5127_v12  ;;  %v5121_v47 = vmul.f32 %v5113_v4, %v8487_v62  ;;  %v5337_v62 = vpack.c.bf16 %v5330_v46, %v5329_v24  ;;  %v5327_v13 = vmul.f32 %v5113_v4, %v9915_v15 }
0x1d07   :  { %v5130_v18 = vadd.f32 %v5122_v1, %v8504_v53  ;;  %v5339_v5 = vpack.c.bf16 %v5334_v30, %v5333_v29  ;;  %v5336_v22 = vadd.f32 %v5328_v49, %v9916_v17 }
0x1d08   :  { %6757 = vmatprep.mubr.msk.bf16.mxu0 %vm87_vm0, %v5133_v63  ;;  %v5129_v19 = vadd.f32 %v5121_v47, %v8504_v53  ;;  %6788 = vmatpush3.bf16.msra.mxu0 %v7398_v0  ;;  %v5332_v53 = vadd.f32 %v5324_v43, %v9916_v17  ;;  %v5335_v14 = vadd.f32 %v5327_v13, %v9916_v17 }
0x1d09   :  { %6797 = vmatprep.subr.bf16.mxu0 %v7399_v27 }
0x1d0a   :  { %v5134_v16 = vpack.c.bf16 %v5130_v18, %v5129_v19  ;;  %v5338_v21 = vpack.c.bf16 %v5332_v53, %v5331_v3  ;;  %v5340_v55 = vpack.c.bf16 %v5336_v22, %v5335_v14  ;;  %v9918_v18 = vld [vmem:[#allocation8_spill] sm:$0xff] }
0x1d0c   :  { %6758 = vmatmul.mubr.msk.bf16.gmra.mxu0 %vm87_vm0, %v5134_v16 }
0x1d0d   :  { %6789 = vmatprep.mubr.msk.bf16.mxu0 %vm87_vm0, %v5337_v62 }
0x1d14   :  { %6790 = vmatmul.mubr.msk.bf16.vlgmr.msra.gmra.mxu0 %vm87_vm0, %v5338_v21 }
0x1d15   :  { %6793 = vmatprep.mubr.msk.bf16.mxu0 %vm87_vm0, %v5339_v5  ;;  %6798 = vmatpush3.bf16.msra.mxu0 %v7399_v27 }
0x1d16   :  { %6799 = vmatprep.subr.bf16.mxu0 %v7400_v32 }
0x1d19   :  { %6800 = vmatpush3.bf16.msra.mxu0 %v7400_v32 }
0x1d1a   :  { %6801 = vmatprep.subr.bf16.mxu0 %v7401_v48 }
0x1d1c   :  { %6794 = vmatmul.mubr.msk.bf16.gmra.mxu0 %vm87_vm0, %v5340_v55 }
0x1d1d   :  { %6802 = vmatpush3.bf16.msra.mxu0 %v7401_v48 }
0x1d1e   :  { %6803 = vmatprep.subr.bf16.mxu0 %v7402_v10 }
0x1d21   :  { %6804 = vmatpush3.bf16.msra.mxu0 %v7402_v10 }
0x1d22   :  { %6805 = vmatprep.subr.bf16.mxu0 %v7403_v57 }
0x1d25   :  { %6806 = vmatpush3.bf16.msra.mxu0 %v7403_v57 }
0x1d26   :  { %6807 = vmatprep.subr.bf16.mxu0 %v7404_v9 }
0x1d29   :  { %6808 = vmatpush3.bf16.msra.mxu0 %v7404_v9 }
0x1d2a   :  { %6809 = vmatprep.subr.bf16.mxu0 %v7405_v56 }
0x1d2d   :  { %6810 = vmatpush3.bf16.msra.mxu0 %v7405_v56 }
0x1d2e   :  { %6811 = vmatprep.subr.bf16.mxu0 %v7406_v52 }
0x1d31   :  { %6812 = vmatpush3.bf16.msra.mxu0 %v7406_v52 }
0x1dc3   :  { %v6755_v36 = vpop.f32.mrf.mxu0 }
0x1dc4   :  { %v5190_v44 = vadd.f32 %v6755_v36, %v9917_v60 }
0x1dc5   :  { %v5181_v34 = vpop.f32.mrf.mxu0 }
0x1dc6   :  { %v5182_v40 = vadd.f32 %v5181_v34, %v9917_v60  ;;  %v5222_v35 = vmul.f32 0.70710677, %v5190_v44  ;;  %v5214_v38 = vmul.f32 0.5, %v5190_v44 }
0x1dc7   :  { %v6756_v39 = vpop.f32.mrf.mxu0 }
0x1dc8   :  { %v5220_v58 = vmul.f32 0.70710677, %v5182_v40  ;;  %v5193_v61 = vadd.f32 %v6756_v39, %v9917_v60  ;;  %v5212_v14 = vmul.f32 0.5, %v5182_v40 }
0x1dc9   :  { %v5184_v8 = vpop.f32.mrf.mxu0 }
0x1dca   :  { %7333 = verf.f32 %v5220_v58  ;;  %v5223_v2 = vmul.f32 0.70710677, %v5193_v61  ;;  %v5185_v7 = vadd.f32 %v5184_v8, %v9917_v60  ;;  %v5215_v29 = vmul.f32 0.5, %v5193_v61 }
0x1dcb   :  { %7335 = verf.f32 %v5222_v35 }
0x1dcc   :  { %7337 = verf.f32 %v5223_v2  ;;  %v5221_v33 = vmul.f32 0.70710677, %v5185_v7  ;;  %v6759_v45 = vpop.f32.mrf.mxu0  ;;  %v5213_v22 = vmul.f32 0.5, %v5185_v7 }
0x1dcd   :  { %v9788_v54 = vadd.f32 %v6759_v45, %v9917_v60 }
0x1dce   :  { %7339 = verf.f32 %v5221_v33  ;;  %v5197_v23 = vpop.f32.mrf.mxu0 }
0x1dcf   :  { %v9791_v26 = vadd.f32 %v5197_v23, %v9917_v60  ;;  %v5226_v15 = vmul.f32 0.70710677, %v9788_v54 }
0x1dd0   :  { %v6760_v37 = vpop.f32.mrf.mxu0 }
0x1dd1   :  { %v5224_v12 = vmul.f32 0.70710677, %v9791_v26  ;;  %v5209_v4 = vadd.f32 %v6760_v37, %v9917_v60 }
0x1dd2   :  { %v5200_v1 = vpop.f32.mrf.mxu0 }
0x1dd3   :  { %7341 = verf.f32 %v5224_v12  ;;  %v5227_v0 = vmul.f32 0.70710677, %v5209_v4  ;;  %v5201_v50 = vadd.f32 %v5200_v1, %v9917_v60  ;;  %v5219_v12 = vmul.f32 0.5, %v5209_v4 }
0x1dd4   :  { %7343 = verf.f32 %v5226_v15  ;;  %v6791_v63 = vpop.f32.mrf.mxu0 }
0x1dd5   :  { %7345 = verf.f32 %v5227_v0  ;;  %v5225_v47 = vmul.f32 0.70710677, %v5201_v50  ;;  %v9798_v17 = vadd.f32 %v6791_v63, %v9918_v18  ;;  %v5216_v0 = vmul.f32 0.5, %v9791_v26 }
0x1dd6   :  { %v5387_v46 = vpop.f32.mrf.mxu0  ;;  %v5217_v63 = vmul.f32 0.5, %v5201_v50 }
0x1dd7   :  { %v7334_v19 = vpop.eup %7333  ;;  %7347 = verf.f32 %v5225_v47  ;;  %v9801_v24 = vadd.f32 %v5387_v46, %v9918_v18  ;;  %v5428_v43 = vmul.f32 0.70710677, %v9798_v17  ;;  %v5218_v46 = vmul.f32 0.5, %v9788_v54 }
0x1dd8   :  { %v7336_v27 = vpop.eup %7335  ;;  %v6792_v16 = vpop.f32.mrf.mxu0  ;;  %v5236_v53 = vadd.f32 1.0, %v7334_v19 }
0x1dd9   :  { %v7338_v62 = vpop.eup %7337  ;;  %v5426_v41 = vmul.f32 0.70710677, %v9801_v24  ;;  %v9806_v25 = vadd.f32 %v6792_v16, %v9918_v18  ;;  %v5238_v13 = vadd.f32 1.0, %v7336_v27  ;;  %v5418_v54 = vmul.f32 0.5, %v9801_v24 }
0x1dda   :  { %v5239_v30 = vadd.f32 1.0, %v7338_v62  ;;  %v5390_v3 = vpop.f32.mrf.mxu0  ;;  %v5244_v9 = vmul.f32 %v5236_v53, %v5212_v14 }
0x1ddb   :  { %v7340_v21 = vpop.eup %7339  ;;  %7349 = verf.f32 %v5426_v41  ;;  %v5429_v49 = vmul.f32 0.70710677, %v9806_v25  ;;  %v5391_v5 = vadd.f32 %v5390_v3, %v9918_v18  ;;  %v5246_v36 = vmul.f32 %v5238_v13, %v5214_v38 }
0x1ddc   :  { %v5237_v32 = vadd.f32 1.0, %v7340_v21  ;;  %7351 = verf.f32 %v5428_v43  ;;  %v6795_v55 = vpop.f32.mrf.mxu0  ;;  %v5247_v48 = vmul.f32 %v5239_v30, %v5215_v29  ;;  %v5421_v3 = vmul.f32 0.5, %v9806_v25 }
0x1ddd   :  { %7353 = verf.f32 %v5429_v49  ;;  %v5427_v10 = vmul.f32 0.70710677, %v5391_v5  ;;  %v9811_v57 = vadd.f32 %v6795_v55, %v9918_v18  ;;  %v5419_v21 = vmul.f32 0.5, %v5391_v5 }
0x1dde   :  { %v5245_v56 = vmul.f32 %v5237_v32, %v5213_v22  ;;  %v5403_v52 = vpop.f32.mrf.mxu0  ;;  %v5253_v58 = vpack.c.bf16 %v5247_v48, %v5246_v36  ;;  %v5420_v49 = vmul.f32 0.5, %v9798_v17 }
0x1ddf   :  { %7355 = verf.f32 %v5427_v10  ;;  %v5432_v60 = vmul.f32 0.70710677, %v9811_v57  ;;  %v5404_v34 = vadd.f32 %v5403_v52, %v9918_v18  ;;  %v5424_v17 = vmul.f32 0.5, %v9811_v57 }
0x1de0   :  { %v7342_v44 = vpop.eup %7341  ;;  %v6796_v40 = vpop.f32.mrf.mxu0  ;;  %v5252_v35 = vpack.c.bf16 %v5245_v56, %v5244_v9 }
0x1de1   :  { %v7344_v39 = vpop.eup %7343  ;;  %v5415_v61 = vadd.f32 %v6796_v40, %v9918_v18  ;;  %v5430_v2 = vmul.f32 0.70710677, %v5404_v34  ;;  %v5240_v33 = vadd.f32 1.0, %v7342_v44  ;;  %7357 = verf.f32 %v5432_v60 }
0x1de2   :  { %v7346_v8 = vpop.eup %7345  ;;  %v5406_v7 = vpop.f32.mrf.mxu0  ;;  %6777 = vmatprep.mubr.bf16.mxu1 %v5252_v35  ;;  %v5242_v37 = vadd.f32 1.0, %v7344_v39  ;;  %v5422_v5 = vmul.f32 0.5, %v5404_v34 }
0x1de3   :  { %v5243_v45 = vadd.f32 1.0, %v7346_v8  ;;  %v5433_v23 = vmul.f32 0.70710677, %v5415_v61  ;;  %6778 = vmatmul.mubr.bf16.vlgmr.msra.gmra.mxu1 %v5253_v58  ;;  %7359 = verf.f32 %v5430_v2  ;;  %v5407_v1 = vadd.f32 %v5406_v7, %v9918_v18 }
0x1de4   :  { %v7348_v15 = vpop.eup %7347  ;;  %v5248_v43 = vmul.f32 %v5240_v33, %v5216_v0  ;;  %v5250_v41 = vmul.f32 %v5242_v37, %v5218_v46  ;;  %v5425_v24 = vmul.f32 0.5, %v5415_v61 }
0x1de5   :  { %v5241_v47 = vadd.f32 1.0, %v7348_v15  ;;  %7361 = verf.f32 %v5433_v23  ;;  %v5251_v19 = vmul.f32 %v5243_v45, %v5219_v12  ;;  %v5431_v27 = vmul.f32 0.70710677, %v5407_v1  ;;  %v9919_v23 = vld [vmem:[#allocation9_spill] sm:$0xff]  ;;  %v9920_v12 = vld [vmem:[#allocation10_spill] sm:$0xff] }
0x1de6   :  { %v5423_v40 = vmul.f32 0.5, %v5407_v1 }
0x1de7   :  { %v5249_v16 = vmul.f32 %v5241_v47, %v5217_v63  ;;  %7363 = verf.f32 %v5431_v27  ;;  %v5255_v29 = vpack.c.bf16 %v5251_v19, %v5250_v41 }
0x1de8   :  { %v7350_v62 = vpop.eup %7349 }
0x1de9   :  { %v7352_v38 = vpop.eup %7351  ;;  %v5254_v53 = vpack.c.bf16 %v5249_v16, %v5248_v43  ;;  %v5442_v30 = vadd.f32 1.0, %v7350_v62 }
0x1dea   :  { %v7354_v4 = vpop.eup %7353  ;;  %v5444_v50 = vadd.f32 1.0, %v7352_v38 }
0x1deb   :  { %v5445_v18 = vadd.f32 1.0, %v7354_v4  ;;  %6781 = vmatprep.mubr.bf16.mxu1 %v5254_v53  ;;  %v5450_v22 = vmul.f32 %v5442_v30, %v5418_v54 }
0x1dec   :  { %v7356_v26 = vpop.eup %7355  ;;  %6782 = vmatmul.mubr.bf16.gmra.mxu1 %v5255_v29  ;;  %v5452_v48 = vmul.f32 %v5444_v50, %v5420_v49  ;;  %v9921_v50 = vld [vmem:[#allocation11_spill] sm:$0xff] }
0x1ded   :  { %v5443_v13 = vadd.f32 1.0, %v7356_v26  ;;  %v5453_v14 = vmul.f32 %v5445_v18, %v5421_v3 }
0x1dee   :  { %v7358_v55 = vpop.eup %7357 }
0x1def   :  { %v5451_v32 = vmul.f32 %v5443_v13, %v5419_v21  ;;  %v5459_v52 = vpack.c.bf16 %v5453_v14, %v5452_v48  ;;  %v5448_v44 = vadd.f32 1.0, %v7358_v55 }
0x1df0   :  { %v7360_v10 = vpop.eup %7359 }
0x1df1   :  { %v5458_v9 = vpack.c.bf16 %v5451_v32, %v5450_v22  ;;  %v5446_v60 = vadd.f32 1.0, %v7360_v10  ;;  %v5456_v2 = vmul.f32 %v5448_v44, %v5424_v17 }
0x1df2   :  { %v7362_v56 = vpop.eup %7361 }
0x1df3   :  { %v5449_v36 = vadd.f32 1.0, %v7362_v56  ;;  %6813 = vmatprep.mubr.bf16.mxu0 %v5458_v9  ;;  %v5454_v58 = vmul.f32 %v5446_v60, %v5422_v5 }
0x1df4   :  { %6814 = vmatmul.mubr.bf16.vlgmr.msra.gmra.mxu0 %v5459_v52  ;;  %v7364_v25 = vpop.eup %7363 }
0x1df5   :  { %v5447_v35 = vadd.f32 1.0, %v7364_v25  ;;  %v5457_v39 = vmul.f32 %v5449_v36, %v5425_v24 }
0x1df7   :  { %v5455_v8 = vmul.f32 %v5447_v35, %v5423_v40  ;;  %v5461_v33 = vpack.c.bf16 %v5457_v39, %v5456_v2 }
0x1df9   :  { %v5460_v7 = vpack.c.bf16 %v5455_v8, %v5454_v58 }
0x1dfb   :  { %6817 = vmatprep.mubr.bf16.mxu0 %v5460_v7 }
0x1dfc   :  { %6818 = vmatmul.mubr.bf16.gmra.mxu0 %v5461_v33 }
0x1ea3   :  { %v6779_v45 = vpop.f32.mrf.mxu1 }
0x1ea4   :  { %v5299_v15 = vadd.f32 %v6779_v45, %v9919_v23 }
0x1ea5   :  { %v5290_v37 = vpop.f32.mrf.mxu1 }
0x1ea6   :  { %v5537_v0 = vmul.f32 %v5299_v15, %v9920_v12  ;;  %v5291_v34 = vadd.f32 %v5290_v37, %v9919_v23 }
0x1ea7   :  { %v6780_v61 = vpop.f32.mrf.mxu1 }
0x1ea8   :  { %v5545_v1 = vadd.f32 %v5537_v0, %v9601_v31  ;;  %v5535_v57 = vmul.f32 %v5291_v34, %v9920_v12  ;;  %v5302_v63 = vadd.f32 %v6780_v61, %v9919_v23 }
0x1ea9   :  { %v5293_v47 = vpop.f32.mrf.mxu1 }
0x1eaa   :  { %5823 = vst.msk [vmem:[%s9882_s3 + $0x50] sm:$0xff] %vm87_vm0, %v5545_v1  ;;  %v5543_v46 = vadd.f32 %v5535_v57, %v9595_v11  ;;  %v5538_v19 = vmul.f32 %v5302_v63, %v9920_v12  ;;  %v5294_v27 = vadd.f32 %v5293_v47, %v9919_v23 }
0x1eac   :  { %5821 = vst.msk [vmem:[%s9882_s3 + $0x40] sm:$0xff] %vm87_vm0, %v5543_v46  ;;  %v5546_v31 = vadd.f32 %v5538_v19, %v9619_v28  ;;  %v5536_v43 = vmul.f32 %v5294_v27, %v9920_v12  ;;  %v6783_v16 = vpop.f32.mrf.mxu1 }
0x1eae   :  { %5824 = vst.msk [vmem:[%s9882_s3 + $0x58] sm:$0xff] %vm87_vm0, %v5546_v31  ;;  %v5544_v11 = vadd.f32 %v5536_v43, %v9610_v51  ;;  %v5306_v62 = vpop.f32.mrf.mxu1 }
0x1eaf   :  { %v5307_v41 = vadd.f32 %v5306_v62, %v9919_v23 }
0x1eb0   :  { %5822 = vst.msk [vmem:[%s9882_s3 + $0x48] sm:$0xff] %vm87_vm0, %v5544_v11  ;;  %v6784_v38 = vpop.f32.mrf.mxu1 }
0x1eb1   :  { %v5539_v28 = vmul.f32 %v5307_v41, %v9920_v12 }
0x1eb2   :  { %v5309_v53 = vpop.f32.mrf.mxu1 }
0x1eb3   :  { %v5547_v4 = vadd.f32 %v5539_v28, %v9630_v42 }
0x1eb4   :  { %v6815_v29 = vpop.f32.mrf.mxu0 }
0x1eb5   :  { %5825 = vst.msk [vmem:[%s9882_s3 + $0x60] sm:$0xff] %vm87_vm0, %v5547_v4 }
0x1eb6   :  { %v5496_v51 = vpop.f32.mrf.mxu0 }
0x1eb8   :  { %v6816_v30 = vpop.f32.mrf.mxu0 }
0x1eba   :  { %v5499_v18 = vpop.f32.mrf.mxu0 }
0x1ebc   :  { %v6819_v26 = vpop.f32.mrf.mxu0 }
0x1ebd   :  { %v5521_v3 = vadd.f32 %v6819_v26, %v9921_v50 }
0x1ebe   :  { %v5512_v54 = vpop.f32.mrf.mxu0 }
0x1ebf   :  { %v5541_v21 = vmul.f32 %v5521_v3, %v9920_v12 }
0x1ec0   :  { %v6820_v13 = vpop.f32.mrf.mxu0 }
0x1ec1   :  { %v5549_v49 = vadd.f32 %v5541_v21, %v9644_v59  ;;  %v5524_v42 = vadd.f32 %v6820_v13, %v9921_v50 }
0x1ec2   :  { %v5515_v14 = vpop.f32.mrf.mxu0 }
0x1ec3   :  { %5827 = vst.msk [vmem:[%s9882_s3 + $0x70] sm:$0xff] %vm87_vm0, %v5549_v49  ;;  %v5542_v22 = vmul.f32 %v5524_v42, %v9920_v12  ;;  %v5516_v32 = vadd.f32 %v5515_v14, %v9921_v50 }
0x1ec5   :  { %v5550_v55 = vadd.f32 %v5542_v22, %v9649_v6  ;;  %v5540_v48 = vmul.f32 %v5516_v32, %v9920_v12 }
0x1ec7   :  { %5828 = vst.msk [vmem:[%s9882_s3 + $0x78] sm:$0xff] %vm87_vm0, %v5550_v55  ;;  %v5548_v59 = vadd.f32 %v5540_v48, %v9639_v20 }
0x1ec9   :  { %5826 = vst.msk [vmem:[%s9882_s3 + $0x68] sm:$0xff] %vm87_vm0, %v5548_v59 }
0x1eca   :  { %5564 = vsyncpa [#allocation3], 1 }

</bundles_post_ra>
